<compile_context>
chip_gen: v5e
topology: v5e:2x2
jax: 0.10.0
libtpu: 0.0.40
codegen_flags: <defaults>
</compile_context>

<pallas_src>
import functools

import jax
import jax.numpy as jnp
import numpy as np
from jax.experimental import pallas as pl
from jax.experimental.pallas import tpu as pltpu


def _lstm_fc_kernel(x_ref,      # (Tt, Bp, Dp)  f32   streamed input chunk
                    wih0_ref,   # (Dp, 4Hp)     f32   layer-0 input weight
                    b0_ref,     # (1, 4Hp)      f32   b_ih0 + b_hh0
                    wf_ref,     # (Hp, 8Hp)     cdt   [W_hh0 | W_ih1] fused
                    whh1_ref,   # (Hp, 4Hp)     cdt
                    b1_ref,     # (1, 4Hp)      f32   b_ih1 + b_hh1
                    fcw_ref,    # (Hp, Op)      cdt
                    fcb_ref,    # (1, Op)       f32
                    out_ref,    # (Bp, Op)      f32
                    xg_ref,     # scratch (Tt, Bp, 4Hp) f32: chunk input proj.
                    pre0_ref,   # scratch (Bp, 4Hp) f32: h1(t-1) @ W_hh0 carry
                    c1_ref,     # scratch (Bp, Hp)  f32
                    h2_ref,     # scratch (Bp, Hp)  f32
                    c2_ref,     # scratch (Bp, Hp)  f32
                    *, T, Tt, Hp, unroll, needs_mask):
    chunk = pl.program_id(0)
    n_chunks = pl.num_programs(0)
    Bp = x_ref.shape[1]
    Dp = x_ref.shape[2]
    G = 4 * Hp

    # ---- zero-init the carried state on the first chunk ----
    @pl.when(chunk == 0)
    def _init():
        pre0_ref[...] = jnp.zeros_like(pre0_ref)
        c1_ref[...] = jnp.zeros_like(c1_ref)
        h2_ref[...] = jnp.zeros_like(h2_ref)
        c2_ref[...] = jnp.zeros_like(c2_ref)

    # ---- layer-0 input projection for the whole chunk: one MXU-friendly
    #      matmul, off the recurrent dependency chain; b0 folded in ----
    x_flat = x_ref[...].reshape(Tt * Bp, Dp)
    xg = jnp.dot(x_flat, wih0_ref[...], preferred_element_type=jnp.float32)
    xg_ref[...] = xg.reshape(Tt, Bp, G) + jnp.reshape(b0_ref[...], (1, 1, G))

    b1 = b1_ref[...]   # (1, G); broadcast in the add, never (Bp, G)

    def step(i, carry):
        pre0, c1, h2, c2 = carry

        # ---- layer 0: only the carried h1(t-1)@W_hh0 contribution remains ----
        g0 = xg_ref[i] + pre0
        i0 = jax.nn.sigmoid(g0[:, 0 * Hp:1 * Hp])
        f0 = jax.nn.sigmoid(g0[:, 1 * Hp:2 * Hp])
        gg0 = jnp.tanh(g0[:, 2 * Hp:3 * Hp])
        o0 = jax.nn.sigmoid(g0[:, 3 * Hp:4 * Hp])
        c1n = f0 * c1 + i0 * gg0
        h1 = o0 * jnp.tanh(c1n)

        # ---- single dependent MXU push: [h1@W_hh0 | h1@W_ih1] ----
        p = jnp.dot(h1.astype(wf_ref.dtype), wf_ref[...],
                    preferred_element_type=jnp.float32)        # (Bp, 8Hp)

        # ---- layer 1; h2(t-1)@W_hh1 is independent of h1 (off the path) ----
        g1 = (p[:, G:] + b1
              + jnp.dot(h2.astype(whh1_ref.dtype), whh1_ref[...],
                        preferred_element_type=jnp.float32))
        i1 = jax.nn.sigmoid(g1[:, 0 * Hp:1 * Hp])
        f1 = jax.nn.sigmoid(g1[:, 1 * Hp:2 * Hp])
        gg1 = jnp.tanh(g1[:, 2 * Hp:3 * Hp])
        o1 = jax.nn.sigmoid(g1[:, 3 * Hp:4 * Hp])
        c2n = f1 * c2 + i1 * gg1
        h2n = o1 * jnp.tanh(c2n)

        pre0n = p[:, :G]
        if needs_mask:
            valid = (chunk * Tt + i) < T          # freeze state on padded steps
            keep = lambda new, old: jnp.where(valid, new, old)
            pre0n = keep(pre0n, pre0)
            c1n = keep(c1n, c1)
            h2n = keep(h2n, h2)
            c2n = keep(c2n, c2)
        return (pre0n, c1n, h2n, c2n)

    carry0 = (pre0_ref[...], c1_ref[...], h2_ref[...], c2_ref[...])
    pre0, c1, h2, c2 = jax.lax.fori_loop(0, Tt, step, carry0, unroll=unroll)
    pre0_ref[...] = pre0
    c1_ref[...] = c1
    h2_ref[...] = h2
    c2_ref[...] = c2

    # ---- final FC on the last top-layer hidden state, last chunk only ----
    @pl.when(chunk == n_chunks - 1)
    def _finish():
        out_ref[...] = (jnp.dot(h2.astype(fcw_ref.dtype), fcw_ref[...],
                                preferred_element_type=jnp.float32)
                        + fcb_ref[...])


def _round_up(n, m):
    return ((n + m - 1) // m) * m


def _pad_gate_cols(w_t, H, Hp):
    """(K, 4H) -> (K, 4Hp): zero-pad each of the 4 gate blocks from H to Hp."""
    K = w_t.shape[0]
    w4 = w_t.reshape(K, 4, H)
    w4 = jnp.pad(w4, ((0, 0), (0, 0), (0, Hp - H)))
    return w4.reshape(K, 4 * Hp)


def modelo_lstm_forward(x_btd, params, *, compute_dtype=jnp.bfloat16,
                        time_block=None, vmem_budget_bytes=40 << 20):
    """ModeloLSTM forward (eval mode). x_btd: (B, T, input_size) float32.

    compute_dtype: dtype of the recurrent / FC matmul operands. Accumulation
    and all gate math stay float32.  Zero padding keeps real lanes exact.
    """
    B, T, D = x_btd.shape
    H = params["whh0"].shape[1]     # (4H, H) -> H
    O = params["fcw"].shape[0]      # (O, H)  -> O

    Hp = _round_up(H, 128)          # lane-align hidden dim (gate slices = full vregs)
    Op = _round_up(O, 128)          # lane-dense output store
    Bp = _round_up(B, 8)            # f32 sublanes
    Dp = _round_up(D, 8)

    f32 = lambda a: jnp.asarray(a, jnp.float32)
    cdt = lambda a: jnp.asarray(a, compute_dtype)

    # ---- zero-padded, pre-transposed weights (real lanes bit-identical) ----
    wih0_tp = _pad_gate_cols(
        jnp.pad(f32(params["wih0"]).T, ((0, Dp - D), (0, 0))), H, Hp)      # (Dp, 4Hp)
    whh0_tp = _pad_gate_cols(
        jnp.pad(f32(params["whh0"]).T, ((0, Hp - H), (0, 0))), H, Hp)      # (Hp, 4Hp)
    wih1_tp = _pad_gate_cols(
        jnp.pad(f32(params["wih1"]).T, ((0, Hp - H), (0, 0))), H, Hp)      # (Hp, 4Hp)
    whh1_tp = _pad_gate_cols(
        jnp.pad(f32(params["whh1"]).T, ((0, Hp - H), (0, 0))), H, Hp)      # (Hp, 4Hp)
    # Fused recurrent weight: one h1-dot per step covers W_hh0 (for step t+1)
    # and W_ih1 (for step t).
    wf = cdt(jnp.concatenate([whh0_tp, wih1_tp], axis=1))                  # (Hp, 8Hp)
    whh1_c = cdt(whh1_tp)
    b0_p = _pad_gate_cols(
        (f32(params["bih0"]) + f32(params["bhh0"])).reshape(1, 4 * H), H, Hp)
    b1_p = _pad_gate_cols(
        (f32(params["bih1"]) + f32(params["bhh1"])).reshape(1, 4 * H), H, Hp)
    fcw_c = cdt(jnp.pad(f32(params["fcw"]).T, ((0, Hp - H), (0, Op - O))))  # (Hp, Op)
    fcb_p = jnp.pad(f32(params["fcb"]).reshape(1, O), ((0, 0), (0, Op - O)))
    # Note: x / wih0 stay f32 — D is tiny, the projection is off the recurrent
    # path, and f32 avoids awkward sub-128-lane bf16 layouts for the x stream.

    # ---- streamed input: (T, Bp, Dp) ----
    x_tbd = jnp.transpose(f32(x_btd), (1, 0, 2))
    x_tbd = jnp.pad(x_tbd, ((0, 0), (0, Bp - B), (0, Dp - D)))

    # ---- pick the time chunk Tt from a VMEM budget; derive vmem_limit ----
    nbytes = lambda a: int(np.prod(a.shape)) * a.dtype.itemsize
    weight_bytes = sum(nbytes(a) for a in
                       (wih0_tp, b0_p, wf, whh1_c, b1_p, fcw_c, fcb_p))
    state_bytes = Bp * (4 * Hp + 3 * Hp) * 4
    out_bytes = Bp * Op * 4
    per_t_bytes = 2 * Bp * Dp * 4 + Bp * 4 * Hp * 4   # x double-buffer + xg scratch
    fixed_bytes = 2 * weight_bytes + state_bytes + 2 * out_bytes + (2 << 20)

    if time_block is None:
        avail = max(vmem_budget_bytes - fixed_bytes, per_t_bytes)
        time_block = int(max(1, avail // per_t_bytes))
    Tt = int(max(1, min(time_block, T)))
    n_chunks = -(-T // Tt)
    Tpad = n_chunks * Tt
    if Tpad != T:
        x_tbd = jnp.pad(x_tbd, ((0, Tpad - T), (0, 0), (0, 0)))

    est_bytes = fixed_bytes + Tt * per_t_bytes
    vmem_limit = int(min(64 << 20, max(32 << 20, est_bytes + (8 << 20))))

    kernel = functools.partial(
        _lstm_fc_kernel, T=T, Tt=Tt, Hp=Hp,
        unroll=int(min(Tt, 8)), needs_mask=(Tpad != T))

    # Constant index_map: same block every grid step -> stays resident in VMEM.
    const = lambda a: pl.BlockSpec(a.shape, lambda t, n=a.ndim: (0,) * n)

    out_p = pl.pallas_call(
        kernel,
        out_shape=jax.ShapeDtypeStruct((Bp, Op), jnp.float32),
        grid_spec=pltpu.PrefetchScalarGridSpec(
            num_scalar_prefetch=0,
            grid=(n_chunks,),
            in_specs=[
                pl.BlockSpec((Tt, Bp, Dp), lambda t: (t, 0, 0)),   # streamed x
                const(wih0_tp), const(b0_p), const(wf),
                const(whh1_c), const(b1_p), const(fcw_c), const(fcb_p),
            ],
            out_specs=pl.BlockSpec((Bp, Op), lambda t: (0, 0)),
            scratch_shapes=[
                pltpu.VMEM((Tt, Bp, 4 * Hp), jnp.float32),   # per-chunk xg
                pltpu.VMEM((Bp, 4 * Hp), jnp.float32),       # pre0 carry
                pltpu.VMEM((Bp, Hp), jnp.float32),           # c1
                pltpu.VMEM((Bp, Hp), jnp.float32),           # h2
                pltpu.VMEM((Bp, Hp), jnp.float32),           # c2
            ]),
        compiler_params=pltpu.CompilerParams(
            dimension_semantics=("arbitrary",),
            vmem_limit_bytes=vmem_limit),
    )(x_tbd, wih0_tp, b0_p, wf, whh1_c, b1_p, fcw_c, fcb_p)

    return out_p[:B, :O]


def init_params(key, input_size, hidden_size, output_size):
    """Deterministic init mimicking PyTorch's U(-1/sqrt(H), 1/sqrt(H))."""
    H = hidden_size
    bound = 1.0 / np.sqrt(H)
    ks = jax.random.split(key, 10)
    u = lambda k, shape: jax.random.uniform(k, shape, jnp.float32, -bound, bound)
    return {
        "wih0": u(ks[0], (4 * H, input_size)),
        "whh0": u(ks[1], (4 * H, H)),
        "bih0": u(ks[2], (4 * H,)),
        "bhh0": u(ks[3], (4 * H,)),
        "wih1": u(ks[4], (4 * H, H)),
        "whh1": u(ks[5], (4 * H, H)),
        "bih1": u(ks[6], (4 * H,)),
        "bhh1": u(ks[7], (4 * H,)),
        "fcw": u(ks[8], (output_size, H)),
        "fcb": u(ks[9], (output_size,)),
    }


def reference_forward(x_btd, params):
    """Pure-JAX stacked-LSTM reference (eval mode) for verification."""
    B, T, D = x_btd.shape
    H = params["whh0"].shape[1]
    hi = jax.lax.Precision.HIGHEST

    def cell(x_t, h, c, wih, whh, bih, bhh):
        g = (jnp.dot(x_t, wih.T, precision=hi)
             + jnp.dot(h, whh.T, precision=hi) + bih + bhh)
        i, f, gg, o = jnp.split(g, 4, axis=-1)
        i, f, o = jax.nn.sigmoid(i), jax.nn.sigmoid(f), jax.nn.sigmoid(o)
        c = f * c + i * jnp.tanh(gg)
        h = o * jnp.tanh(c)
        return h, c

    def step(carry, x_t):
        h1, c1, h2, c2 = carry
        h1, c1 = cell(x_t, h1, c1, params["wih0"], params["whh0"],
                      params["bih0"], params["bhh0"])
        h2, c2 = cell(h1, h2, c2, params["wih1"], params["whh1"],
                      params["bih1"], params["bhh1"])
        return (h1, c1, h2, c2), None

    z = jnp.zeros((B, H), jnp.float32)
    (h1, c1, h2, c2), _ = jax.lax.scan(step, (z, z, z, z),
                                       jnp.transpose(x_btd, (1, 0, 2)))
    return jnp.dot(h2, params["fcw"].T, precision=hi) + params["fcb"]


if __name__ == "__main__":
    B, T = 2, 8
    input_size, hidden_size, output_size = 4, 32, 8

    key = jax.random.PRNGKey(0)
    kx, kp = jax.random.split(key)
    x = jax.random.normal(kx, (B, T, input_size), jnp.float32)
    params = init_params(kp, input_size, hidden_size, output_size)

    ref = jax.block_until_ready(reference_forward(x, params))

    # f32 matmul path, 2 time chunks (exercises resident weights + scratch carry).
    out_f32 = jax.block_until_ready(
        modelo_lstm_forward(x, params, compute_dtype=jnp.float32, time_block=4))
    np.testing.assert_allclose(np.asarray(out_f32), np.asarray(ref),
                               rtol=2e-3, atol=2e-3)

    # bf16 matmul operands (f32 accumulation), 3 chunks with a padded final
    # chunk (exercises the valid-step masking path).
    out_bf16 = jax.block_until_ready(
        modelo_lstm_forward(x, params, compute_dtype=jnp.bfloat16, time_block=3))
    np.testing.assert_allclose(np.asarray(out_bf16), np.asarray(ref),
                               rtol=3e-2, atol=3e-2)

    print("KERNEL_OK")
</pallas_src>

<mosaic_0001>
module attributes {stable_mosaic.version = 11 : i64} {
  func.func @_lstm_fc_kernel(%arg0: i32, %arg1: memref<4x8x8xf32, #tpu.memory_space<vmem>>, %arg2: memref<8x512xf32, #tpu.memory_space<vmem>>, %arg3: memref<1x512xf32, #tpu.memory_space<vmem>>, %arg4: memref<128x1024xf32, #tpu.memory_space<vmem>>, %arg5: memref<128x512xf32, #tpu.memory_space<vmem>>, %arg6: memref<1x512xf32, #tpu.memory_space<vmem>>, %arg7: memref<128x128xf32, #tpu.memory_space<vmem>>, %arg8: memref<1x128xf32, #tpu.memory_space<vmem>>, %arg9: memref<8x128xf32, #tpu.memory_space<vmem>>, %arg10: memref<4x8x512xf32, #tpu.memory_space<vmem>>, %arg11: memref<8x512xf32, #tpu.memory_space<vmem>>, %arg12: memref<8x128xf32, #tpu.memory_space<vmem>>, %arg13: memref<8x128xf32, #tpu.memory_space<vmem>>, %arg14: memref<8x128xf32, #tpu.memory_space<vmem>>) attributes {dimension_semantics = [#tpu.dimension_semantics<arbitrary>], iteration_bounds = array<i64: 2>, scalar_prefetch = 0 : i64, scratch_operands = 5 : i64, tpu.core_type = #tpu.core_type<tc>, window_params = [{transform_indices = @transform_0, window_bounds = array<i64: 4, 8, 8>}, {pipeline_mode = #tpu.pipeline_mode<synchronous>, transform_indices = @transform_1, window_bounds = array<i64: 8, 512>}, {pipeline_mode = #tpu.pipeline_mode<synchronous>, transform_indices = @transform_2, window_bounds = array<i64: 1, 512>}, {pipeline_mode = #tpu.pipeline_mode<synchronous>, transform_indices = @transform_3, window_bounds = array<i64: 128, 1024>}, {pipeline_mode = #tpu.pipeline_mode<synchronous>, transform_indices = @transform_4, window_bounds = array<i64: 128, 512>}, {pipeline_mode = #tpu.pipeline_mode<synchronous>, transform_indices = @transform_5, window_bounds = array<i64: 1, 512>}, {pipeline_mode = #tpu.pipeline_mode<synchronous>, transform_indices = @transform_6, window_bounds = array<i64: 128, 128>}, {pipeline_mode = #tpu.pipeline_mode<synchronous>, transform_indices = @transform_7, window_bounds = array<i64: 1, 128>}, {pipeline_mode = #tpu.pipeline_mode<synchronous>, transform_indices = @transform_8, window_bounds = array<i64: 8, 128>}]} {
    %c0_i32 = arith.constant 0 : i32
    %0 = arith.cmpi eq, %arg0, %c0_i32 : i32
    %1 = arith.extui %0 : i1 to i32
    %c0_i32_0 = arith.constant 0 : i32
    %2 = arith.cmpi ne, %1, %c0_i32_0 : i32
    scf.if %2 {
      %cst_87 = arith.constant 0.000000e+00 : f32
      %277 = vector.broadcast %cst_87 : f32 to vector<8x512xf32>
      %c0_88 = arith.constant 0 : index
      %c0_89 = arith.constant 0 : index
      %278 = vector.load %arg11[%c0_88, %c0_89] : memref<8x512xf32, #tpu.memory_space<vmem>>, vector<8x512xf32>
      tpu.vector_store %arg11[%c0_88, %c0_89], %277 {strides = array<i32>} : memref<8x512xf32, #tpu.memory_space<vmem>>, vector<8x512xf32>,
      %cst_90 = arith.constant 0.000000e+00 : f32
      %279 = vector.broadcast %cst_90 : f32 to vector<8x128xf32>
      %c0_91 = arith.constant 0 : index
      %c0_92 = arith.constant 0 : index
      %280 = vector.load %arg12[%c0_91, %c0_92] : memref<8x128xf32, #tpu.memory_space<vmem>>, vector<8x128xf32>
      tpu.vector_store %arg12[%c0_91, %c0_92], %279 {strides = array<i32>} : memref<8x128xf32, #tpu.memory_space<vmem>>, vector<8x128xf32>,
      %cst_93 = arith.constant 0.000000e+00 : f32
      %281 = vector.broadcast %cst_93 : f32 to vector<8x128xf32>
      %c0_94 = arith.constant 0 : index
      %c0_95 = arith.constant 0 : index
      %282 = vector.load %arg13[%c0_94, %c0_95] : memref<8x128xf32, #tpu.memory_space<vmem>>, vector<8x128xf32>
      tpu.vector_store %arg13[%c0_94, %c0_95], %281 {strides = array<i32>} : memref<8x128xf32, #tpu.memory_space<vmem>>, vector<8x128xf32>,
      %cst_96 = arith.constant 0.000000e+00 : f32
      %283 = vector.broadcast %cst_96 : f32 to vector<8x128xf32>
      %c0_97 = arith.constant 0 : index
      %c0_98 = arith.constant 0 : index
      %284 = vector.load %arg14[%c0_97, %c0_98] : memref<8x128xf32, #tpu.memory_space<vmem>>, vector<8x128xf32>
      tpu.vector_store %arg14[%c0_97, %c0_98], %283 {strides = array<i32>} : memref<8x128xf32, #tpu.memory_space<vmem>>, vector<8x128xf32>,
    } else {
    }
    %c0 = arith.constant 0 : index
    %c0_1 = arith.constant 0 : index
    %c0_2 = arith.constant 0 : index
    %3 = vector.load %arg1[%c0, %c0_1, %c0_2] : memref<4x8x8xf32, #tpu.memory_space<vmem>>, vector<4x8x8xf32>
    %4 = vector.shape_cast %3 : vector<4x8x8xf32> to vector<32x8xf32>
    %c0_3 = arith.constant 0 : index
    %c0_4 = arith.constant 0 : index
    %5 = vector.load %arg2[%c0_3, %c0_4] : memref<8x512xf32, #tpu.memory_space<vmem>>, vector<8x512xf32>
    %cst = arith.constant dense<0.000000e+00> : vector<32x512xf32>
    %6 = tpu.matmul %4, %5, %cst {dimension_numbers = #tpu.dot_dimension_numbers<[1], [0], [0], [1], [0, 0, 1, 1], [], []>} : vector<32x8xf32>, vector<8x512xf32>, vector<32x512xf32> -> vector<32x512xf32>
    %7 = vector.shape_cast %6 : vector<32x512xf32> to vector<4x8x512xf32>
    %c0_5 = arith.constant 0 : index
    %c0_6 = arith.constant 0 : index
    %8 = vector.load %arg3[%c0_5, %c0_6] : memref<1x512xf32, #tpu.memory_space<vmem>>, vector<1x512xf32>
    %9 = vector.shape_cast %8 : vector<1x512xf32> to vector<1x1x512xf32>
    %10 = vector.broadcast %9 : vector<1x1x512xf32> to vector<4x8x512xf32>
    %11 = arith.addf %7, %10 : vector<4x8x512xf32>
    %c0_7 = arith.constant 0 : index
    %c0_8 = arith.constant 0 : index
    %c0_9 = arith.constant 0 : index
    %12 = vector.load %arg10[%c0_7, %c0_8, %c0_9] : memref<4x8x512xf32, #tpu.memory_space<vmem>>, vector<4x8x512xf32>
    tpu.vector_store %arg10[%c0_7, %c0_8, %c0_9], %11 {strides = array<i32>} : memref<4x8x512xf32, #tpu.memory_space<vmem>>, vector<4x8x512xf32>,
    %c0_10 = arith.constant 0 : index
    %c0_11 = arith.constant 0 : index
    %13 = vector.load %arg6[%c0_10, %c0_11] : memref<1x512xf32, #tpu.memory_space<vmem>>, vector<1x512xf32>
    %c0_12 = arith.constant 0 : index
    %c0_13 = arith.constant 0 : index
    %14 = vector.load %arg11[%c0_12, %c0_13] : memref<8x512xf32, #tpu.memory_space<vmem>>, vector<8x512xf32>
    %c0_14 = arith.constant 0 : index
    %c0_15 = arith.constant 0 : index
    %15 = vector.load %arg12[%c0_14, %c0_15] : memref<8x128xf32, #tpu.memory_space<vmem>>, vector<8x128xf32>
    %c0_16 = arith.constant 0 : index
    %c0_17 = arith.constant 0 : index
    %16 = vector.load %arg13[%c0_16, %c0_17] : memref<8x128xf32, #tpu.memory_space<vmem>>, vector<8x128xf32>
    %c0_18 = arith.constant 0 : index
    %c0_19 = arith.constant 0 : index
    %17 = vector.load %arg14[%c0_18, %c0_19] : memref<8x128xf32, #tpu.memory_space<vmem>>, vector<8x128xf32>
    %c0_i32_20 = arith.constant 0 : i32
    %18 = arith.index_cast %c0_i32_20 : i32 to index
    %c0_21 = arith.constant 0 : index
    %c0_22 = arith.constant 0 : index
    %19 = vector.load %arg10[%18, %c0_21, %c0_22] : memref<4x8x512xf32, #tpu.memory_space<vmem>>, vector<1x8x512xf32>
    %20 = vector.shape_cast %19 : vector<1x8x512xf32> to vector<8x512xf32>
    %21 = arith.addf %20, %14 : vector<8x512xf32>
    %22 = vector.extract_strided_slice %21 {offsets = [0, 0], sizes = [8, 128], strides = [1, 1]} : vector<8x512xf32> to vector<8x128xf32>
    %23 = arith.negf %22 : vector<8x128xf32>
    %24 = math.exp %23 : vector<8x128xf32>
    %cst_23 = arith.constant 1.000000e+00 : f32
    %25 = vector.broadcast %cst_23 : f32 to vector<8x128xf32>
    %26 = arith.addf %25, %24 : vector<8x128xf32>
    %27 = arith.divf %25, %26 : vector<8x128xf32>
    %28 = vector.extract_strided_slice %21 {offsets = [0, 128], sizes = [8, 128], strides = [1, 1]} : vector<8x512xf32> to vector<8x128xf32>
    %29 = arith.negf %28 : vector<8x128xf32>
    %30 = math.exp %29 : vector<8x128xf32>
    %cst_24 = arith.constant 1.000000e+00 : f32
    %31 = vector.broadcast %cst_24 : f32 to vector<8x128xf32>
    %32 = arith.addf %31, %30 : vector<8x128xf32>
    %33 = arith.divf %31, %32 : vector<8x128xf32>
    %34 = vector.extract_strided_slice %21 {offsets = [0, 256], sizes = [8, 128], strides = [1, 1]} : vector<8x512xf32> to vector<8x128xf32>
    %35 = math.tanh %34 : vector<8x128xf32>
    %36 = vector.extract_strided_slice %21 {offsets = [0, 384], sizes = [8, 128], strides = [1, 1]} : vector<8x512xf32> to vector<8x128xf32>
    %37 = arith.negf %36 : vector<8x128xf32>
    %38 = math.exp %37 : vector<8x128xf32>
    %cst_25 = arith.constant 1.000000e+00 : f32
    %39 = vector.broadcast %cst_25 : f32 to vector<8x128xf32>
    %40 = arith.addf %39, %38 : vector<8x128xf32>
    %41 = arith.divf %39, %40 : vector<8x128xf32>
    %42 = arith.mulf %33, %15 : vector<8x128xf32>
    %43 = arith.mulf %27, %35 : vector<8x128xf32>
    %44 = arith.addf %42, %43 : vector<8x128xf32>
    %45 = math.tanh %44 : vector<8x128xf32>
    %46 = arith.mulf %41, %45 : vector<8x128xf32>
    %c0_26 = arith.constant 0 : index
    %c0_27 = arith.constant 0 : index
    %47 = vector.load %arg4[%c0_26, %c0_27] : memref<128x1024xf32, #tpu.memory_space<vmem>>, vector<128x1024xf32>
    %cst_28 = arith.constant dense<0.000000e+00> : vector<8x1024xf32>
    %48 = tpu.matmul %46, %47, %cst_28 {dimension_numbers = #tpu.dot_dimension_numbers<[1], [0], [0], [1], [0, 0, 1, 1], [], []>} : vector<8x128xf32>, vector<128x1024xf32>, vector<8x1024xf32> -> vector<8x1024xf32>
    %49 = vector.extract_strided_slice %48 {offsets = [0, 512], sizes = [8, 512], strides = [1, 1]} : vector<8x1024xf32> to vector<8x512xf32>
    %50 = vector.broadcast %13 : vector<1x512xf32> to vector<8x512xf32>
    %51 = arith.addf %49, %50 : vector<8x512xf32>
    %c0_29 = arith.constant 0 : index
    %c0_30 = arith.constant 0 : index
    %52 = vector.load %arg5[%c0_29, %c0_30] : memref<128x512xf32, #tpu.memory_space<vmem>>, vector<128x512xf32>
    %cst_31 = arith.constant dense<0.000000e+00> : vector<8x512xf32>
    %53 = tpu.matmul %16, %52, %cst_31 {dimension_numbers = #tpu.dot_dimension_numbers<[1], [0], [0], [1], [0, 0, 1, 1], [], []>} : vector<8x128xf32>, vector<128x512xf32>, vector<8x512xf32> -> vector<8x512xf32>
    %54 = arith.addf %51, %53 : vector<8x512xf32>
    %55 = vector.extract_strided_slice %54 {offsets = [0, 0], sizes = [8, 128], strides = [1, 1]} : vector<8x512xf32> to vector<8x128xf32>
    %56 = arith.negf %55 : vector<8x128xf32>
    %57 = math.exp %56 : vector<8x128xf32>
    %cst_32 = arith.constant 1.000000e+00 : f32
    %58 = vector.broadcast %cst_32 : f32 to vector<8x128xf32>
    %59 = arith.addf %58, %57 : vector<8x128xf32>
    %60 = arith.divf %58, %59 : vector<8x128xf32>
    %61 = vector.extract_strided_slice %54 {offsets = [0, 128], sizes = [8, 128], strides = [1, 1]} : vector<8x512xf32> to vector<8x128xf32>
    %62 = arith.negf %61 : vector<8x128xf32>
    %63 = math.exp %62 : vector<8x128xf32>
    %cst_33 = arith.constant 1.000000e+00 : f32
    %64 = vector.broadcast %cst_33 : f32 to vector<8x128xf32>
    %65 = arith.addf %64, %63 : vector<8x128xf32>
    %66 = arith.divf %64, %65 : vector<8x128xf32>
    %67 = vector.extract_strided_slice %54 {offsets = [0, 256], sizes = [8, 128], strides = [1, 1]} : vector<8x512xf32> to vector<8x128xf32>
    %68 = math.tanh %67 : vector<8x128xf32>
    %69 = vector.extract_strided_slice %54 {offsets = [0, 384], sizes = [8, 128], strides = [1, 1]} : vector<8x512xf32> to vector<8x128xf32>
    %70 = arith.negf %69 : vector<8x128xf32>
    %71 = math.exp %70 : vector<8x128xf32>
    %cst_34 = arith.constant 1.000000e+00 : f32
    %72 = vector.broadcast %cst_34 : f32 to vector<8x128xf32>
    %73 = arith.addf %72, %71 : vector<8x128xf32>
    %74 = arith.divf %72, %73 : vector<8x128xf32>
    %75 = arith.mulf %66, %17 : vector<8x128xf32>
    %76 = arith.mulf %60, %68 : vector<8x128xf32>
    %77 = arith.addf %75, %76 : vector<8x128xf32>
    %78 = math.tanh %77 : vector<8x128xf32>
    %79 = arith.mulf %74, %78 : vector<8x128xf32>
    %80 = vector.extract_strided_slice %48 {offsets = [0, 0], sizes = [8, 512], strides = [1, 1]} : vector<8x1024xf32> to vector<8x512xf32>
    %c1_i32 = arith.constant 1 : i32
    %81 = arith.index_cast %c1_i32 : i32 to index
    %c0_35 = arith.constant 0 : index
    %c0_36 = arith.constant 0 : index
    %82 = vector.load %arg10[%81, %c0_35, %c0_36] : memref<4x8x512xf32, #tpu.memory_space<vmem>>, vector<1x8x512xf32>
    %83 = vector.shape_cast %82 : vector<1x8x512xf32> to vector<8x512xf32>
    %84 = arith.addf %83, %80 : vector<8x512xf32>
    %85 = vector.extract_strided_slice %84 {offsets = [0, 0], sizes = [8, 128], strides = [1, 1]} : vector<8x512xf32> to vector<8x128xf32>
    %86 = arith.negf %85 : vector<8x128xf32>
    %87 = math.exp %86 : vector<8x128xf32>
    %cst_37 = arith.constant 1.000000e+00 : f32
    %88 = vector.broadcast %cst_37 : f32 to vector<8x128xf32>
    %89 = arith.addf %88, %87 : vector<8x128xf32>
    %90 = arith.divf %88, %89 : vector<8x128xf32>
    %91 = vector.extract_strided_slice %84 {offsets = [0, 128], sizes = [8, 128], strides = [1, 1]} : vector<8x512xf32> to vector<8x128xf32>
    %92 = arith.negf %91 : vector<8x128xf32>
    %93 = math.exp %92 : vector<8x128xf32>
    %cst_38 = arith.constant 1.000000e+00 : f32
    %94 = vector.broadcast %cst_38 : f32 to vector<8x128xf32>
    %95 = arith.addf %94, %93 : vector<8x128xf32>
    %96 = arith.divf %94, %95 : vector<8x128xf32>
    %97 = vector.extract_strided_slice %84 {offsets = [0, 256], sizes = [8, 128], strides = [1, 1]} : vector<8x512xf32> to vector<8x128xf32>
    %98 = math.tanh %97 : vector<8x128xf32>
    %99 = vector.extract_strided_slice %84 {offsets = [0, 384], sizes = [8, 128], strides = [1, 1]} : vector<8x512xf32> to vector<8x128xf32>
    %100 = arith.negf %99 : vector<8x128xf32>
    %101 = math.exp %100 : vector<8x128xf32>
    %cst_39 = arith.constant 1.000000e+00 : f32
    %102 = vector.broadcast %cst_39 : f32 to vector<8x128xf32>
    %103 = arith.addf %102, %101 : vector<8x128xf32>
    %104 = arith.divf %102, %103 : vector<8x128xf32>
    %105 = arith.mulf %96, %44 : vector<8x128xf32>
    %106 = arith.mulf %90, %98 : vector<8x128xf32>
    %107 = arith.addf %105, %106 : vector<8x128xf32>
    %108 = math.tanh %107 : vector<8x128xf32>
    %109 = arith.mulf %104, %108 : vector<8x128xf32>
    %c0_40 = arith.constant 0 : index
    %c0_41 = arith.constant 0 : index
    %110 = vector.load %arg4[%c0_40, %c0_41] : memref<128x1024xf32, #tpu.memory_space<vmem>>, vector<128x1024xf32>
    %cst_42 = arith.constant dense<0.000000e+00> : vector<8x1024xf32>
    %111 = tpu.matmul %109, %110, %cst_42 {dimension_numbers = #tpu.dot_dimension_numbers<[1], [0], [0], [1], [0, 0, 1, 1], [], []>} : vector<8x128xf32>, vector<128x1024xf32>, vector<8x1024xf32> -> vector<8x1024xf32>
    %112 = vector.extract_strided_slice %111 {offsets = [0, 512], sizes = [8, 512], strides = [1, 1]} : vector<8x1024xf32> to vector<8x512xf32>
    %113 = vector.broadcast %13 : vector<1x512xf32> to vector<8x512xf32>
    %114 = arith.addf %112, %113 : vector<8x512xf32>
    %c0_43 = arith.constant 0 : index
    %c0_44 = arith.constant 0 : index
    %115 = vector.load %arg5[%c0_43, %c0_44] : memref<128x512xf32, #tpu.memory_space<vmem>>, vector<128x512xf32>
    %cst_45 = arith.constant dense<0.000000e+00> : vector<8x512xf32>
    %116 = tpu.matmul %79, %115, %cst_45 {dimension_numbers = #tpu.dot_dimension_numbers<[1], [0], [0], [1], [0, 0, 1, 1], [], []>} : vector<8x128xf32>, vector<128x512xf32>, vector<8x512xf32> -> vector<8x512xf32>
    %117 = arith.addf %114, %116 : vector<8x512xf32>
    %118 = vector.extract_strided_slice %117 {offsets = [0, 0], sizes = [8, 128], strides = [1, 1]} : vector<8x512xf32> to vector<8x128xf32>
    %119 = arith.negf %118 : vector<8x128xf32>
    %120 = math.exp %119 : vector<8x128xf32>
    %cst_46 = arith.constant 1.000000e+00 : f32
    %121 = vector.broadcast %cst_46 : f32 to vector<8x128xf32>
    %122 = arith.addf %121, %120 : vector<8x128xf32>
    %123 = arith.divf %121, %122 : vector<8x128xf32>
    %124 = vector.extract_strided_slice %117 {offsets = [0, 128], sizes = [8, 128], strides = [1, 1]} : vector<8x512xf32> to vector<8x128xf32>
    %125 = arith.negf %124 : vector<8x128xf32>
    %126 = math.exp %125 : vector<8x128xf32>
    %cst_47 = arith.constant 1.000000e+00 : f32
    %127 = vector.broadcast %cst_47 : f32 to vector<8x128xf32>
    %128 = arith.addf %127, %126 : vector<8x128xf32>
    %129 = arith.divf %127, %128 : vector<8x128xf32>
    %130 = vector.extract_strided_slice %117 {offsets = [0, 256], sizes = [8, 128], strides = [1, 1]} : vector<8x512xf32> to vector<8x128xf32>
    %131 = math.tanh %130 : vector<8x128xf32>
    %132 = vector.extract_strided_slice %117 {offsets = [0, 384], sizes = [8, 128], strides = [1, 1]} : vector<8x512xf32> to vector<8x128xf32>
    %133 = arith.negf %132 : vector<8x128xf32>
    %134 = math.exp %133 : vector<8x128xf32>
    %cst_48 = arith.constant 1.000000e+00 : f32
    %135 = vector.broadcast %cst_48 : f32 to vector<8x128xf32>
    %136 = arith.addf %135, %134 : vector<8x128xf32>
    %137 = arith.divf %135, %136 : vector<8x128xf32>
    %138 = arith.mulf %129, %77 : vector<8x128xf32>
    %139 = arith.mulf %123, %131 : vector<8x128xf32>
    %140 = arith.addf %138, %139 : vector<8x128xf32>
    %141 = math.tanh %140 : vector<8x128xf32>
    %142 = arith.mulf %137, %141 : vector<8x128xf32>
    %143 = vector.extract_strided_slice %111 {offsets = [0, 0], sizes = [8, 512], strides = [1, 1]} : vector<8x1024xf32> to vector<8x512xf32>
    %c2_i32 = arith.constant 2 : i32
    %144 = arith.index_cast %c2_i32 : i32 to index
    %c0_49 = arith.constant 0 : index
    %c0_50 = arith.constant 0 : index
    %145 = vector.load %arg10[%144, %c0_49, %c0_50] : memref<4x8x512xf32, #tpu.memory_space<vmem>>, vector<1x8x512xf32>
    %146 = vector.shape_cast %145 : vector<1x8x512xf32> to vector<8x512xf32>
    %147 = arith.addf %146, %143 : vector<8x512xf32>
    %148 = vector.extract_strided_slice %147 {offsets = [0, 0], sizes = [8, 128], strides = [1, 1]} : vector<8x512xf32> to vector<8x128xf32>
    %149 = arith.negf %148 : vector<8x128xf32>
    %150 = math.exp %149 : vector<8x128xf32>
    %cst_51 = arith.constant 1.000000e+00 : f32
    %151 = vector.broadcast %cst_51 : f32 to vector<8x128xf32>
    %152 = arith.addf %151, %150 : vector<8x128xf32>
    %153 = arith.divf %151, %152 : vector<8x128xf32>
    %154 = vector.extract_strided_slice %147 {offsets = [0, 128], sizes = [8, 128], strides = [1, 1]} : vector<8x512xf32> to vector<8x128xf32>
    %155 = arith.negf %154 : vector<8x128xf32>
    %156 = math.exp %155 : vector<8x128xf32>
    %cst_52 = arith.constant 1.000000e+00 : f32
    %157 = vector.broadcast %cst_52 : f32 to vector<8x128xf32>
    %158 = arith.addf %157, %156 : vector<8x128xf32>
    %159 = arith.divf %157, %158 : vector<8x128xf32>
    %160 = vector.extract_strided_slice %147 {offsets = [0, 256], sizes = [8, 128], strides = [1, 1]} : vector<8x512xf32> to vector<8x128xf32>
    %161 = math.tanh %160 : vector<8x128xf32>
    %162 = vector.extract_strided_slice %147 {offsets = [0, 384], sizes = [8, 128], strides = [1, 1]} : vector<8x512xf32> to vector<8x128xf32>
    %163 = arith.negf %162 : vector<8x128xf32>
    %164 = math.exp %163 : vector<8x128xf32>
    %cst_53 = arith.constant 1.000000e+00 : f32
    %165 = vector.broadcast %cst_53 : f32 to vector<8x128xf32>
    %166 = arith.addf %165, %164 : vector<8x128xf32>
    %167 = arith.divf %165, %166 : vector<8x128xf32>
    %168 = arith.mulf %159, %107 : vector<8x128xf32>
    %169 = arith.mulf %153, %161 : vector<8x128xf32>
    %170 = arith.addf %168, %169 : vector<8x128xf32>
    %171 = math.tanh %170 : vector<8x128xf32>
    %172 = arith.mulf %167, %171 : vector<8x128xf32>
    %c0_54 = arith.constant 0 : index
    %c0_55 = arith.constant 0 : index
    %173 = vector.load %arg4[%c0_54, %c0_55] : memref<128x1024xf32, #tpu.memory_space<vmem>>, vector<128x1024xf32>
    %cst_56 = arith.constant dense<0.000000e+00> : vector<8x1024xf32>
    %174 = tpu.matmul %172, %173, %cst_56 {dimension_numbers = #tpu.dot_dimension_numbers<[1], [0], [0], [1], [0, 0, 1, 1], [], []>} : vector<8x128xf32>, vector<128x1024xf32>, vector<8x1024xf32> -> vector<8x1024xf32>
    %175 = vector.extract_strided_slice %174 {offsets = [0, 512], sizes = [8, 512], strides = [1, 1]} : vector<8x1024xf32> to vector<8x512xf32>
    %176 = vector.broadcast %13 : vector<1x512xf32> to vector<8x512xf32>
    %177 = arith.addf %175, %176 : vector<8x512xf32>
    %c0_57 = arith.constant 0 : index
    %c0_58 = arith.constant 0 : index
    %178 = vector.load %arg5[%c0_57, %c0_58] : memref<128x512xf32, #tpu.memory_space<vmem>>, vector<128x512xf32>
    %cst_59 = arith.constant dense<0.000000e+00> : vector<8x512xf32>
    %179 = tpu.matmul %142, %178, %cst_59 {dimension_numbers = #tpu.dot_dimension_numbers<[1], [0], [0], [1], [0, 0, 1, 1], [], []>} : vector<8x128xf32>, vector<128x512xf32>, vector<8x512xf32> -> vector<8x512xf32>
    %180 = arith.addf %177, %179 : vector<8x512xf32>
    %181 = vector.extract_strided_slice %180 {offsets = [0, 0], sizes = [8, 128], strides = [1, 1]} : vector<8x512xf32> to vector<8x128xf32>
    %182 = arith.negf %181 : vector<8x128xf32>
    %183 = math.exp %182 : vector<8x128xf32>
    %cst_60 = arith.constant 1.000000e+00 : f32
    %184 = vector.broadcast %cst_60 : f32 to vector<8x128xf32>
    %185 = arith.addf %184, %183 : vector<8x128xf32>
    %186 = arith.divf %184, %185 : vector<8x128xf32>
    %187 = vector.extract_strided_slice %180 {offsets = [0, 128], sizes = [8, 128], strides = [1, 1]} : vector<8x512xf32> to vector<8x128xf32>
    %188 = arith.negf %187 : vector<8x128xf32>
    %189 = math.exp %188 : vector<8x128xf32>
    %cst_61 = arith.constant 1.000000e+00 : f32
    %190 = vector.broadcast %cst_61 : f32 to vector<8x128xf32>
    %191 = arith.addf %190, %189 : vector<8x128xf32>
    %192 = arith.divf %190, %191 : vector<8x128xf32>
    %193 = vector.extract_strided_slice %180 {offsets = [0, 256], sizes = [8, 128], strides = [1, 1]} : vector<8x512xf32> to vector<8x128xf32>
    %194 = math.tanh %193 : vector<8x128xf32>
    %195 = vector.extract_strided_slice %180 {offsets = [0, 384], sizes = [8, 128], strides = [1, 1]} : vector<8x512xf32> to vector<8x128xf32>
    %196 = arith.negf %195 : vector<8x128xf32>
    %197 = math.exp %196 : vector<8x128xf32>
    %cst_62 = arith.constant 1.000000e+00 : f32
    %198 = vector.broadcast %cst_62 : f32 to vector<8x128xf32>
    %199 = arith.addf %198, %197 : vector<8x128xf32>
    %200 = arith.divf %198, %199 : vector<8x128xf32>
    %201 = arith.mulf %192, %140 : vector<8x128xf32>
    %202 = arith.mulf %186, %194 : vector<8x128xf32>
    %203 = arith.addf %201, %202 : vector<8x128xf32>
    %204 = math.tanh %203 : vector<8x128xf32>
    %205 = arith.mulf %200, %204 : vector<8x128xf32>
    %206 = vector.extract_strided_slice %174 {offsets = [0, 0], sizes = [8, 512], strides = [1, 1]} : vector<8x1024xf32> to vector<8x512xf32>
    %c3_i32 = arith.constant 3 : i32
    %207 = arith.index_cast %c3_i32 : i32 to index
    %c0_63 = arith.constant 0 : index
    %c0_64 = arith.constant 0 : index
    %208 = vector.load %arg10[%207, %c0_63, %c0_64] : memref<4x8x512xf32, #tpu.memory_space<vmem>>, vector<1x8x512xf32>
    %209 = vector.shape_cast %208 : vector<1x8x512xf32> to vector<8x512xf32>
    %210 = arith.addf %209, %206 : vector<8x512xf32>
    %211 = vector.extract_strided_slice %210 {offsets = [0, 0], sizes = [8, 128], strides = [1, 1]} : vector<8x512xf32> to vector<8x128xf32>
    %212 = arith.negf %211 : vector<8x128xf32>
    %213 = math.exp %212 : vector<8x128xf32>
    %cst_65 = arith.constant 1.000000e+00 : f32
    %214 = vector.broadcast %cst_65 : f32 to vector<8x128xf32>
    %215 = arith.addf %214, %213 : vector<8x128xf32>
    %216 = arith.divf %214, %215 : vector<8x128xf32>
    %217 = vector.extract_strided_slice %210 {offsets = [0, 128], sizes = [8, 128], strides = [1, 1]} : vector<8x512xf32> to vector<8x128xf32>
    %218 = arith.negf %217 : vector<8x128xf32>
    %219 = math.exp %218 : vector<8x128xf32>
    %cst_66 = arith.constant 1.000000e+00 : f32
    %220 = vector.broadcast %cst_66 : f32 to vector<8x128xf32>
    %221 = arith.addf %220, %219 : vector<8x128xf32>
    %222 = arith.divf %220, %221 : vector<8x128xf32>
    %223 = vector.extract_strided_slice %210 {offsets = [0, 256], sizes = [8, 128], strides = [1, 1]} : vector<8x512xf32> to vector<8x128xf32>
    %224 = math.tanh %223 : vector<8x128xf32>
    %225 = vector.extract_strided_slice %210 {offsets = [0, 384], sizes = [8, 128], strides = [1, 1]} : vector<8x512xf32> to vector<8x128xf32>
    %226 = arith.negf %225 : vector<8x128xf32>
    %227 = math.exp %226 : vector<8x128xf32>
    %cst_67 = arith.constant 1.000000e+00 : f32
    %228 = vector.broadcast %cst_67 : f32 to vector<8x128xf32>
    %229 = arith.addf %228, %227 : vector<8x128xf32>
    %230 = arith.divf %228, %229 : vector<8x128xf32>
    %231 = arith.mulf %222, %170 : vector<8x128xf32>
    %232 = arith.mulf %216, %224 : vector<8x128xf32>
    %233 = arith.addf %231, %232 : vector<8x128xf32>
    %234 = math.tanh %233 : vector<8x128xf32>
    %235 = arith.mulf %230, %234 : vector<8x128xf32>
    %c0_68 = arith.constant 0 : index
    %c0_69 = arith.constant 0 : index
    %236 = vector.load %arg4[%c0_68, %c0_69] : memref<128x1024xf32, #tpu.memory_space<vmem>>, vector<128x1024xf32>
    %cst_70 = arith.constant dense<0.000000e+00> : vector<8x1024xf32>
    %237 = tpu.matmul %235, %236, %cst_70 {dimension_numbers = #tpu.dot_dimension_numbers<[1], [0], [0], [1], [0, 0, 1, 1], [], []>} : vector<8x128xf32>, vector<128x1024xf32>, vector<8x1024xf32> -> vector<8x1024xf32>
    %238 = vector.extract_strided_slice %237 {offsets = [0, 512], sizes = [8, 512], strides = [1, 1]} : vector<8x1024xf32> to vector<8x512xf32>
    %239 = vector.broadcast %13 : vector<1x512xf32> to vector<8x512xf32>
    %240 = arith.addf %238, %239 : vector<8x512xf32>
    %c0_71 = arith.constant 0 : index
    %c0_72 = arith.constant 0 : index
    %241 = vector.load %arg5[%c0_71, %c0_72] : memref<128x512xf32, #tpu.memory_space<vmem>>, vector<128x512xf32>
    %cst_73 = arith.constant dense<0.000000e+00> : vector<8x512xf32>
    %242 = tpu.matmul %205, %241, %cst_73 {dimension_numbers = #tpu.dot_dimension_numbers<[1], [0], [0], [1], [0, 0, 1, 1], [], []>} : vector<8x128xf32>, vector<128x512xf32>, vector<8x512xf32> -> vector<8x512xf32>
    %243 = arith.addf %240, %242 : vector<8x512xf32>
    %244 = vector.extract_strided_slice %243 {offsets = [0, 0], sizes = [8, 128], strides = [1, 1]} : vector<8x512xf32> to vector<8x128xf32>
    %245 = arith.negf %244 : vector<8x128xf32>
    %246 = math.exp %245 : vector<8x128xf32>
    %cst_74 = arith.constant 1.000000e+00 : f32
    %247 = vector.broadcast %cst_74 : f32 to vector<8x128xf32>
    %248 = arith.addf %247, %246 : vector<8x128xf32>
    %249 = arith.divf %247, %248 : vector<8x128xf32>
    %250 = vector.extract_strided_slice %243 {offsets = [0, 128], sizes = [8, 128], strides = [1, 1]} : vector<8x512xf32> to vector<8x128xf32>
    %251 = arith.negf %250 : vector<8x128xf32>
    %252 = math.exp %251 : vector<8x128xf32>
    %cst_75 = arith.constant 1.000000e+00 : f32
    %253 = vector.broadcast %cst_75 : f32 to vector<8x128xf32>
    %254 = arith.addf %253, %252 : vector<8x128xf32>
    %255 = arith.divf %253, %254 : vector<8x128xf32>
    %256 = vector.extract_strided_slice %243 {offsets = [0, 256], sizes = [8, 128], strides = [1, 1]} : vector<8x512xf32> to vector<8x128xf32>
    %257 = math.tanh %256 : vector<8x128xf32>
    %258 = vector.extract_strided_slice %243 {offsets = [0, 384], sizes = [8, 128], strides = [1, 1]} : vector<8x512xf32> to vector<8x128xf32>
    %259 = arith.negf %258 : vector<8x128xf32>
    %260 = math.exp %259 : vector<8x128xf32>
    %cst_76 = arith.constant 1.000000e+00 : f32
    %261 = vector.broadcast %cst_76 : f32 to vector<8x128xf32>
    %262 = arith.addf %261, %260 : vector<8x128xf32>
    %263 = arith.divf %261, %262 : vector<8x128xf32>
    %264 = arith.mulf %255, %203 : vector<8x128xf32>
    %265 = arith.mulf %249, %257 : vector<8x128xf32>
    %266 = arith.addf %264, %265 : vector<8x128xf32>
    %267 = math.tanh %266 : vector<8x128xf32>
    %268 = arith.mulf %263, %267 : vector<8x128xf32>
    %269 = vector.extract_strided_slice %237 {offsets = [0, 0], sizes = [8, 512], strides = [1, 1]} : vector<8x1024xf32> to vector<8x512xf32>
    %c4_i32 = arith.constant 4 : i32
    %c0_77 = arith.constant 0 : index
    %c0_78 = arith.constant 0 : index
    %270 = vector.load %arg11[%c0_77, %c0_78] : memref<8x512xf32, #tpu.memory_space<vmem>>, vector<8x512xf32>
    tpu.vector_store %arg11[%c0_77, %c0_78], %269 {strides = array<i32>} : memref<8x512xf32, #tpu.memory_space<vmem>>, vector<8x512xf32>,
    %c0_79 = arith.constant 0 : index
    %c0_80 = arith.constant 0 : index
    %271 = vector.load %arg12[%c0_79, %c0_80] : memref<8x128xf32, #tpu.memory_space<vmem>>, vector<8x128xf32>
    tpu.vector_store %arg12[%c0_79, %c0_80], %233 {strides = array<i32>} : memref<8x128xf32, #tpu.memory_space<vmem>>, vector<8x128xf32>,
    %c0_81 = arith.constant 0 : index
    %c0_82 = arith.constant 0 : index
    %272 = vector.load %arg13[%c0_81, %c0_82] : memref<8x128xf32, #tpu.memory_space<vmem>>, vector<8x128xf32>
    tpu.vector_store %arg13[%c0_81, %c0_82], %268 {strides = array<i32>} : memref<8x128xf32, #tpu.memory_space<vmem>>, vector<8x128xf32>,
    %c0_83 = arith.constant 0 : index
    %c0_84 = arith.constant 0 : index
    %273 = vector.load %arg14[%c0_83, %c0_84] : memref<8x128xf32, #tpu.memory_space<vmem>>, vector<8x128xf32>
    tpu.vector_store %arg14[%c0_83, %c0_84], %266 {strides = array<i32>} : memref<8x128xf32, #tpu.memory_space<vmem>>, vector<8x128xf32>,
    %c1_i32_85 = arith.constant 1 : i32
    %274 = arith.cmpi eq, %arg0, %c1_i32_85 : i32
    %275 = arith.extui %274 : i1 to i32
    %c0_i32_86 = arith.constant 0 : i32
    %276 = arith.cmpi ne, %275, %c0_i32_86 : i32
    scf.if %276 {
      %c0_87 = arith.constant 0 : index
      %c0_88 = arith.constant 0 : index
      %277 = vector.load %arg7[%c0_87, %c0_88] : memref<128x128xf32, #tpu.memory_space<vmem>>, vector<128x128xf32>
      %cst_89 = arith.constant dense<0.000000e+00> : vector<8x128xf32>
      %278 = tpu.matmul %268, %277, %cst_89 {dimension_numbers = #tpu.dot_dimension_numbers<[1], [0], [0], [1], [0, 0, 1, 1], [], []>} : vector<8x128xf32>, vector<128x128xf32>, vector<8x128xf32> -> vector<8x128xf32>
      %c0_90 = arith.constant 0 : index
      %c0_91 = arith.constant 0 : index
      %279 = vector.load %arg8[%c0_90, %c0_91] : memref<1x128xf32, #tpu.memory_space<vmem>>, vector<1x128xf32>
      %280 = vector.broadcast %279 : vector<1x128xf32> to vector<8x128xf32>
      %281 = arith.addf %278, %280 : vector<8x128xf32>
      %c0_92 = arith.constant 0 : index
      %c0_93 = arith.constant 0 : index
      %282 = vector.load %arg9[%c0_92, %c0_93] : memref<8x128xf32, #tpu.memory_space<vmem>>, vector<8x128xf32>
      tpu.vector_store %arg9[%c0_92, %c0_93], %281 {strides = array<i32>} : memref<8x128xf32, #tpu.memory_space<vmem>>, vector<8x128xf32>,
    } else {
    }
    return
  }
  func.func @transform_0(%arg0: i32) -> (i32, i32, i32) {
    %c0_i32 = arith.constant 0 : i32
    %c0_i32_0 = arith.constant 0 : i32
    %c0_i32_1 = arith.constant 0 : i32
    return %arg0, %c0_i32, %c0_i32_0 : i32, i32, i32
  }
  func.func @transform_1(%arg0: i32) -> (i32, i32) {
    %c0_i32 = arith.constant 0 : i32
    %c0_i32_0 = arith.constant 0 : i32
    %c0_i32_1 = arith.constant 0 : i32
    return %c0_i32, %c0_i32_0 : i32, i32
  }
  func.func @transform_2(%arg0: i32) -> (i32, i32) {
    %c0_i32 = arith.constant 0 : i32
    %c0_i32_0 = arith.constant 0 : i32
    %c0_i32_1 = arith.constant 0 : i32
    return %c0_i32, %c0_i32_0 : i32, i32
  }
  func.func @transform_3(%arg0: i32) -> (i32, i32) {
    %c0_i32 = arith.constant 0 : i32
    %c0_i32_0 = arith.constant 0 : i32
    %c0_i32_1 = arith.constant 0 : i32
    return %c0_i32, %c0_i32_0 : i32, i32
  }
  func.func @transform_4(%arg0: i32) -> (i32, i32) {
    %c0_i32 = arith.constant 0 : i32
    %c0_i32_0 = arith.constant 0 : i32
    %c0_i32_1 = arith.constant 0 : i32
    return %c0_i32, %c0_i32_0 : i32, i32
  }
  func.func @transform_5(%arg0: i32) -> (i32, i32) {
    %c0_i32 = arith.constant 0 : i32
    %c0_i32_0 = arith.constant 0 : i32
    %c0_i32_1 = arith.constant 0 : i32
    return %c0_i32, %c0_i32_0 : i32, i32
  }
  func.func @transform_6(%arg0: i32) -> (i32, i32) {
    %c0_i32 = arith.constant 0 : i32
    %c0_i32_0 = arith.constant 0 : i32
    %c0_i32_1 = arith.constant 0 : i32
    return %c0_i32, %c0_i32_0 : i32, i32
  }
  func.func @transform_7(%arg0: i32) -> (i32, i32) {
    %c0_i32 = arith.constant 0 : i32
    %c0_i32_0 = arith.constant 0 : i32
    %c0_i32_1 = arith.constant 0 : i32
    return %c0_i32, %c0_i32_0 : i32, i32
  }
  func.func @transform_8(%arg0: i32) -> (i32, i32) {
    %c0_i32 = arith.constant 0 : i32
    %c0_i32_0 = arith.constant 0 : i32
    %c0_i32_1 = arith.constant 0 : i32
    return %c0_i32, %c0_i32_0 : i32, i32
  }
}

</mosaic_0001>

<bundles_post_ra>
// kernel: tpu_custom_call.1
= control target key start
LH: loop header
LB: loop body
LE: loop exit
PB: predicated region body
PF: predicated region fallthrough
CT: control target
= control target key end

     0   :  { %13 = vsyncpa [#allocation8], 0  ;;  %s5259_s0 = inlined_call_operand.hbm [shape: f32[8,8,8], index: 0, kind: input, shape index: {}]   ;;  %s5260_s1 = inlined_call_operand.hbm [shape: f32[8,512], index: 1, kind: input, shape index: {}]   ;;  %s5261_s2 = inlined_call_operand.hbm [shape: f32[1,512], index: 2, kind: input, shape index: {}]   ;;  %s5262_s3 = inlined_call_operand.hbm [shape: f32[128,1024], index: 3, kind: input, shape index: {}]   ;;  %s5263_s4 = inlined_call_operand.hbm [shape: f32[128,512], index: 4, kind: input, shape index: {}]   ;;  %s5264_s5 = inlined_call_operand.vmem [shape: f32[1,512], index: 5, kind: input, shape index: {}]   ;;  %s5265_s6 = inlined_call_operand.hbm [shape: f32[128,128], index: 6, kind: input, shape index: {}]   ;;  %s5266_s7 = inlined_call_operand.vmem [shape: f32[1,128], index: 7, kind: input, shape index: {}]   ;;  %s5267_s8 = inlined_call_operand.hbm [shape: f32[8,128], index: 8, kind: output, shape index: {}]  }
   0x1   :  { %15 = vsyncpa [#allocation8 + $0x1], 0 }
   0x2   :  { %16 = vsyncpa [#allocation11], 0 }
   0x3   :  { %17 = vsyncpa [#allocation14], 0 }
   0x4   :  { %18 = vsyncpa [#allocation17], 0 }
   0x5   :  { %19 = vsyncpa [#allocation9], 0  ;;  %s3291_s27 = smov 0   ;;  %s3293_s28 = smov 0  }
   0x6   :  { %s3295_s29 = smov 0   ;;  %s3297_s30 = smov 0  }
   0x7 LB: > { %s236_s11 = sshll.u32 %s5260_s1, 4  ;;  %s3315_s12 = sadd.s32 4294967295, %s3231_s30   ;;  %s3231_s30 = sphi %s3297_s30, %s6123_s30   ;;  %s3227_s29 = sphi %s3295_s29, %s6122_s29   ;;  %s3223_s28 = sphi %s3293_s28, %s6121_s28   ;;  %s3219_s27 = sphi %s3291_s27, %s6120_s27   ;;  %s237_s11 = int_to_ptr.hbm [resolvable:$true] %s236_s11 }
   0x8   : > { %p2484_p0 = scmp.ge.s32.totalorder %s3231_s30, 1  ;;  %p46_p1 = scmp.eq.s32.totalorder %s3315_s12, 0 }
   0x9   : > { %p224_p2 = scmp.lt.s32.totalorder %s3231_s30, 3  ;;  %p2485_p3 = scmp.ne.s32.totalorder %s3315_s12, 0 }
   0xa   : > { %s3233_s14 = smov [#allocation10]   ;;  %s259_s18 = sshll.u32 %s5262_s3, 4  ;;  %s260_s18 = int_to_ptr.hbm [resolvable:$true] %s259_s18 }
   0xb   : > { %p3321_p4 = pnand %p2484_p0, %p224_p2  ;;  %s238_s15 = sshll.u32 %s3233_s14, 4  ;;  %s239_s15 = int_to_ptr.vmem [resolvable:$true] %s238_s15 }
   0xc   : > { %s3234_s20 = smov [#allocation13]   ;;  %s3235_s22 = smov 1024  }
   0xd   : > { %p2574_p5 = pneg %p3321_p4  ;;  %s261_s21 = sshll.u32 %s3234_s20, 4  ;;  %s262_s21 = int_to_ptr.vmem [resolvable:$true] %s261_s21 }
   0xe   : > { %s3236_s23 = smov 64   ;;  %s248_s26 = sshll.u32 %s5261_s2, 4  ;;  %s249_s26 = int_to_ptr.hbm [resolvable:$true] %s248_s26 }
   0xf   : > { %p3332_p6 = pnand %p2574_p5, %p46_p1  ;;  %s3237_s9 = smov [#allocation12]  }
  0x10   : > { %s250_s10 = sshll.u32 %s3237_s9, 4  ;;  %s273_s17 = sshll.u32 %s5263_s4, 4  ;;  %s251_s10 = int_to_ptr.vmem [resolvable:$true] %s250_s10  ;;  %s274_s17 = int_to_ptr.hbm [resolvable:$true] %s273_s17 }
  0x11   : > { %2577 = dma.hbm_to_vmem [thread:$0]  (!%p3332_p6), %s237_s11, 512, %s239_s15, [#allocation11]  }
  0x12   : > { %2583 = dma.hbm_to_vmem [thread:$0]  (!%p3332_p6), %s260_s18, 16384, %s262_s21, [#allocation14], %s3235_s22, %s3235_s22, %s3236_s23  }
  0x13   : > { %2580 = dma.hbm_to_vmem [thread:$0]  (!%p3332_p6), %s249_s26, 64, %s251_s10, [#allocation11]  }
  0x14   : > { %s3238_s11 = smov [#allocation15]   ;;  %s3239_s18 = smov 512  }
  0x15   : > { %s275_s15 = sshll.u32 %s3238_s11, 4  ;;  %s3240_s20 = smov 32   ;;  %s276_s15 = int_to_ptr.vmem [resolvable:$true] %s275_s15 }
  0x16   : > { %2586 = dma.hbm_to_vmem [thread:$0]  (!%p3332_p6), %s274_s17, 8192, %s276_s15, [#allocation14], %s3239_s18, %s3239_s18, %s3240_s20  }
  0x17   : > { %s290_s23 = sshll.u32 %s5265_s6, 4  ;;  %s3241_s24 = smov [#allocation16]   ;;  %s291_s23 = int_to_ptr.hbm [resolvable:$true] %s290_s23 }
  0x18   : > { %s292_s25 = sshll.u32 %s3241_s24, 4  ;;  %s5268_s26 = smov 128   ;;  %s293_s25 = int_to_ptr.vmem [resolvable:$true] %s292_s25 }
  0x19   : > { %s3243_s9 = smov 8   ;;  %s3359_s10 = sadd.s32 1, %s3231_s30  }
  0x1a   : > { %2589 = dma.hbm_to_vmem [thread:$0]  (!%p3332_p6), %s291_s23, 2048, %s293_s25, [#allocation17], %s5268_s26, %s5268_s26, %s3243_s9  }
  0x1b   : > { %s29_s14 = ssub.s32 %s3231_s30, %s3359_s10  ;;  %s32_s16 = sadd.s32 1, %s3227_s29 }
  0x1c   : > { %p30_p7 = scmp.eq.s32.totalorder %s29_s14, 0  ;;  %p39_p8 = scmp.ne.s32.totalorder %s3227_s29, %s3223_s28 }
  0x1d   : > { %p40_p9 = scmp.eq.s32.totalorder %s3231_s30, 0  ;;  %p45_p10 = scmp.ne.s32.totalorder %s3223_s28, %s3219_s27 }
  0x1e   : > { %s3370_s17 = scalar_select %p30_p7, %s3227_s29, %s32_s16  }
  0x1f   : > { %p41_p11 = por %p40_p9, %p39_p8  ;;  %p3374_p12 = por %p46_p1, %p45_p10 }
  0x20   : > { %p2599_p13 = scmp.lt.s32.totalorder %s3231_s30, 2  ;;  %s309_s19 = sand.u32 1, %s3227_s29  }
  0x21   : > { %s2491_s15 = sshll.u32 %s309_s19, 5  ;;  %s2547_s18 = sshll.u32 %s3231_s30, 5 }
  0x22   : > { %s318_s22 = scalar_lea.hbm %s5259_s0, %s2547_s18  ;;  %s313_s23 = scalar_lea.vmem [#allocation7], %s2491_s15 }
  0x23   : > { %s321_s24 = sshll.u32 %s313_s23, 4  ;;  %s319_s25 = sshll.u32 %s318_s22, 4  ;;  %s322_s24 = int_to_ptr.vmem [resolvable:$true] %s321_s24  ;;  %s320_s25 = int_to_ptr.hbm [resolvable:$true] %s319_s25 }
  0x24   : > { %p3384_p0 = pnand %p2599_p13, %p41_p11  ;;  %s310_s14 = scalar_lea.sflag [#allocation8], %s309_s19 }
  0x25   : > { %s3123_s16 = sshra.s32 %s320_s25, 4  ;;  %s3130_s18 = scalar_lea.hbm %s5259_s0, 64  ;;  %s3124_s16 = int_to_ptr.hbm [resolvable:$true] %s3123_s16 }
  0x26   : > { %s3125_s26 = scalar_lea.hbm %s3124_s16, 32  ;;  %p3127_p5 = pneg %p3384_p0 }
  0x27   : > { %p3126_p2 = scmp.ne.s32.totalorder %s3124_s16, %s3125_s26  ;;  %p3131_p8 = scmp.lt.s32.totalorder %s3124_s16, %s5259_s0 }
  0x28   : > { %p3132_p9 = scmp.lt.s32.totalorder %s3130_s18, %s3125_s26 }
  0x29   : > { %p3128_p6 = pnand %p3127_p5, %p3126_p2 }
  0x2a   : > { %p3133_p10 = por %p3132_p9, %p3131_p8 }
  0x2b   : > { %p3129_p7 = pneg %p3128_p6 }
  0x2d   : > { %p3134_p11 = pnand %p3133_p10, %p3129_p7 }
  0x2f   : > { %3137 = shalt.err (!%p3134_p11)
}
  0x30   : > { %s5555_s19 = smov 128   ;;  %333 = sbr.rel (%p3321_p4) target bundleno = 1144 (0x478), region = 52 }
  0x31   : > { %2593 = dma.hbm_to_vmem [thread:$0]  (!%p3384_p0), %s320_s25, 512, %s322_s24, %s310_s14, %s5555_s19, %s5555_s19, %s3243_s9  }
  0x35   : > { %s335_s22 = sand.u32 1, %s3223_s28  }
  0x36   : > { %s2495_s23 = sshll.u32 %s335_s22, 5  ;;  %s336_s30 = scalar_lea.sflag [#allocation8], %s335_s22 }
  0x37   : > { %s3404_s15 = scalar_lea.vmem [#allocation7], %s2495_s23 }
  0x38   : > { %3198 = dma.done.wait (%p3374_p12), %s336_s30, 512  }
  0x39   : > { %3200 = vsyncadd (%p3374_p12), %s336_s30, 4294966784 }
  0x3a   : > { %3202 = dma.done.wait (%p46_p1), [#allocation11], 576  }
  0x3b   : > { %3204 = vsyncadd (%p46_p1), [#allocation11], 4294966720 }
  0x3c   : > { %3206 = dma.done.wait (%p46_p1), [#allocation14], 24576  }
  0x3d   : > { %3208 = vsyncadd (%p46_p1), [#allocation14], 4294942720 }
  0x3e   : > { %3210 = dma.done.wait (%p46_p1), [#allocation17], 2048  }
  0x3f   : > { %3212 = vsyncadd (%p46_p1), [#allocation17], 4294965248  ;;  %397 = sbr.rel (%p2485_p3) target bundleno = 76 (0x4c), region = 80 }
  0x44   : > { %v3244_v0 = vmov 0.0  }
  0x45   : > { %398 = vst [vmem:[#allocation3 + $0x10] sm:$0xff] %v3244_v0 }
  0x46   : > { %399 = vst [vmem:[#allocation3] sm:$0xff] %v3244_v0 }
  0x47   : > { %400 = vst [vmem:[#allocation3 + $0x18] sm:$0xff] %v3244_v0 }
  0x48   : > { %401 = vst [vmem:[#allocation3 + $0x8] sm:$0xff] %v3244_v0 }
  0x49   : > { %402 = vst [vmem:[#allocation4] sm:$0xff] %v3244_v0 }
  0x4a   : > { %403 = vst [vmem:[#allocation5] sm:$0xff] %v3244_v0 }
  0x4b   : > { %404 = vst [vmem:[#allocation6] sm:$0xff] %v3244_v0 }
  0x4c PF: > { %v409_v1 = vld [vmem:[#allocation10] sm:$0xff]  ;;  %v410_v2 = vld [vmem:[#allocation10 + $0x8] sm:$0xff]  ;;  %v412_v3 = vld [vmem:[#allocation10 + $0x18] sm:$0xff]  ;;  %vm413_vm0 = vcmask 64512   ;;  %p2542_p1 = scmp.ne.s32.totalorder %s3315_s12, 1 }
  0x4d   : > { %441 = vmatpush.msra.mxu0 %v409_v1  ;;  %470 = vmatpush.msra.mxu1 %v410_v2  ;;  %v405_v4 = vld [vmem:[%s3404_s15] sm:$0xff]  ;;  %v411_v5 = vld [vmem:[#allocation10 + $0x10] sm:$0xff] }
  0x4e   : > { %v3425_v6 = vld [vmem:[#allocation13 + $0x3c0] sm:$0xff]  ;;  %528 = vmatpush.msra.mxu3 %v412_v3  ;;  %2502 = vmatmul.msk.f32.vlgmr.msra.gmra.mxu0 %vm413_vm0, %v405_v4  ;;  %v3428_v7 = vld [vmem:[#allocation13 + $0x3c8] sm:$0xff]  ;;  %v3432_v8 = vld [vmem:[#allocation13 + $0x3d0] sm:$0xff] }
  0x4f   : > { %2506 = vmatmul.msk.f32.vlgmr.msra.gmra.mxu1 %vm413_vm0, %v405_v4  ;;  %2514 = vmatmul.msk.f32.vlgmr.msra.gmra.mxu3 %vm413_vm0, %v405_v4  ;;  %v3434_v9 = vld [vmem:[#allocation13 + $0x3d8] sm:$0xff]  ;;  %v3437_v10 = vld [vmem:[#allocation13 + $0x380] sm:$0xff]  ;;  %v3439_v11 = vld [vmem:[#allocation13 + $0x388] sm:$0xff] }
  0x50   : > { %499 = vmatpush.msra.mxu2 %v411_v5  ;;  %791 = vmatpush.msrb.mxu0 %v3425_v6  ;;  %v3443_v12 = vld [vmem:[#allocation13 + $0x390] sm:$0xff]  ;;  %v3445_v13 = vld [vmem:[#allocation13 + $0x398] sm:$0xff]  ;;  %v3449_v14 = vld [vmem:[#allocation13 + $0x340] sm:$0xff] }
  0x51   : > { %2510 = vmatmul.msk.f32.vlgmr.msra.gmra.mxu2 %vm413_vm0, %v405_v4  ;;  %811 = vmatpush.msrb.mxu1 %v3428_v7  ;;  %v3451_v15 = vld [vmem:[#allocation13 + $0x348] sm:$0xff]  ;;  %v3455_v16 = vld [vmem:[#allocation13 + $0x350] sm:$0xff]  ;;  %v3457_v17 = vld [vmem:[#allocation13 + $0x358] sm:$0xff] }
  0x52   : > { %831 = vmatpush.msrb.mxu2 %v3432_v8  ;;  %851 = vmatpush.msrb.mxu3 %v3434_v9  ;;  %v3461_v18 = vld [vmem:[#allocation13 + $0x300] sm:$0xff]  ;;  %v3463_v19 = vld [vmem:[#allocation13 + $0x308] sm:$0xff]  ;;  %v3467_v20 = vld [vmem:[#allocation13 + $0x310] sm:$0xff] }
  0x53   : > { %792 = vmatpush.msrb.mxu0 %v3437_v10  ;;  %812 = vmatpush.msrb.mxu1 %v3439_v11  ;;  %v3469_v21 = vld [vmem:[#allocation13 + $0x318] sm:$0xff]  ;;  %v3473_v22 = vld [vmem:[#allocation13 + $0x2c0] sm:$0xff]  ;;  %v3475_v23 = vld [vmem:[#allocation13 + $0x2c8] sm:$0xff] }
  0x54   : > { %832 = vmatpush.msrb.mxu2 %v3443_v12  ;;  %852 = vmatpush.msrb.mxu3 %v3445_v13  ;;  %v3479_v24 = vld [vmem:[#allocation13 + $0x2d0] sm:$0xff]  ;;  %v3481_v25 = vld [vmem:[#allocation13 + $0x2d8] sm:$0xff]  ;;  %v3485_v26 = vld [vmem:[#allocation13 + $0x280] sm:$0xff] }
  0x55   : > { %793 = vmatpush.msrb.mxu0 %v3449_v14  ;;  %813 = vmatpush.msrb.mxu1 %v3451_v15  ;;  %v3487_v27 = vld [vmem:[#allocation13 + $0x288] sm:$0xff]  ;;  %v3491_v28 = vld [vmem:[#allocation13 + $0x290] sm:$0xff]  ;;  %v3493_v29 = vld [vmem:[#allocation13 + $0x298] sm:$0xff] }
  0x56   : > { %833 = vmatpush.msrb.mxu2 %v3455_v16  ;;  %853 = vmatpush.msrb.mxu3 %v3457_v17  ;;  %v3497_v30 = vld [vmem:[#allocation13 + $0x240] sm:$0xff]  ;;  %v3499_v31 = vld [vmem:[#allocation13 + $0x248] sm:$0xff]  ;;  %v3503_v32 = vld [vmem:[#allocation13 + $0x250] sm:$0xff] }
  0x57   : > { %794 = vmatpush.msrb.mxu0 %v3461_v18  ;;  %814 = vmatpush.msrb.mxu1 %v3463_v19  ;;  %v3505_v33 = vld [vmem:[#allocation13 + $0x258] sm:$0xff]  ;;  %v3509_v34 = vld [vmem:[#allocation13 + $0x200] sm:$0xff]  ;;  %v3511_v35 = vld [vmem:[#allocation13 + $0x208] sm:$0xff] }
  0x58   : > { %834 = vmatpush.msrb.mxu2 %v3467_v20  ;;  %854 = vmatpush.msrb.mxu3 %v3469_v21  ;;  %v3515_v36 = vld [vmem:[#allocation13 + $0x210] sm:$0xff]  ;;  %v3517_v37 = vld [vmem:[#allocation13 + $0x218] sm:$0xff]  ;;  %v3525_v38 = vld [vmem:[#allocation13 + $0x1c0] sm:$0xff] }
  0x59   : > { %795 = vmatpush.msrb.mxu0 %v3473_v22  ;;  %815 = vmatpush.msrb.mxu1 %v3475_v23  ;;  %v3527_v39 = vld [vmem:[#allocation13 + $0x1c8] sm:$0xff]  ;;  %v3529_v40 = vld [vmem:[#allocation13 + $0x1d0] sm:$0xff]  ;;  %v3533_v41 = vld [vmem:[#allocation13 + $0x1d8] sm:$0xff] }
  0x5a   : > { %835 = vmatpush.msrb.mxu2 %v3479_v24  ;;  %855 = vmatpush.msrb.mxu3 %v3481_v25  ;;  %v3537_v42 = vld [vmem:[#allocation13 + $0x180] sm:$0xff]  ;;  %v3539_v43 = vld [vmem:[#allocation13 + $0x188] sm:$0xff]  ;;  %v3541_v44 = vld [vmem:[#allocation13 + $0x190] sm:$0xff] }
  0x5b   : > { %796 = vmatpush.msrb.mxu0 %v3485_v26  ;;  %816 = vmatpush.msrb.mxu1 %v3487_v27  ;;  %5556 = vst [vmem:[#allocation24_spill] sm:$0xff] %v3539_v43  ;;  %v3545_v45 = vld [vmem:[#allocation13 + $0x198] sm:$0xff]  ;;  %v3549_v46 = vld [vmem:[#allocation13 + $0x140] sm:$0xff]  ;;  %v3551_v47 = vld [vmem:[#allocation13 + $0x148] sm:$0xff] }
  0x5c   : > { %836 = vmatpush.msrb.mxu2 %v3491_v28  ;;  %856 = vmatpush.msrb.mxu3 %v3493_v29  ;;  %5557 = vst [vmem:[#allocation25_spill] sm:$0xff] %v3541_v44  ;;  %v3553_v48 = vld [vmem:[#allocation13 + $0x150] sm:$0xff]  ;;  %v3557_v49 = vld [vmem:[#allocation13 + $0x158] sm:$0xff]  ;;  %v3561_v50 = vld [vmem:[#allocation13 + $0x100] sm:$0xff] }
  0x5d   : > { %797 = vmatpush.msrb.mxu0 %v3497_v30  ;;  %817 = vmatpush.msrb.mxu1 %v3499_v31  ;;  %5558 = vst [vmem:[#allocation26_spill] sm:$0xff] %v3545_v45  ;;  %v3563_v51 = vld [vmem:[#allocation13 + $0x108] sm:$0xff]  ;;  %v3565_v52 = vld [vmem:[#allocation13 + $0x110] sm:$0xff]  ;;  %v3569_v53 = vld [vmem:[#allocation13 + $0x118] sm:$0xff] }
  0x5e   : > { %837 = vmatpush.msrb.mxu2 %v3503_v32  ;;  %857 = vmatpush.msrb.mxu3 %v3505_v33  ;;  %5559 = vst [vmem:[#allocation27_spill] sm:$0xff] %v3549_v46  ;;  %v3573_v54 = vld [vmem:[#allocation13 + $0xc0] sm:$0xff]  ;;  %v3575_v55 = vld [vmem:[#allocation13 + $0xc8] sm:$0xff]  ;;  %v3577_v56 = vld [vmem:[#allocation13 + $0xd0] sm:$0xff] }
  0x5f   : > { %798 = vmatpush.msrb.mxu0 %v3509_v34  ;;  %818 = vmatpush.msrb.mxu1 %v3511_v35  ;;  %5560 = vst [vmem:[#allocation28_spill] sm:$0xff] %v3551_v47  ;;  %v3581_v57 = vld [vmem:[#allocation13 + $0xd8] sm:$0xff]  ;;  %v3585_v58 = vld [vmem:[#allocation13 + $0x80] sm:$0xff]  ;;  %v3587_v59 = vld [vmem:[#allocation13 + $0x88] sm:$0xff] }
  0x60   : > { %838 = vmatpush.msrb.mxu2 %v3515_v36  ;;  %858 = vmatpush.msrb.mxu3 %v3517_v37  ;;  %5561 = vst [vmem:[#allocation29_spill] sm:$0xff] %v3553_v48  ;;  %v3589_v60 = vld [vmem:[#allocation13 + $0x90] sm:$0xff]  ;;  %v3593_v61 = vld [vmem:[#allocation13 + $0x98] sm:$0xff]  ;;  %v3597_v62 = vld [vmem:[#allocation13 + $0x40] sm:$0xff] }
  0x61   : > { %799 = vmatpush.msrb.mxu0 %v3525_v38  ;;  %819 = vmatpush.msrb.mxu1 %v3527_v39  ;;  %5562 = vst [vmem:[#allocation30_spill] sm:$0xff] %v3557_v49  ;;  %v3599_v63 = vld [vmem:[#allocation13 + $0x48] sm:$0xff]  ;;  %v3601_v0 = vld [vmem:[#allocation13 + $0x50] sm:$0xff]  ;;  %v3605_v1 = vld [vmem:[#allocation13 + $0x58] sm:$0xff] }
  0x62   : > { %839 = vmatpush.msrb.mxu2 %v3529_v40  ;;  %859 = vmatpush.msrb.mxu3 %v3533_v41  ;;  %5563 = vst [vmem:[#allocation31_spill] sm:$0xff] %v3561_v50  ;;  %v3609_v2 = vld [vmem:[#allocation13] sm:$0xff]  ;;  %v3611_v3 = vld [vmem:[#allocation13 + $0x8] sm:$0xff]  ;;  %v3613_v4 = vld [vmem:[#allocation13 + $0x10] sm:$0xff] }
  0x63   : > { %800 = vmatpush.msrb.mxu0 %v3537_v42  ;;  %820 = vmatpush.msrb.mxu1 %v3539_v43  ;;  %5564 = vst [vmem:[#allocation32_spill] sm:$0xff] %v3563_v51  ;;  %v3617_v5 = vld [vmem:[#allocation13 + $0x18] sm:$0xff] }
  0x64   : > { %840 = vmatpush.msrb.mxu2 %v3541_v44  ;;  %860 = vmatpush.msrb.mxu3 %v3545_v45  ;;  %5565 = vst [vmem:[#allocation33_spill] sm:$0xff] %v3565_v52 }
  0x65   : > { %801 = vmatpush.msrb.mxu0 %v3549_v46  ;;  %821 = vmatpush.msrb.mxu1 %v3551_v47  ;;  %5566 = vst [vmem:[#allocation34_spill] sm:$0xff] %v3569_v53 }
  0x66   : > { %841 = vmatpush.msrb.mxu2 %v3553_v48  ;;  %861 = vmatpush.msrb.mxu3 %v3557_v49  ;;  %5567 = vst [vmem:[#allocation35_spill] sm:$0xff] %v3573_v54 }
  0x67   : > { %802 = vmatpush.msrb.mxu0 %v3561_v50  ;;  %822 = vmatpush.msrb.mxu1 %v3563_v51  ;;  %5568 = vst [vmem:[#allocation36_spill] sm:$0xff] %v3575_v55  ;;  %v589_v50 = vld [vmem:[#allocation4] sm:$0xff] }
  0x68   : > { %842 = vmatpush.msrb.mxu2 %v3565_v52  ;;  %862 = vmatpush.msrb.mxu3 %v3569_v53  ;;  %5569 = vst [vmem:[#allocation37_spill] sm:$0xff] %v3577_v56  ;;  %v586_v53 = vld [vmem:[#allocation3] sm:$0xff] }
  0x69   : > { %803 = vmatpush.msrb.mxu0 %v3573_v54  ;;  %823 = vmatpush.msrb.mxu1 %v3575_v55  ;;  %5570 = vst [vmem:[#allocation38_spill] sm:$0xff] %v3581_v57  ;;  %v585_v55 = vld [vmem:[#allocation3 + $0x10] sm:$0xff] }
  0x6a   : > { %843 = vmatpush.msrb.mxu2 %v3577_v56  ;;  %863 = vmatpush.msrb.mxu3 %v3581_v57  ;;  %5571 = vst [vmem:[#allocation39_spill] sm:$0xff] %v3585_v58  ;;  %v3716_v57 = vld [vmem:[#allocation13 + $0x228] sm:$0xff] }
  0x6b   : > { %5572 = vst [vmem:[#allocation40_spill] sm:$0xff] %v3587_v59  ;;  %804 = vmatpush.msrb.mxu0 %v3585_v58  ;;  %824 = vmatpush.msrb.mxu1 %v3587_v59  ;;  %v3696_v59 = vld [vmem:[#allocation13 + $0x260] sm:$0xff]  ;;  %v3698_v58 = vld [vmem:[#allocation13 + $0x268] sm:$0xff] }
  0x6c   : > { %5573 = vst [vmem:[#allocation41_spill] sm:$0xff] %v3589_v60  ;;  %844 = vmatpush.msrb.mxu2 %v3589_v60  ;;  %864 = vmatpush.msrb.mxu3 %v3593_v61  ;;  %v3692_v60 = vld [vmem:[#allocation13 + $0x2b8] sm:$0xff] }
  0x6d   : > { %5574 = vst [vmem:[#allocation42_spill] sm:$0xff] %v3593_v61  ;;  %805 = vmatpush.msrb.mxu0 %v3597_v62  ;;  %825 = vmatpush.msrb.mxu1 %v3599_v63  ;;  %v3635_v61 = vld [vmem:[#allocation13 + $0x3b0] sm:$0xff] }
  0x6e   : > { %5575 = vst [vmem:[#allocation43_spill] sm:$0xff] %v3597_v62  ;;  %845 = vmatpush.msrb.mxu2 %v3601_v0  ;;  %865 = vmatpush.msrb.mxu3 %v3605_v1  ;;  %v3619_v62 = vld [vmem:[#allocation13 + $0x3e0] sm:$0xff] }
  0x6f   : > { %5576 = vst [vmem:[#allocation44_spill] sm:$0xff] %v3599_v63  ;;  %806 = vmatpush.msrb.mxu0 %v3609_v2  ;;  %826 = vmatpush.msrb.mxu1 %v3611_v3  ;;  %v3621_v63 = vld [vmem:[#allocation13 + $0x3e8] sm:$0xff] }
  0x70   : > { %5577 = vst [vmem:[#allocation45_spill] sm:$0xff] %v3601_v0  ;;  %846 = vmatpush.msrb.mxu2 %v3613_v4  ;;  %866 = vmatpush.msrb.mxu3 %v3617_v5  ;;  %v3627_v0 = vld [vmem:[#allocation13 + $0x3f8] sm:$0xff] }
  0x71   : > { %5578 = vst [vmem:[#allocation46_spill] sm:$0xff] %v3605_v1  ;;  %v3625_v1 = vld [vmem:[#allocation13 + $0x3f0] sm:$0xff]  ;;  %871 = vmatpush.msra.mxu0 %v3619_v62  ;;  %891 = vmatpush.msra.mxu1 %v3621_v63 }
  0x72   : > { %5579 = vst [vmem:[#allocation47_spill] sm:$0xff] %v3609_v2  ;;  %v3631_v2 = vld [vmem:[#allocation13 + $0x3a0] sm:$0xff]  ;;  %911 = vmatpush.msra.mxu2 %v3625_v1  ;;  %931 = vmatpush.msra.mxu3 %v3627_v0 }
  0x73   : > { %5580 = vst [vmem:[#allocation48_spill] sm:$0xff] %v3611_v3  ;;  %v3633_v3 = vld [vmem:[#allocation13 + $0x3a8] sm:$0xff]  ;;  %872 = vmatpush.msra.mxu0 %v3631_v2 }
  0x74   : > { %5581 = vst [vmem:[#allocation49_spill] sm:$0xff] %v3613_v4  ;;  %v3639_v4 = vld [vmem:[#allocation13 + $0x3b8] sm:$0xff]  ;;  %892 = vmatpush.msra.mxu1 %v3633_v3  ;;  %912 = vmatpush.msra.mxu2 %v3635_v61 }
  0x75   : > { %5582 = vst [vmem:[#allocation50_spill] sm:$0xff] %v3617_v5  ;;  %v3643_v5 = vld [vmem:[#allocation13 + $0x360] sm:$0xff]  ;;  %932 = vmatpush.msra.mxu3 %v3639_v4 }
  0x76   : > { %5583 = vst [vmem:[#allocation51_spill] sm:$0xff] %v3619_v62  ;;  %v3647_v62 = vld [vmem:[#allocation13 + $0x370] sm:$0xff]  ;;  %873 = vmatpush.msra.mxu0 %v3643_v5 }
  0x77   : > { %5584 = vst [vmem:[#allocation52_spill] sm:$0xff] %v3621_v63  ;;  %v3645_v63 = vld [vmem:[#allocation13 + $0x368] sm:$0xff]  ;;  %913 = vmatpush.msra.mxu2 %v3647_v62 }
  0x78   : > { %5585 = vst [vmem:[#allocation53_spill] sm:$0xff] %v3625_v1  ;;  %v3651_v1 = vld [vmem:[#allocation13 + $0x378] sm:$0xff]  ;;  %893 = vmatpush.msra.mxu1 %v3645_v63 }
  0x79   : > { %5586 = vst [vmem:[#allocation54_spill] sm:$0xff] %v3627_v0  ;;  %933 = vmatpush.msra.mxu3 %v3651_v1  ;;  %v3661_v0 = vld [vmem:[#allocation13 + $0x330] sm:$0xff] }
  0x7a   : > { %5587 = vst [vmem:[#allocation55_spill] sm:$0xff] %v3631_v2  ;;  %v3659_v2 = vld [vmem:[#allocation13 + $0x328] sm:$0xff]  ;;  %914 = vmatpush.msra.mxu2 %v3661_v0 }
  0x7b   : > { %5588 = vst [vmem:[#allocation56_spill] sm:$0xff] %v3633_v3  ;;  %v3657_v3 = vld [vmem:[#allocation13 + $0x320] sm:$0xff]  ;;  %894 = vmatpush.msra.mxu1 %v3659_v2 }
  0x7c   : > { %5589 = vst [vmem:[#allocation57_spill] sm:$0xff] %v3635_v61  ;;  %874 = vmatpush.msra.mxu0 %v3657_v3  ;;  %v406_v61 = vld [vmem:[%s3404_s15 + $0x8] sm:$0xff] }
  0x7d   : > { %5590 = vst [vmem:[#allocation58_spill] sm:$0xff] %v3639_v4  ;;  %v3665_v4 = vld [vmem:[#allocation13 + $0x338] sm:$0xff]  ;;  %2503 = vmatmul.msk.f32.gmra.mxu0 %vm413_vm0, %v406_v61  ;;  %2507 = vmatmul.msk.f32.gmra.mxu1 %vm413_vm0, %v406_v61 }
  0x7e   : > { %5591 = vst [vmem:[#allocation59_spill] sm:$0xff] %v3643_v5  ;;  %934 = vmatpush.msra.mxu3 %v3665_v4  ;;  %2511 = vmatmul.msk.f32.gmra.mxu2 %vm413_vm0, %v406_v61  ;;  %v3690_v5 = vld [vmem:[#allocation13 + $0x2b0] sm:$0xff] }
  0x7f   : > { %5592 = vst [vmem:[#allocation60_spill] sm:$0xff] %v3645_v63  ;;  %v3676_v63 = vld [vmem:[#allocation13 + $0x2f0] sm:$0xff]  ;;  %2515 = vmatmul.msk.f32.gmra.mxu3 %vm413_vm0, %v406_v61 }
  0x80   : > { %5593 = vst [vmem:[#allocation61_spill] sm:$0xff] %v3647_v62  ;;  %v3670_v62 = vld [vmem:[#allocation13 + $0x2e0] sm:$0xff]  ;;  %915 = vmatpush.msra.mxu2 %v3676_v63 }
  0x81   : > { %5594 = vst [vmem:[#allocation62_spill] sm:$0xff] %v3651_v1  ;;  %v3672_v1 = vld [vmem:[#allocation13 + $0x2e8] sm:$0xff]  ;;  %875 = vmatpush.msra.mxu0 %v3670_v62 }
  0x82   : > { %5595 = vst [vmem:[#allocation63_spill] sm:$0xff] %v3657_v3  ;;  %v3678_v3 = vld [vmem:[#allocation13 + $0x2f8] sm:$0xff]  ;;  %895 = vmatpush.msra.mxu1 %v3672_v1  ;;  %916 = vmatpush.msra.mxu2 %v3690_v5 }
  0x83   : > { %5596 = vst [vmem:[#allocation64_spill] sm:$0xff] %v3659_v2  ;;  %v3680_v2 = vld [vmem:[#allocation12] sm:$0xf]  ;;  %935 = vmatpush.msra.mxu3 %v3678_v3 }
  0x84   : > { %5597 = vst [vmem:[#allocation65_spill] sm:$0xff] %v3661_v0  ;;  %v3684_v0 = vld [vmem:[#allocation13 + $0x2a0] sm:$0xff]  ;;  %v3701_v61 = vperm.slane %v3680_v2, 0 }
  0x85   : > { %5598 = vst [vmem:[#allocation66_spill] sm:$0xff] %v3665_v4  ;;  %v3686_v4 = vld [vmem:[#allocation13 + $0x2a8] sm:$0xff]  ;;  %876 = vmatpush.msra.mxu0 %v3684_v0  ;;  %936 = vmatpush.msra.mxu3 %v3692_v60 }
  0x86   : > { %5599 = vst [vmem:[#allocation67_spill] sm:$0xff] %v3670_v62  ;;  %896 = vmatpush.msra.mxu1 %v3686_v4  ;;  %v3707_v62 = vld [vmem:[#allocation13 + $0x278] sm:$0xff] }
  0x87   : > { %5600 = vst [vmem:[#allocation68_spill] sm:$0xff] %v3672_v1  ;;  %v3705_v1 = vld [vmem:[#allocation13 + $0x270] sm:$0xff]  ;;  %877 = vmatpush.msra.mxu0 %v3696_v59  ;;  %937 = vmatpush.msra.mxu3 %v3707_v62 }
  0x88   : > { %5601 = vst [vmem:[#allocation69_spill] sm:$0xff] %v3676_v63  ;;  %v3710_v63 = vperm.slane %v3680_v2, 1  ;;  %897 = vmatpush.msra.mxu1 %v3698_v58  ;;  %917 = vmatpush.msra.mxu2 %v3705_v1 }
  0x89   : > { %5602 = vst [vmem:[#allocation70_spill] sm:$0xff] %v3678_v3  ;;  %v3714_v3 = vld [vmem:[#allocation13 + $0x220] sm:$0xff] }
  0x8a   : > { %5603 = vst [vmem:[#allocation71_spill] sm:$0xff] %v3684_v0  ;;  %v3722_v0 = vld [vmem:[#allocation13 + $0x238] sm:$0xff]  ;;  %878 = vmatpush.msra.mxu0 %v3714_v3  ;;  %898 = vmatpush.msra.mxu1 %v3716_v57 }
  0x8b   : > { %5604 = vst [vmem:[#allocation72_spill] sm:$0xff] %v3686_v4  ;;  %v3720_v4 = vld [vmem:[#allocation13 + $0x230] sm:$0xff]  ;;  %938 = vmatpush.msra.mxu3 %v3722_v0 }
  0x8c   : > { %5605 = vst [vmem:[#allocation73_spill] sm:$0xff] %v3690_v5  ;;  %v407_v5 = vld [vmem:[%s3404_s15 + $0x10] sm:$0xff]  ;;  %918 = vmatpush.msra.mxu2 %v3720_v4 }
  0x8d   : > { %5606 = vst [vmem:[#allocation74_spill] sm:$0xff] %v3692_v60  ;;  %2504 = vmatmul.msk.f32.gmra.mxu0 %vm413_vm0, %v407_v5  ;;  %2508 = vmatmul.msk.f32.gmra.mxu1 %vm413_vm0, %v407_v5 }
  0x8e   : > { %5607 = vst [vmem:[#allocation75_spill] sm:$0xff] %v3696_v59  ;;  %v3733_v59 = vld [vmem:[#allocation13 + $0x1e0] sm:$0xff]  ;;  %2512 = vmatmul.msk.f32.gmra.mxu2 %vm413_vm0, %v407_v5  ;;  %2516 = vmatmul.msk.f32.gmra.mxu3 %vm413_vm0, %v407_v5  ;;  %v3762_v5 = vld [vmem:[#allocation13 + $0x168] sm:$0xff] }
  0x8f   : > { %5608 = vst [vmem:[#allocation76_spill] sm:$0xff] %v3698_v58  ;;  %879 = vmatpush.msra.mxu0 %v3733_v59 }
  0x90   : > { %5609 = vst [vmem:[#allocation77_spill] sm:$0xff] %v3701_v61 }
  0x91   : > { %5610 = vst [vmem:[#allocation78_spill] sm:$0xff] %v3705_v1  ;;  %v3735_v1 = vld [vmem:[#allocation13 + $0x1e8] sm:$0xff] }
  0x92   : > { %5611 = vst [vmem:[#allocation79_spill] sm:$0xff] %v3707_v62  ;;  %899 = vmatpush.msra.mxu1 %v3735_v1 }
  0x93   : > { %5612 = vst [vmem:[#allocation80_spill] sm:$0xff] %v3710_v63 }
  0x94   : > { %5613 = vst [vmem:[#allocation81_spill] sm:$0xff] %v3714_v3 }
  0x95   : > { %5614 = vst [vmem:[#allocation82_spill] sm:$0xff] %v3716_v57 }
  0x96   : > { %5615 = vst [vmem:[#allocation83_spill] sm:$0xff] %v3720_v4  ;;  %v3756_v4 = vld [vmem:[#allocation13 + $0x1b8] sm:$0xff] }
  0x97   : > { %5616 = vst [vmem:[#allocation84_spill] sm:$0xff] %v3722_v0  ;;  %v3750_v0 = vld [vmem:[#allocation13 + $0x1a8] sm:$0xff] }
  0x98   : > { %5617 = vst [vmem:[#allocation85_spill] sm:$0xff] %v3733_v59  ;;  %900 = vmatpush.msra.mxu1 %v3750_v0  ;;  %v3768_v59 = vld [vmem:[#allocation13 + $0x178] sm:$0xff] }
  0x99   : > { %5618 = vst [vmem:[#allocation86_spill] sm:$0xff] %v3735_v1  ;;  %v3766_v1 = vld [vmem:[#allocation13 + $0x170] sm:$0xff] }
  0x9a   : > { %5623 = vst [vmem:[#allocation91_spill] sm:$0xff] %v3750_v0  ;;  %901 = vmatpush.msra.mxu1 %v3762_v5  ;;  %v3779_v0 = vld [vmem:[#allocation13 + $0x130] sm:$0xff] }
  0x9b   : > { %5625 = vst [vmem:[#allocation93_spill] sm:$0xff] %v3756_v4 }
  0x9c   : > { %5627 = vst [vmem:[#allocation95_spill] sm:$0xff] %v3762_v5  ;;  %v3793_v5 = vld [vmem:[#allocation13 + $0xe0] sm:$0xff] }
  0x9d   : > { %5628 = vst [vmem:[#allocation96_spill] sm:$0xff] %v3766_v1 }
  0x9e   : > { %5629 = vst [vmem:[#allocation97_spill] sm:$0xff] %v3768_v59 }
  0x9f   : > { %5632 = vst [vmem:[#allocation100_spill] sm:$0xff] %v3779_v0 }
  0xa0   : > { %5635 = vst [vmem:[#allocation103_spill] sm:$0xff] %v3793_v5 }
  0xcb   : > { %v443_v56 = vpop.f32.mrf.mxu0 }
  0xcc   : > { %v552_v60 = vadd.f32 %v3701_v61, %v443_v56  ;;  %v472_v54 = vpop.f32.mrf.mxu1  ;;  %v3739_v56 = vld [vmem:[#allocation13 + $0x1f0] sm:$0xff]  ;;  %v3741_v61 = vld [vmem:[#allocation13 + $0x1f8] sm:$0xff] }
  0xcd   : > { %v553_v58 = vadd.f32 %v3710_v63, %v472_v54  ;;  %5619 = vst [vmem:[#allocation87_spill] sm:$0xff] %v3739_v56  ;;  %v3744_v54 = vperm.slane %v3680_v2, 3  ;;  %v3748_v63 = vld [vmem:[#allocation13 + $0x1a0] sm:$0xff]  ;;  %919 = vmatpush.msra.mxu2 %v3739_v56  ;;  %939 = vmatpush.msra.mxu3 %v3741_v61 }
  0xce   : > { %v596_v62 = vadd.f32 %v585_v55, %v552_v60  ;;  %5620 = vst [vmem:[#allocation88_spill] sm:$0xff] %v3741_v61  ;;  %v3754_v60 = vld [vmem:[#allocation13 + $0x1b0] sm:$0xff]  ;;  %880 = vmatpush.msra.mxu0 %v3748_v63  ;;  %v3773_v61 = vld [vmem:[#allocation13 + $0x120] sm:$0xff] }
  0xcf   : > { %v597_v57 = vadd.f32 %v586_v53, %v553_v58  ;;  %5621 = vst [vmem:[#allocation89_spill] sm:$0xff] %v3744_v54  ;;  %v3760_v58 = vld [vmem:[#allocation13 + $0x160] sm:$0xff]  ;;  %920 = vmatpush.msra.mxu2 %v3754_v60  ;;  %940 = vmatpush.msra.mxu3 %v3756_v4  ;;  %v3817_v4 = vld [vmem:[#allocation13 + $0xb8] sm:$0xff] }
  0xd0   : > { %5622 = vst [vmem:[#allocation90_spill] sm:$0xff] %v3748_v63  ;;  %v2518_v55 = vmul.f32 -1.442695, %v596_v62  ;;  %v588_v62 = vld [vmem:[#allocation3 + $0x8] sm:$0xff]  ;;  %881 = vmatpush.msra.mxu0 %v3760_v58  ;;  %v3781_v63 = vld [vmem:[#allocation13 + $0x138] sm:$0xff] }
  0xd1   : > { %5624 = vst [vmem:[#allocation92_spill] sm:$0xff] %v3754_v60  ;;  %v2519_v53 = vmul.f32 -1.442695, %v597_v57  ;;  %921 = vmatpush.msra.mxu2 %v3766_v1  ;;  %941 = vmatpush.msra.mxu3 %v3768_v59 }
  0xd2   : > { %5626 = vst [vmem:[#allocation94_spill] sm:$0xff] %v3760_v58  ;;  %2652 = vpow2.f32 %v2518_v55  ;;  %v530_v3 = vpop.f32.mrf.mxu3  ;;  %v3775_v55 = vld [vmem:[#allocation13 + $0x128] sm:$0xff]  ;;  %882 = vmatpush.msra.mxu0 %v3773_v61  ;;  %v3815_v58 = vld [vmem:[#allocation13 + $0xb0] sm:$0xff] }
  0xd3   : > { %2654 = vpow2.f32 %v2519_v53  ;;  %v555_v57 = vadd.f32 %v3744_v54, %v530_v3  ;;  %5630 = vst [vmem:[#allocation98_spill] sm:$0xff] %v3773_v61  ;;  %v408_v3 = vld [vmem:[%s3404_s15 + $0x18] sm:$0xff]  ;;  %902 = vmatpush.msra.mxu1 %v3775_v55  ;;  %v3789_v54 = vperm.slane %v3680_v2, 2  ;;  %922 = vmatpush.msra.mxu2 %v3779_v0  ;;  %v3809_v0 = vld [vmem:[#allocation13 + $0xa8] sm:$0xff] }
  0xd4   : > { %5631 = vst [vmem:[#allocation99_spill] sm:$0xff] %v3775_v55  ;;  %942 = vmatpush.msra.mxu3 %v3781_v63  ;;  %v501_v1 = vpop.f32.mrf.mxu2  ;;  %2505 = vmatmul.msk.f32.gmra.mxu0 %vm413_vm0, %v408_v3  ;;  %v3799_v61 = vld [vmem:[#allocation13 + $0xf0] sm:$0xff] }
  0xd5   : > { %5633 = vst [vmem:[#allocation101_spill] sm:$0xff] %v3781_v63  ;;  %v599_v56 = vadd.f32 %v588_v62, %v555_v57  ;;  %v3795_v62 = vld [vmem:[#allocation13 + $0xe8] sm:$0xff]  ;;  %2509 = vmatmul.msk.f32.gmra.mxu1 %vm413_vm0, %v408_v3  ;;  %2513 = vmatmul.msk.f32.gmra.mxu2 %vm413_vm0, %v408_v3  ;;  %v3807_v63 = vld [vmem:[#allocation13 + $0xa0] sm:$0xff] }
  0xd6   : > { %5634 = vst [vmem:[#allocation102_spill] sm:$0xff] %v3789_v54  ;;  %2517 = vmatmul.msk.f32.gmra.mxu3 %vm413_vm0, %v408_v3  ;;  %883 = vmatpush.msra.mxu0 %v3793_v5  ;;  %v3823_v3 = vld [vmem:[#allocation13 + $0x60] sm:$0xff]  ;;  %v3832_v5 = vld [vmem:[#allocation13 + $0x78] sm:$0xff] }
  0xd7   : > { %v2520_v53 = vmul.f32 -1.442695, %v599_v56  ;;  %5636 = vst [vmem:[#allocation104_spill] sm:$0xff] %v3795_v62  ;;  %v3801_v56 = vld [vmem:[#allocation13 + $0xf8] sm:$0xff]  ;;  %903 = vmatpush.msra.mxu1 %v3795_v62  ;;  %923 = vmatpush.msra.mxu2 %v3799_v61  ;;  %v3830_v62 = vld [vmem:[#allocation13 + $0x70] sm:$0xff] }
  0xd8   : > { %v2653_v57 = vpop.eup %2652  ;;  %5637 = vst [vmem:[#allocation105_spill] sm:$0xff] %v3799_v61  ;;  %943 = vmatpush.msra.mxu3 %v3801_v56  ;;  %884 = vmatpush.msra.mxu0 %v3807_v63 }
  0xd9   : > { %5638 = vst [vmem:[#allocation106_spill] sm:$0xff] %v3801_v56  ;;  %v2655_v2 = vpop.eup %2654  ;;  %v3803_v55 = vadd.f32 1.0, %v2653_v57  ;;  %2656 = vpow2.f32 %v2520_v53  ;;  %v554_v53 = vadd.f32 %v3789_v54, %v501_v1  ;;  %v3825_v57 = vld [vmem:[#allocation13 + $0x68] sm:$0xff]  ;;  %904 = vmatpush.msra.mxu1 %v3809_v0  ;;  %924 = vmatpush.msra.mxu2 %v3815_v58  ;;  %v3836_v1 = vld [vmem:[#allocation13 + $0x20] sm:$0xff]  ;;  %v3842_v56 = vld [vmem:[#allocation13 + $0x30] sm:$0xff] }
  0xda   : > { %5639 = vst [vmem:[#allocation107_spill] sm:$0xff] %v3807_v63  ;;  %v3811_v59 = vadd.f32 1.0, %v2655_v2  ;;  %v587_v2 = vld [vmem:[#allocation3 + $0x18] sm:$0xff]  ;;  %944 = vmatpush.msra.mxu3 %v3817_v4  ;;  %v3838_v54 = vld [vmem:[#allocation13 + $0x28] sm:$0xff]  ;;  %885 = vmatpush.msra.mxu0 %v3823_v3 }
  0xdb   : > { %5640 = vst [vmem:[#allocation108_spill] sm:$0xff] %v3809_v0  ;;  %2658 = vrcp.f32 %v3803_v55  ;;  %905 = vmatpush.msra.mxu1 %v3825_v57  ;;  %v3844_v63 = vld [vmem:[#allocation13 + $0x38] sm:$0xff]  ;;  %v598_v61 = vadd.f32 %v587_v2, %v554_v53  ;;  %925 = vmatpush.msra.mxu2 %v3830_v62  ;;  %vm609_vm3 = vweird.f32 %v3803_v55 }
  0xdc   : > { %5641 = vst [vmem:[#allocation109_spill] sm:$0xff] %v3815_v58  ;;  %2660 = vrcp.f32 %v3811_v59  ;;  %945 = vmatpush.msra.mxu3 %v3832_v5  ;;  %886 = vmatpush.msra.mxu0 %v3836_v1  ;;  %vm628_vm4 = vweird.f32 %v3811_v59 }
  0xdd   : > { %5642 = vst [vmem:[#allocation110_spill] sm:$0xff] %v3817_v4  ;;  %906 = vmatpush.msra.mxu1 %v3838_v54  ;;  %926 = vmatpush.msra.mxu2 %v3842_v56 }
  0xde   : > { %5643 = vst [vmem:[#allocation111_spill] sm:$0xff] %v3823_v3  ;;  %946 = vmatpush.msra.mxu3 %v3844_v63 }
  0xdf   : > { %5644 = vst [vmem:[#allocation112_spill] sm:$0xff] %v3825_v57  ;;  %v2657_v0 = vpop.eup %2656 }
  0xe0   : > { %5645 = vst [vmem:[#allocation113_spill] sm:$0xff] %v3830_v62  ;;  %v642_v58 = vadd.f32 1.0, %v2657_v0  ;;  %v615_v0 = vand.u32 2147483648, %v3803_v55 }
  0xe1   : > { %5646 = vst [vmem:[#allocation114_spill] sm:$0xff] %v3832_v5  ;;  %v2659_v4 = vpop.eup %2658 }
  0xe2   : > { %5647 = vst [vmem:[#allocation115_spill] sm:$0xff] %v3836_v1  ;;  %v2661_v57 = vpop.eup %2660  ;;  %v605_v3 = vmul.f32 %v2659_v4, %v3803_v55  ;;  %2662 = vrcp.f32 %v642_v58  ;;  %v634_v1 = vand.u32 2147483648, %v3811_v59  ;;  %vm610_vm1 = vweird.f32 %v2659_v4 }
  0xe3   : > { %5648 = vst [vmem:[#allocation116_spill] sm:$0xff] %v3838_v54  ;;  %v624_v53 = vmul.f32 %v2661_v57, %v3811_v59  ;;  %2664 = vtanh.f32 %v598_v61  ;;  %v613_v54 = vand.u32 2147483647, %v3803_v55  ;;  %vm629_vm2 = vweird.f32 %v2661_v57  ;;  %vm611_vm5 = vmor %vm609_vm3, %vm610_vm1 }
  0xe4   : > { %5649 = vst [vmem:[#allocation117_spill] sm:$0xff] %v3842_v56  ;;  %v606_v2 = vsub.f32 1.0, %v605_v3  ;;  %v616_v3 = vor.u32 1.1754944e-38, %v615_v0  ;;  %vm630_vm6 = vmor %vm628_vm4, %vm629_vm2  ;;  %v654_v43 = vand.u32 2147483648, %v642_v58  ;;  %vm648_vm10 = vweird.f32 %v642_v58  ;;  %v3891_v0 = vld [vmem:[#allocation15 + $0x1b8] sm:$0xff] }
  0xe5   : > { %5650 = vst [vmem:[#allocation118_spill] sm:$0xff] %v3844_v63  ;;  %v625_v62 = vsub.f32 1.0, %v624_v53  ;;  %v632_v63 = vand.u32 2147483647, %v3811_v59  ;;  %vm614_vm7 = vcmp.eq.f32.partialorder %v613_v54, 8.507059e+37 }
  0xe6   : > { %v607_v5 = vmul.f32 %v2659_v4, %v606_v2  ;;  %v635_v2 = vor.u32 1.1754944e-38, %v634_v1  ;;  %v3889_v1 = vld [vmem:[#allocation15 + $0x1b0] sm:$0xff] }
  0xe7   : > { %v626_v56 = vmul.f32 %v2661_v57, %v625_v62  ;;  %vm633_vm8 = vcmp.eq.f32.partialorder %v632_v63, 8.507059e+37 }
  0xe8   : > { %v2663_v60 = vpop.eup %2662  ;;  %v608_v52 = vadd.f32 %v2659_v4, %v607_v5 }
  0xe9   : > { %v2665_v51 = vpop.eup %2664  ;;  %v644_v61 = vmul.f32 %v2663_v60, %v642_v58  ;;  %v627_v53 = vadd.f32 %v2661_v57, %v626_v56  ;;  %vm649_vm9 = vweird.f32 %v2663_v60  ;;  %v652_v56 = vand.u32 2147483647, %v642_v58  ;;  %v3883_v58 = vld [vmem:[#allocation15 + $0x1a0] sm:$0xff] }
  0xea   : > { %v612_v49 = vsel %vm611_vm5, %v2659_v4, %v608_v52  ;;  %vm650_vm11 = vmor %vm648_vm10, %vm649_vm9  ;;  %v655_v4 = vor.u32 1.1754944e-38, %v654_v43  ;;  %v3877_v43 = vld [vmem:[#allocation15 + $0x1d0] sm:$0xff] }
  0xeb   : > { %v645_v62 = vsub.f32 1.0, %v644_v61  ;;  %v617_v48 = vsel %vm614_vm7, %v616_v3, %v612_v49  ;;  %v631_v47 = vsel %vm630_vm6, %v2661_v57, %v627_v53  ;;  %vm653_vm12 = vcmp.eq.f32.partialorder %v652_v56, 8.507059e+37  ;;  %v3885_v57 = vld [vmem:[#allocation15 + $0x1a8] sm:$0xff]  ;;  %v3895_v61 = vld [vmem:[#allocation15 + $0x180] sm:$0xff]  ;;  %v3901_v53 = vld [vmem:[#allocation15 + $0x190] sm:$0xff] }
  0xec   : > { %v636_v46 = vsel %vm633_vm8, %v635_v2, %v631_v47  ;;  %v659_v5 = vmul.f32 %v2665_v51, %v617_v48  ;;  %v3863_v47 = vld [vmem:[#allocation15 + $0x1e0] sm:$0xff]  ;;  %v3865_v48 = vld [vmem:[#allocation15 + $0x1e8] sm:$0xff]  ;;  %v3903_v2 = vld [vmem:[#allocation15 + $0x198] sm:$0xff] }
  0xed   : > { %v646_v45 = vmul.f32 %v2663_v60, %v645_v62  ;;  %v658_v55 = vmul.f32 %v636_v46, %v589_v50  ;;  %v3869_v46 = vld [vmem:[#allocation15 + $0x1f8] sm:$0xff]  ;;  %v3871_v50 = vld [vmem:[#allocation15 + $0x1c0] sm:$0xff]  ;;  %v3873_v51 = vld [vmem:[#allocation15 + $0x1c8] sm:$0xff]  ;;  %5651 = vst [vmem:[#allocation119_spill] sm:$0xff] %v3903_v2 }
  0xee   : > { %v3897_v3 = vld [vmem:[#allocation15 + $0x188] sm:$0xff]  ;;  %v3911_v62 = vld [vmem:[#allocation15 + $0x160] sm:$0xff] }
  0xef   : > { %v3860_v44 = vadd.f32 %v659_v5, %v658_v55  ;;  %v647_v59 = vadd.f32 %v2663_v60, %v646_v45  ;;  %v3867_v45 = vld [vmem:[#allocation15 + $0x1f0] sm:$0xff]  ;;  %5652 = vst [vmem:[#allocation120_spill] sm:$0xff] %v3911_v62  ;;  %v3913_v5 = vld [vmem:[#allocation15 + $0x168] sm:$0xff]  ;;  %v3919_v56 = vld [vmem:[#allocation15 + $0x140] sm:$0xff] }
  0xf0   : > { %5653 = vst [vmem:[#allocation121_spill] sm:$0xff] %v3913_v5  ;;  %v3915_v55 = vld [vmem:[#allocation15 + $0x170] sm:$0xff] }
  0xf1   : > { %2666 = vtanh.f32 %v3860_v44  ;;  %v651_v52 = vsel %vm650_vm11, %v2663_v60, %v647_v59  ;;  %v3879_v60 = vld [vmem:[#allocation15 + $0x1d8] sm:$0xff]  ;;  %5654 = vst [vmem:[#allocation122_spill] sm:$0xff] %v3915_v55 }
  0xf2   : > { %v656_v54 = vsel %vm653_vm12, %v655_v4, %v651_v52  ;;  %v3917_v59 = vld [vmem:[#allocation15 + $0x178] sm:$0xff]  ;;  %5656 = vst [vmem:[#allocation124_spill] sm:$0xff] %v3919_v56  ;;  %v3921_v52 = vld [vmem:[#allocation15 + $0x148] sm:$0xff]  ;;  %v3925_v4 = vld [vmem:[#allocation15 + $0x150] sm:$0xff] }
  0xf3   : > { %5655 = vst [vmem:[#allocation123_spill] sm:$0xff] %v3917_v59 }
  0xf4   : > { %5657 = vst [vmem:[#allocation125_spill] sm:$0xff] %v3921_v52 }
  0xf5   : > { %5658 = vst [vmem:[#allocation126_spill] sm:$0xff] %v3925_v4 }
  0xf7   : > { %v2667_v49 = vpop.eup %2666 }
  0xf8   : > { %v662_v63 = vmul.f32 %v2667_v49, %v656_v54  ;;  %v3927_v49 = vld [vmem:[#allocation15 + $0x158] sm:$0xff]  ;;  %v3931_v54 = vld [vmem:[#allocation15 + $0x120] sm:$0xff] }
  0xf9   : > { %5659 = vst [vmem:[#allocation127_spill] sm:$0xff] %v3927_v49 }
  0xfa   : > { %807 = vmatmul.f32.vlgmr.msrb.gmra.mxu0 %v662_v63  ;;  %827 = vmatmul.f32.vlgmr.msrb.gmra.mxu1 %v662_v63  ;;  %5660 = vst [vmem:[#allocation128_spill] sm:$0xff] %v3931_v54 }
  0xfb   : > { %847 = vmatmul.f32.vlgmr.msrb.gmra.mxu2 %v662_v63  ;;  %867 = vmatmul.f32.vlgmr.msrb.gmra.mxu3 %v662_v63 }
  0xfc   : > { %1028 = vmatpush.msrb.mxu0 %v3863_v47  ;;  %1048 = vmatpush.msrb.mxu1 %v3865_v48 }
  0xfd   : > { %1068 = vmatpush.msrb.mxu2 %v3867_v45  ;;  %1088 = vmatpush.msrb.mxu3 %v3869_v46 }
  0xfe   : > { %1029 = vmatpush.msrb.mxu0 %v3871_v50  ;;  %1049 = vmatpush.msrb.mxu1 %v3873_v51 }
  0xff   : > { %1069 = vmatpush.msrb.mxu2 %v3877_v43  ;;  %1089 = vmatpush.msrb.mxu3 %v3879_v60 }
 0x100   : > { %1030 = vmatpush.msrb.mxu0 %v3883_v58  ;;  %1050 = vmatpush.msrb.mxu1 %v3885_v57 }
 0x101   : > { %1070 = vmatpush.msrb.mxu2 %v3889_v1  ;;  %1090 = vmatpush.msrb.mxu3 %v3891_v0 }
 0x102   : > { %1031 = vmatpush.msrb.mxu0 %v3895_v61  ;;  %1051 = vmatpush.msrb.mxu1 %v3897_v3 }
 0x103   : > { %1071 = vmatpush.msrb.mxu2 %v3901_v53  ;;  %1091 = vmatpush.msrb.mxu3 %v3903_v2  ;;  %v3933_v2 = vld [vmem:[#allocation15 + $0x128] sm:$0xff] }
 0x104   : > { %887 = vmatmul.f32.vlgmr.msra.gmra.mxu0 %v662_v63  ;;  %907 = vmatmul.f32.vlgmr.msra.gmra.mxu1 %v662_v63  ;;  %5661 = vst [vmem:[#allocation129_spill] sm:$0xff] %v3933_v2 }
 0x105   : > { %927 = vmatmul.f32.vlgmr.msra.gmra.mxu2 %v662_v63  ;;  %947 = vmatmul.f32.vlgmr.msra.gmra.mxu3 %v662_v63  ;;  %v3937_v63 = vld [vmem:[#allocation15 + $0x130] sm:$0xff] }
 0x106   : > { %1032 = vmatpush.msrb.mxu0 %v3911_v62  ;;  %1052 = vmatpush.msrb.mxu1 %v3913_v5  ;;  %5662 = vst [vmem:[#allocation130_spill] sm:$0xff] %v3937_v63  ;;  %v3939_v62 = vld [vmem:[#allocation15 + $0x138] sm:$0xff]  ;;  %v3943_v5 = vld [vmem:[#allocation15 + $0x100] sm:$0xff] }
 0x107   : > { %1072 = vmatpush.msrb.mxu2 %v3915_v55  ;;  %1092 = vmatpush.msrb.mxu3 %v3917_v59  ;;  %5663 = vst [vmem:[#allocation131_spill] sm:$0xff] %v3939_v62  ;;  %v3945_v55 = vld [vmem:[#allocation15 + $0x108] sm:$0xff]  ;;  %v3949_v59 = vld [vmem:[#allocation15 + $0x110] sm:$0xff] }
 0x108   : > { %1033 = vmatpush.msrb.mxu0 %v3919_v56  ;;  %1053 = vmatpush.msrb.mxu1 %v3921_v52  ;;  %5664 = vst [vmem:[#allocation132_spill] sm:$0xff] %v3943_v5  ;;  %v3951_v56 = vld [vmem:[#allocation15 + $0x118] sm:$0xff]  ;;  %v3955_v52 = vld [vmem:[#allocation15 + $0xe0] sm:$0xff] }
 0x109   : > { %1073 = vmatpush.msrb.mxu2 %v3925_v4  ;;  %1093 = vmatpush.msrb.mxu3 %v3927_v49  ;;  %5665 = vst [vmem:[#allocation133_spill] sm:$0xff] %v3945_v55  ;;  %v3957_v4 = vld [vmem:[#allocation15 + $0xe8] sm:$0xff]  ;;  %v3961_v49 = vld [vmem:[#allocation15 + $0xf0] sm:$0xff] }
 0x10a   : > { %1034 = vmatpush.msrb.mxu0 %v3931_v54  ;;  %1054 = vmatpush.msrb.mxu1 %v3933_v2  ;;  %5666 = vst [vmem:[#allocation134_spill] sm:$0xff] %v3949_v59  ;;  %v3963_v54 = vld [vmem:[#allocation15 + $0xf8] sm:$0xff]  ;;  %v3967_v2 = vld [vmem:[#allocation15 + $0xc0] sm:$0xff] }
 0x10b   : > { %5667 = vst [vmem:[#allocation135_spill] sm:$0xff] %v3951_v56  ;;  %1074 = vmatpush.msrb.mxu2 %v3937_v63  ;;  %1094 = vmatpush.msrb.mxu3 %v3939_v62  ;;  %v3969_v63 = vld [vmem:[#allocation15 + $0xc8] sm:$0xff]  ;;  %v3973_v62 = vld [vmem:[#allocation15 + $0xd0] sm:$0xff] }
 0x10c   : > { %5668 = vst [vmem:[#allocation136_spill] sm:$0xff] %v3955_v52  ;;  %1035 = vmatpush.msrb.mxu0 %v3943_v5  ;;  %1055 = vmatpush.msrb.mxu1 %v3945_v55  ;;  %v3975_v5 = vld [vmem:[#allocation15 + $0xd8] sm:$0xff]  ;;  %v3979_v55 = vld [vmem:[#allocation15 + $0xa0] sm:$0xff] }
 0x10d   : > { %5669 = vst [vmem:[#allocation137_spill] sm:$0xff] %v3957_v4  ;;  %1075 = vmatpush.msrb.mxu2 %v3949_v59  ;;  %1095 = vmatpush.msrb.mxu3 %v3951_v56  ;;  %v3981_v59 = vld [vmem:[#allocation15 + $0xa8] sm:$0xff]  ;;  %v3985_v56 = vld [vmem:[#allocation15 + $0xb0] sm:$0xff] }
 0x10e   : > { %5670 = vst [vmem:[#allocation138_spill] sm:$0xff] %v3961_v49  ;;  %1036 = vmatpush.msrb.mxu0 %v3955_v52  ;;  %1056 = vmatpush.msrb.mxu1 %v3957_v4  ;;  %v3987_v52 = vld [vmem:[#allocation15 + $0xb8] sm:$0xff]  ;;  %v3991_v4 = vld [vmem:[#allocation15 + $0x80] sm:$0xff] }
 0x10f   : > { %5671 = vst [vmem:[#allocation139_spill] sm:$0xff] %v3963_v54  ;;  %1076 = vmatpush.msrb.mxu2 %v3961_v49  ;;  %1096 = vmatpush.msrb.mxu3 %v3963_v54  ;;  %v3993_v49 = vld [vmem:[#allocation15 + $0x88] sm:$0xff]  ;;  %v3997_v54 = vld [vmem:[#allocation15 + $0x90] sm:$0xff] }
 0x110   : > { %5672 = vst [vmem:[#allocation140_spill] sm:$0xff] %v3967_v2  ;;  %1037 = vmatpush.msrb.mxu0 %v3967_v2  ;;  %1057 = vmatpush.msrb.mxu1 %v3969_v63  ;;  %v3999_v2 = vld [vmem:[#allocation15 + $0x98] sm:$0xff] }
 0x111   : > { %5673 = vst [vmem:[#allocation141_spill] sm:$0xff] %v3969_v63  ;;  %1077 = vmatpush.msrb.mxu2 %v3973_v62  ;;  %1097 = vmatpush.msrb.mxu3 %v3975_v5  ;;  %v4003_v63 = vld [vmem:[#allocation15 + $0x60] sm:$0xff] }
 0x112   : > { %5674 = vst [vmem:[#allocation142_spill] sm:$0xff] %v3973_v62  ;;  %1038 = vmatpush.msrb.mxu0 %v3979_v55  ;;  %1058 = vmatpush.msrb.mxu1 %v3981_v59  ;;  %v4005_v62 = vld [vmem:[#allocation15 + $0x68] sm:$0xff] }
 0x113   : > { %5675 = vst [vmem:[#allocation143_spill] sm:$0xff] %v3975_v5  ;;  %1078 = vmatpush.msrb.mxu2 %v3985_v56  ;;  %1098 = vmatpush.msrb.mxu3 %v3987_v52  ;;  %v4009_v5 = vld [vmem:[#allocation15 + $0x70] sm:$0xff] }
 0x114   : > { %5676 = vst [vmem:[#allocation144_spill] sm:$0xff] %v3979_v55  ;;  %1039 = vmatpush.msrb.mxu0 %v3991_v4  ;;  %1059 = vmatpush.msrb.mxu1 %v3993_v49  ;;  %v4011_v55 = vld [vmem:[#allocation15 + $0x78] sm:$0xff] }
 0x115   : > { %5677 = vst [vmem:[#allocation145_spill] sm:$0xff] %v3981_v59  ;;  %1079 = vmatpush.msrb.mxu2 %v3997_v54  ;;  %1099 = vmatpush.msrb.mxu3 %v3999_v2  ;;  %v4015_v59 = vld [vmem:[#allocation15 + $0x40] sm:$0xff] }
 0x116   : > { %5678 = vst [vmem:[#allocation146_spill] sm:$0xff] %v3985_v56  ;;  %v4017_v56 = vld [vmem:[#allocation15 + $0x48] sm:$0xff]  ;;  %1040 = vmatpush.msrb.mxu0 %v4003_v63  ;;  %1060 = vmatpush.msrb.mxu1 %v4005_v62 }
 0x117   : > { %5679 = vst [vmem:[#allocation147_spill] sm:$0xff] %v3987_v52  ;;  %v4021_v52 = vld [vmem:[#allocation15 + $0x50] sm:$0xff]  ;;  %1080 = vmatpush.msrb.mxu2 %v4009_v5  ;;  %1100 = vmatpush.msrb.mxu3 %v4011_v55 }
 0x118   : > { %5680 = vst [vmem:[#allocation148_spill] sm:$0xff] %v3991_v4  ;;  %v4023_v4 = vld [vmem:[#allocation15 + $0x58] sm:$0xff]  ;;  %1041 = vmatpush.msrb.mxu0 %v4015_v59  ;;  %1061 = vmatpush.msrb.mxu1 %v4017_v56 }
 0x119   : > { %5681 = vst [vmem:[#allocation149_spill] sm:$0xff] %v3993_v49  ;;  %v4027_v49 = vld [vmem:[#allocation15 + $0x20] sm:$0xff]  ;;  %1081 = vmatpush.msrb.mxu2 %v4021_v52  ;;  %1101 = vmatpush.msrb.mxu3 %v4023_v4 }
 0x11a   : > { %5682 = vst [vmem:[#allocation150_spill] sm:$0xff] %v3997_v54  ;;  %v4029_v54 = vld [vmem:[#allocation15 + $0x28] sm:$0xff]  ;;  %1042 = vmatpush.msrb.mxu0 %v4027_v49 }
 0x11b   : > { %5683 = vst [vmem:[#allocation151_spill] sm:$0xff] %v3999_v2  ;;  %v4033_v2 = vld [vmem:[#allocation15 + $0x30] sm:$0xff]  ;;  %1062 = vmatpush.msrb.mxu1 %v4029_v54 }
 0x11c   : > { %5684 = vst [vmem:[#allocation152_spill] sm:$0xff] %v4003_v63  ;;  %v4035_v63 = vld [vmem:[#allocation15 + $0x38] sm:$0xff]  ;;  %1082 = vmatpush.msrb.mxu2 %v4033_v2 }
 0x11d   : > { %5685 = vst [vmem:[#allocation153_spill] sm:$0xff] %v4005_v62  ;;  %v4039_v62 = vld [vmem:[#allocation15] sm:$0xff]  ;;  %1102 = vmatpush.msrb.mxu3 %v4035_v63 }
 0x11e   : > { %5686 = vst [vmem:[#allocation154_spill] sm:$0xff] %v4009_v5  ;;  %v4041_v5 = vld [vmem:[#allocation15 + $0x8] sm:$0xff]  ;;  %1043 = vmatpush.msrb.mxu0 %v4039_v62 }
 0x11f   : > { %5687 = vst [vmem:[#allocation155_spill] sm:$0xff] %v4011_v55  ;;  %v4045_v55 = vld [vmem:[#allocation15 + $0x10] sm:$0xff]  ;;  %1063 = vmatpush.msrb.mxu1 %v4041_v5 }
 0x120   : > { %5688 = vst [vmem:[#allocation156_spill] sm:$0xff] %v4015_v59  ;;  %v4047_v59 = vld [vmem:[#allocation15 + $0x18] sm:$0xff]  ;;  %1083 = vmatpush.msrb.mxu2 %v4045_v55  ;;  %1247 = vmatpush.msra.mxu0 %v3425_v6  ;;  %v5690_v6 = vld [vmem:[#allocation24_spill] sm:$0xff] }
 0x121   : > { %5689 = vst [vmem:[#allocation157_spill] sm:$0xff] %v4017_v56  ;;  %v590_v56 = vld [vmem:[#allocation5] sm:$0xff]  ;;  %1103 = vmatpush.msrb.mxu3 %v4047_v59  ;;  %1267 = vmatpush.msra.mxu1 %v3428_v7 }
 0x122   : > { %1044 = vmatmul.f32.vlgmr.msrb.gmra.mxu0 %v590_v56  ;;  %1064 = vmatmul.f32.vlgmr.msrb.gmra.mxu1 %v590_v56  ;;  %v5691_v7 = vld [vmem:[#allocation25_spill] sm:$0xff] }
 0x123   : > { %1084 = vmatmul.f32.vlgmr.msrb.gmra.mxu2 %v590_v56  ;;  %1104 = vmatmul.f32.vlgmr.msrb.gmra.mxu3 %v590_v56  ;;  %v5727_v56 = vld [vmem:[#allocation61_spill] sm:$0xff] }
 0x124   : > { %1287 = vmatpush.msra.mxu2 %v3432_v8  ;;  %1307 = vmatpush.msra.mxu3 %v3434_v9  ;;  %v5692_v8 = vld [vmem:[#allocation26_spill] sm:$0xff]  ;;  %v5693_v9 = vld [vmem:[#allocation27_spill] sm:$0xff] }
 0x125   : > { %1248 = vmatpush.msra.mxu0 %v3437_v10  ;;  %1268 = vmatpush.msra.mxu1 %v3439_v11  ;;  %v5694_v10 = vld [vmem:[#allocation28_spill] sm:$0xff]  ;;  %v5695_v11 = vld [vmem:[#allocation29_spill] sm:$0xff] }
 0x126   : > { %1288 = vmatpush.msra.mxu2 %v3443_v12  ;;  %1308 = vmatpush.msra.mxu3 %v3445_v13  ;;  %v5696_v12 = vld [vmem:[#allocation30_spill] sm:$0xff]  ;;  %v5697_v13 = vld [vmem:[#allocation31_spill] sm:$0xff] }
 0x127   : > { %1249 = vmatpush.msra.mxu0 %v3449_v14  ;;  %1269 = vmatpush.msra.mxu1 %v3451_v15  ;;  %v5698_v14 = vld [vmem:[#allocation32_spill] sm:$0xff]  ;;  %v5699_v15 = vld [vmem:[#allocation33_spill] sm:$0xff] }
 0x128   : > { %1289 = vmatpush.msra.mxu2 %v3455_v16  ;;  %1309 = vmatpush.msra.mxu3 %v3457_v17  ;;  %v5700_v16 = vld [vmem:[#allocation34_spill] sm:$0xff]  ;;  %v5701_v17 = vld [vmem:[#allocation35_spill] sm:$0xff] }
 0x129   : > { %1250 = vmatpush.msra.mxu0 %v3461_v18  ;;  %1270 = vmatpush.msra.mxu1 %v3463_v19  ;;  %v5702_v18 = vld [vmem:[#allocation36_spill] sm:$0xff]  ;;  %v5703_v19 = vld [vmem:[#allocation37_spill] sm:$0xff] }
 0x12a   : > { %1290 = vmatpush.msra.mxu2 %v3467_v20  ;;  %1310 = vmatpush.msra.mxu3 %v3469_v21  ;;  %v5704_v20 = vld [vmem:[#allocation38_spill] sm:$0xff]  ;;  %v5705_v21 = vld [vmem:[#allocation39_spill] sm:$0xff] }
 0x12b   : > { %1251 = vmatpush.msra.mxu0 %v3473_v22  ;;  %1271 = vmatpush.msra.mxu1 %v3475_v23  ;;  %v5706_v22 = vld [vmem:[#allocation40_spill] sm:$0xff]  ;;  %v5707_v23 = vld [vmem:[#allocation41_spill] sm:$0xff] }
 0x12c   : > { %1291 = vmatpush.msra.mxu2 %v3479_v24  ;;  %1311 = vmatpush.msra.mxu3 %v3481_v25  ;;  %v5708_v24 = vld [vmem:[#allocation42_spill] sm:$0xff]  ;;  %v5709_v25 = vld [vmem:[#allocation43_spill] sm:$0xff] }
 0x12d   : > { %1252 = vmatpush.msra.mxu0 %v3485_v26  ;;  %1272 = vmatpush.msra.mxu1 %v3487_v27  ;;  %v5710_v26 = vld [vmem:[#allocation44_spill] sm:$0xff]  ;;  %v5711_v27 = vld [vmem:[#allocation45_spill] sm:$0xff] }
 0x12e   : > { %1292 = vmatpush.msra.mxu2 %v3491_v28  ;;  %1312 = vmatpush.msra.mxu3 %v3493_v29  ;;  %v5712_v28 = vld [vmem:[#allocation46_spill] sm:$0xff]  ;;  %v5713_v29 = vld [vmem:[#allocation47_spill] sm:$0xff] }
 0x12f   : > { %1253 = vmatpush.msra.mxu0 %v3497_v30  ;;  %1273 = vmatpush.msra.mxu1 %v3499_v31  ;;  %v5714_v30 = vld [vmem:[#allocation48_spill] sm:$0xff]  ;;  %v5715_v31 = vld [vmem:[#allocation49_spill] sm:$0xff] }
 0x130   : > { %1293 = vmatpush.msra.mxu2 %v3503_v32  ;;  %1313 = vmatpush.msra.mxu3 %v3505_v33  ;;  %v5716_v32 = vld [vmem:[#allocation50_spill] sm:$0xff]  ;;  %v5717_v33 = vld [vmem:[#allocation51_spill] sm:$0xff] }
 0x131   : > { %1254 = vmatpush.msra.mxu0 %v3509_v34  ;;  %1274 = vmatpush.msra.mxu1 %v3511_v35  ;;  %v5718_v34 = vld [vmem:[#allocation52_spill] sm:$0xff]  ;;  %v5719_v35 = vld [vmem:[#allocation53_spill] sm:$0xff] }
 0x132   : > { %1294 = vmatpush.msra.mxu2 %v3515_v36  ;;  %1314 = vmatpush.msra.mxu3 %v3517_v37  ;;  %v5720_v36 = vld [vmem:[#allocation54_spill] sm:$0xff]  ;;  %v5721_v37 = vld [vmem:[#allocation55_spill] sm:$0xff] }
 0x133   : > { %1255 = vmatpush.msra.mxu0 %v3525_v38  ;;  %1275 = vmatpush.msra.mxu1 %v3527_v39  ;;  %v5722_v38 = vld [vmem:[#allocation56_spill] sm:$0xff]  ;;  %v5723_v39 = vld [vmem:[#allocation57_spill] sm:$0xff] }
 0x134   : > { %1295 = vmatpush.msra.mxu2 %v3529_v40  ;;  %1315 = vmatpush.msra.mxu3 %v3533_v41  ;;  %v5724_v40 = vld [vmem:[#allocation58_spill] sm:$0xff]  ;;  %v5725_v41 = vld [vmem:[#allocation59_spill] sm:$0xff] }
 0x135   : > { %1256 = vmatpush.msra.mxu0 %v3537_v42  ;;  %1276 = vmatpush.msra.mxu1 %v5690_v6  ;;  %v5726_v42 = vld [vmem:[#allocation60_spill] sm:$0xff]  ;;  %v5728_v6 = vld [vmem:[#allocation62_spill] sm:$0xff] }
 0x136   : > { %1296 = vmatpush.msra.mxu2 %v5691_v7  ;;  %1316 = vmatpush.msra.mxu3 %v5692_v8  ;;  %v5729_v7 = vld [vmem:[#allocation63_spill] sm:$0xff]  ;;  %v5730_v8 = vld [vmem:[#allocation64_spill] sm:$0xff] }
 0x137   : > { %1257 = vmatpush.msra.mxu0 %v5693_v9  ;;  %1277 = vmatpush.msra.mxu1 %v5694_v10  ;;  %v5731_v9 = vld [vmem:[#allocation65_spill] sm:$0xff]  ;;  %v5732_v10 = vld [vmem:[#allocation66_spill] sm:$0xff] }
 0x138   : > { %1297 = vmatpush.msra.mxu2 %v5695_v11  ;;  %1317 = vmatpush.msra.mxu3 %v5696_v12  ;;  %v5733_v11 = vld [vmem:[#allocation67_spill] sm:$0xff]  ;;  %v5734_v12 = vld [vmem:[#allocation68_spill] sm:$0xff] }
 0x139   : > { %1258 = vmatpush.msra.mxu0 %v5697_v13  ;;  %1278 = vmatpush.msra.mxu1 %v5698_v14  ;;  %v5735_v13 = vld [vmem:[#allocation69_spill] sm:$0xff]  ;;  %v5736_v14 = vld [vmem:[#allocation70_spill] sm:$0xff] }
 0x13a   : > { %1298 = vmatpush.msra.mxu2 %v5699_v15  ;;  %1318 = vmatpush.msra.mxu3 %v5700_v16  ;;  %v5737_v15 = vld [vmem:[#allocation71_spill] sm:$0xff]  ;;  %v5738_v16 = vld [vmem:[#allocation72_spill] sm:$0xff] }
 0x13b   : > { %1259 = vmatpush.msra.mxu0 %v5701_v17  ;;  %1279 = vmatpush.msra.mxu1 %v5702_v18  ;;  %v5739_v17 = vld [vmem:[#allocation73_spill] sm:$0xff]  ;;  %v5740_v18 = vld [vmem:[#allocation74_spill] sm:$0xff] }
 0x13c   : > { %1299 = vmatpush.msra.mxu2 %v5703_v19  ;;  %1319 = vmatpush.msra.mxu3 %v5704_v20  ;;  %v5741_v19 = vld [vmem:[#allocation75_spill] sm:$0xff]  ;;  %v5742_v20 = vld [vmem:[#allocation76_spill] sm:$0xff] }
 0x13d   : > { %1260 = vmatpush.msra.mxu0 %v5705_v21  ;;  %1280 = vmatpush.msra.mxu1 %v5706_v22  ;;  %v5743_v21 = vld [vmem:[#allocation78_spill] sm:$0xff]  ;;  %v5744_v22 = vld [vmem:[#allocation79_spill] sm:$0xff] }
 0x13e   : > { %1300 = vmatpush.msra.mxu2 %v5707_v23  ;;  %1320 = vmatpush.msra.mxu3 %v5708_v24  ;;  %v5745_v23 = vld [vmem:[#allocation81_spill] sm:$0xff]  ;;  %v5746_v24 = vld [vmem:[#allocation82_spill] sm:$0xff] }
 0x13f   : > { %1261 = vmatpush.msra.mxu0 %v5709_v25  ;;  %1281 = vmatpush.msra.mxu1 %v5710_v26  ;;  %v5747_v25 = vld [vmem:[#allocation83_spill] sm:$0xff]  ;;  %v5748_v26 = vld [vmem:[#allocation84_spill] sm:$0xff] }
 0x140   : > { %1301 = vmatpush.msra.mxu2 %v5711_v27  ;;  %1321 = vmatpush.msra.mxu3 %v5712_v28  ;;  %v5749_v27 = vld [vmem:[#allocation85_spill] sm:$0xff]  ;;  %v5750_v28 = vld [vmem:[#allocation86_spill] sm:$0xff] }
 0x141   : > { %1262 = vmatpush.msra.mxu0 %v5713_v29  ;;  %1282 = vmatpush.msra.mxu1 %v5714_v30  ;;  %v5751_v29 = vld [vmem:[#allocation87_spill] sm:$0xff]  ;;  %v5752_v30 = vld [vmem:[#allocation88_spill] sm:$0xff] }
 0x142   : > { %1302 = vmatpush.msra.mxu2 %v5715_v31  ;;  %1322 = vmatpush.msra.mxu3 %v5716_v32  ;;  %v5753_v31 = vld [vmem:[#allocation90_spill] sm:$0xff]  ;;  %v5754_v32 = vld [vmem:[#allocation91_spill] sm:$0xff] }
 0x143   : > { %1327 = vmatpush.msrb.mxu0 %v5717_v33  ;;  %1347 = vmatpush.msrb.mxu1 %v5718_v34  ;;  %v5755_v33 = vld [vmem:[#allocation92_spill] sm:$0xff]  ;;  %v5756_v34 = vld [vmem:[#allocation93_spill] sm:$0xff] }
 0x144   : > { %1367 = vmatpush.msrb.mxu2 %v5719_v35  ;;  %1387 = vmatpush.msrb.mxu3 %v5720_v36  ;;  %v5757_v35 = vld [vmem:[#allocation94_spill] sm:$0xff]  ;;  %v5758_v36 = vld [vmem:[#allocation95_spill] sm:$0xff] }
 0x145   : > { %1328 = vmatpush.msrb.mxu0 %v5721_v37  ;;  %1348 = vmatpush.msrb.mxu1 %v5722_v38  ;;  %v5759_v37 = vld [vmem:[#allocation96_spill] sm:$0xff]  ;;  %v5760_v38 = vld [vmem:[#allocation97_spill] sm:$0xff] }
 0x146   : > { %1368 = vmatpush.msrb.mxu2 %v5723_v39  ;;  %1388 = vmatpush.msrb.mxu3 %v5724_v40  ;;  %v5761_v39 = vld [vmem:[#allocation98_spill] sm:$0xff]  ;;  %v5762_v40 = vld [vmem:[#allocation99_spill] sm:$0xff] }
 0x147   : > { %1329 = vmatpush.msrb.mxu0 %v5725_v41  ;;  %1349 = vmatpush.msrb.mxu1 %v5726_v42  ;;  %v5763_v41 = vld [vmem:[#allocation100_spill] sm:$0xff]  ;;  %v5764_v42 = vld [vmem:[#allocation101_spill] sm:$0xff] }
 0x148   : > { %1369 = vmatpush.msrb.mxu2 %v5727_v56  ;;  %1389 = vmatpush.msrb.mxu3 %v5728_v6  ;;  %v5765_v56 = vld [vmem:[#allocation103_spill] sm:$0xff]  ;;  %v5766_v6 = vld [vmem:[#allocation104_spill] sm:$0xff] }
 0x149   : > { %1330 = vmatpush.msrb.mxu0 %v5729_v7  ;;  %1350 = vmatpush.msrb.mxu1 %v5730_v8  ;;  %v446_v7 = vpop.f32.mrf.mxu0  ;;  %v475_v8 = vpop.f32.mrf.mxu1 }
 0x14a   : > { %1370 = vmatpush.msrb.mxu2 %v5731_v9  ;;  %1390 = vmatpush.msrb.mxu3 %v5732_v10  ;;  %v5767_v9 = vld [vmem:[#allocation105_spill] sm:$0xff]  ;;  %v5768_v10 = vld [vmem:[#allocation106_spill] sm:$0xff] }
 0x14b   : > { %1331 = vmatpush.msrb.mxu0 %v5733_v11  ;;  %1351 = vmatpush.msrb.mxu1 %v5734_v12  ;;  %v5769_v11 = vld [vmem:[#allocation107_spill] sm:$0xff]  ;;  %v5770_v12 = vld [vmem:[#allocation108_spill] sm:$0xff] }
 0x14c   : > { %1371 = vmatpush.msrb.mxu2 %v5735_v13  ;;  %1391 = vmatpush.msrb.mxu3 %v5736_v14  ;;  %v5771_v13 = vld [vmem:[#allocation109_spill] sm:$0xff]  ;;  %v5772_v14 = vld [vmem:[#allocation110_spill] sm:$0xff] }
 0x14d   : > { %1332 = vmatpush.msrb.mxu0 %v5737_v15  ;;  %1352 = vmatpush.msrb.mxu1 %v5738_v16  ;;  %v5773_v15 = vld [vmem:[#allocation111_spill] sm:$0xff]  ;;  %v5774_v16 = vld [vmem:[#allocation112_spill] sm:$0xff] }
 0x14e   : > { %1372 = vmatpush.msrb.mxu2 %v5739_v17  ;;  %1392 = vmatpush.msrb.mxu3 %v5740_v18  ;;  %v5775_v17 = vld [vmem:[#allocation113_spill] sm:$0xff]  ;;  %v5776_v18 = vld [vmem:[#allocation114_spill] sm:$0xff] }
 0x14f   : > { %1333 = vmatpush.msrb.mxu0 %v5741_v19  ;;  %1353 = vmatpush.msrb.mxu1 %v5742_v20  ;;  %v5777_v19 = vld [vmem:[#allocation115_spill] sm:$0xff]  ;;  %v5778_v20 = vld [vmem:[#allocation116_spill] sm:$0xff] }
 0x150   : > { %1373 = vmatpush.msrb.mxu2 %v5743_v21  ;;  %1393 = vmatpush.msrb.mxu3 %v5744_v22  ;;  %v5779_v21 = vld [vmem:[#allocation117_spill] sm:$0xff]  ;;  %v5780_v22 = vld [vmem:[#allocation118_spill] sm:$0xff] }
 0x151   : > { %1334 = vmatpush.msrb.mxu0 %v5745_v23  ;;  %1354 = vmatpush.msrb.mxu1 %v5746_v24  ;;  %v533_v23 = vpop.f32.mrf.mxu3  ;;  %v4183_v24 = vpop.f32.mrf.mxu0 }
 0x152   : > { %1374 = vmatpush.msrb.mxu2 %v5747_v25  ;;  %1394 = vmatpush.msrb.mxu3 %v5748_v26  ;;  %v4185_v25 = vpop.f32.mrf.mxu1  ;;  %v504_v26 = vpop.f32.mrf.mxu2 }
 0x153   : > { %1335 = vmatpush.msrb.mxu0 %v5749_v27  ;;  %1355 = vmatpush.msrb.mxu1 %v5750_v28 }
 0x154   : > { %1375 = vmatpush.msrb.mxu2 %v5751_v29  ;;  %1395 = vmatpush.msrb.mxu3 %v5752_v30 }
 0x155   : > { %1336 = vmatpush.msrb.mxu0 %v5753_v31  ;;  %1356 = vmatpush.msrb.mxu1 %v5754_v32  ;;  %v5784_v32 = vld [vmem:[#allocation77_spill] sm:$0xff] }
 0x156   : > { %1376 = vmatpush.msrb.mxu2 %v5755_v33  ;;  %1396 = vmatpush.msrb.mxu3 %v5756_v34  ;;  %v556_v33 = vadd.f32 %v5784_v32, %v446_v7  ;;  %v5785_v34 = vld [vmem:[#allocation80_spill] sm:$0xff] }
 0x157   : > { %1337 = vmatpush.msrb.mxu0 %v5757_v35  ;;  %1357 = vmatpush.msrb.mxu1 %v5758_v36  ;;  %v557_v35 = vadd.f32 %v5785_v34, %v475_v8 }
 0x158   : > { %1377 = vmatpush.msrb.mxu2 %v5759_v37  ;;  %1397 = vmatpush.msrb.mxu3 %v5760_v38 }
 0x159   : > { %1338 = vmatpush.msrb.mxu0 %v5761_v39  ;;  %1358 = vmatpush.msrb.mxu1 %v5762_v40  ;;  %v4187_v27 = vpop.f32.mrf.mxu3  ;;  %v4189_v28 = vpop.f32.mrf.mxu0 }
 0x15a   : > { %1378 = vmatpush.msrb.mxu2 %v5763_v41  ;;  %1398 = vmatpush.msrb.mxu3 %v5764_v42  ;;  %5781 = vst [vmem:[#allocation24_spill] sm:$0xff] %v4189_v28  ;;  %v4191_v29 = vpop.f32.mrf.mxu1  ;;  %v4193_v30 = vpop.f32.mrf.mxu2  ;;  %v5786_v42 = vld [vmem:[#allocation89_spill] sm:$0xff]  ;;  %v4479_v28 = vld [vmem:[#allocation13 + $0xc8] sm:$0xff] }
 0x15b   : > { %1339 = vmatpush.msrb.mxu0 %v5765_v56  ;;  %1359 = vmatpush.msrb.mxu1 %v5766_v6  ;;  %5782 = vst [vmem:[#allocation25_spill] sm:$0xff] %v4191_v29  ;;  %v559_v56 = vadd.f32 %v5786_v42, %v533_v23  ;;  %v4476_v29 = vld [vmem:[#allocation13 + $0xc0] sm:$0xff] }
 0x15c   : > { %1379 = vmatpush.msrb.mxu2 %v5767_v9  ;;  %1399 = vmatpush.msrb.mxu3 %v5768_v10  ;;  %5845 = vst [vmem:[#allocation45_spill] sm:$0xff] %v4476_v29 }
 0x15d   : > { %1340 = vmatpush.msrb.mxu0 %v5769_v11  ;;  %1360 = vmatpush.msrb.mxu1 %v5770_v12  ;;  %5846 = vst [vmem:[#allocation46_spill] sm:$0xff] %v4479_v28 }
 0x15e   : > { %1380 = vmatpush.msrb.mxu2 %v5771_v13  ;;  %1400 = vmatpush.msrb.mxu3 %v5772_v14 }
 0x15f   : > { %1341 = vmatpush.msrb.mxu0 %v5773_v15  ;;  %1361 = vmatpush.msrb.mxu1 %v5774_v16  ;;  %v5788_v16 = vld [vmem:[#allocation102_spill] sm:$0xff] }
 0x160   : > { %1381 = vmatpush.msrb.mxu2 %v5775_v17  ;;  %1401 = vmatpush.msrb.mxu3 %v5776_v18  ;;  %v558_v17 = vadd.f32 %v5788_v16, %v504_v26 }
 0x161   : > { %1342 = vmatpush.msrb.mxu0 %v5777_v19  ;;  %1362 = vmatpush.msrb.mxu1 %v5778_v20  ;;  %v4195_v31 = vpop.f32.mrf.mxu3 }
 0x162   : > { %1382 = vmatpush.msrb.mxu2 %v5779_v21  ;;  %1402 = vmatpush.msrb.mxu3 %v5780_v22  ;;  %5783 = vst [vmem:[#allocation26_spill] sm:$0xff] %v4195_v31  ;;  %v4200_v6 = vpop.f32.mrf.mxu2  ;;  %v4473_v31 = vld [vmem:[#allocation13 + $0x118] sm:$0xff] }
 0x163   : > { %5787 = vst [vmem:[#allocation27_spill] sm:$0xff] %v4200_v6 }
 0x164   : > { %5844 = vst [vmem:[#allocation44_spill] sm:$0xff] %v4473_v31 }
 0x177   : > { %v808_v36 = vpop.f32.mrf.mxu0  ;;  %v828_v37 = vpop.f32.mrf.mxu1 }
 0x178   : > { %v1180_v38 = vadd.f32 %v808_v36, %v556_v33  ;;  %v1181_v39 = vadd.f32 %v828_v37, %v557_v35 }
 0x17a   : > { %v2524_v40 = vmul.f32 -1.442695, %v1180_v38  ;;  %v2525_v41 = vmul.f32 -1.442695, %v1181_v39 }
 0x17c   : > { %2668 = vpow2.f32 %v2524_v40 }
 0x17d   : > { %2670 = vpow2.f32 %v2525_v41 }
 0x17e   : > { %v868_v9 = vpop.f32.mrf.mxu3  ;;  %v848_v14 = vpop.f32.mrf.mxu2 }
 0x17f   : > { %v1183_v10 = vadd.f32 %v868_v9, %v559_v56  ;;  %v1182_v20 = vadd.f32 %v848_v14, %v558_v17 }
 0x181   : > { %v2526_v11 = vmul.f32 -1.442695, %v1183_v10  ;;  %v908_v14 = vpop.f32.mrf.mxu1 }
 0x182   : > { %v2669_v12 = vpop.eup %2668 }
 0x183   : > { %v2671_v13 = vpop.eup %2670  ;;  %v1187_v7 = vadd.f32 1.0, %v2669_v12  ;;  %2672 = vpow2.f32 %v2526_v11  ;;  %v4210_v12 = vld [vmem:[%s5264_s5] sm:$0xf] }
 0x184   : > { %v1206_v8 = vadd.f32 1.0, %v2671_v13  ;;  %v888_v13 = vpop.f32.mrf.mxu0 }
 0x185   : > { %2674 = vrcp.f32 %v1187_v7  ;;  %v1199_v36 = vand.u32 2147483648, %v1187_v7  ;;  %v1197_v39 = vand.u32 2147483647, %v1187_v7  ;;  %vm1193_vm15 = vweird.f32 %v1187_v7 }
 0x186   : > { %2676 = vrcp.f32 %v1206_v8  ;;  %v1218_v37 = vand.u32 2147483648, %v1206_v8  ;;  %v1216_v26 = vand.u32 2147483647, %v1206_v8  ;;  %vm1212_vm0 = vweird.f32 %v1206_v8 }
 0x187   : > { %v1200_v9 = vor.u32 1.1754944e-38, %v1199_v36  ;;  %vm1198_vm3 = vcmp.eq.f32.partialorder %v1197_v39, 8.507059e+37  ;;  %v4216_v36 = vperm.slane %v4210_v12, 1 }
 0x188   : > { %vm1217_vm4 = vcmp.eq.f32.partialorder %v1216_v26, 8.507059e+37  ;;  %v948_v39 = vpop.f32.mrf.mxu3 }
 0x189   : > { %v2673_v15 = vpop.eup %2672 }
 0x18a   : > { %v4203_v18 = vadd.f32 1.0, %v2673_v15  ;;  %v1219_v15 = vor.u32 1.1754944e-38, %v1218_v37 }
 0x18b   : > { %v2675_v19 = vpop.eup %2674 }
 0x18c   : > { %v2677_v21 = vpop.eup %2676  ;;  %v1189_v22 = vmul.f32 %v2675_v19, %v1187_v7  ;;  %2678 = vrcp.f32 %v4203_v18  ;;  %vm1194_vm13 = vweird.f32 %v2675_v19  ;;  %v1238_v26 = vand.u32 2147483648, %v4203_v18 }
 0x18d   : > { %v1208_v23 = vmul.f32 %v2677_v21, %v1206_v8  ;;  %2680 = vtanh.f32 %v1182_v20  ;;  %vm1213_vm14 = vweird.f32 %v2677_v21  ;;  %vm1195_vm1 = vmor %vm1193_vm15, %vm1194_vm13  ;;  %vm1232_vm6 = vweird.f32 %v4203_v18 }
 0x18e   : > { %v1190_v33 = vsub.f32 1.0, %v1189_v22  ;;  %vm1214_vm2 = vmor %vm1212_vm0, %vm1213_vm14 }
 0x18f   : > { %v1209_v35 = vsub.f32 1.0, %v1208_v23 }
 0x190   : > { %v1191_v38 = vmul.f32 %v2675_v19, %v1190_v33 }
 0x191   : > { %v1210_v40 = vmul.f32 %v2677_v21, %v1209_v35  ;;  %v4213_v35 = vperm.slane %v4210_v12, 0 }
 0x192   : > { %v2679_v41 = vpop.eup %2678  ;;  %v1192_v56 = vadd.f32 %v2675_v19, %v1191_v38 }
 0x193   : > { %v1211_v10 = vadd.f32 %v2677_v21, %v1210_v40  ;;  %v1228_v11 = vmul.f32 %v2679_v41, %v4203_v18  ;;  %v2681_v20 = vpop.eup %2680  ;;  %vm1233_vm5 = vweird.f32 %v2679_v41  ;;  %v960_v37 = vadd.f32 %v4213_v35, %v888_v13 }
 0x194   : > { %v1196_v17 = vsel %vm1195_vm1, %v2675_v19, %v1192_v56  ;;  %vm1234_vm7 = vmor %vm1232_vm6, %vm1233_vm5 }
 0x195   : > { %v1201_v22 = vsel %vm1198_vm3, %v1200_v9, %v1196_v17  ;;  %v1215_v7 = vsel %vm1214_vm2, %v2677_v21, %v1211_v10  ;;  %v1229_v8 = vsub.f32 1.0, %v1228_v11  ;;  %v961_v21 = vadd.f32 %v4216_v36, %v908_v14 }
 0x196   : > { %v1220_v23 = vsel %vm1217_vm4, %v1219_v15, %v1215_v7  ;;  %v1243_v33 = vmul.f32 %v2681_v20, %v1201_v22  ;;  %v4228_v15 = vperm.slane %v4210_v12, 3  ;;  %v1239_v20 = vor.u32 1.1754944e-38, %v1238_v26  ;;  %v5796_v26 = vld [vmem:[#allocation125_spill] sm:$0xff] }
 0x197   : > { %v1242_v38 = vmul.f32 %v1220_v23, %v3860_v44  ;;  %v1230_v40 = vmul.f32 %v2679_v41, %v1229_v8  ;;  %v1236_v44 = vand.u32 2147483647, %v4203_v18 }
 0x198   : > { %v963_v8 = vadd.f32 %v4228_v15, %v948_v39  ;;  %v4242_v39 = vperm.slane %v4210_v12, 2  ;;  %v5795_v12 = vld [vmem:[#allocation124_spill] sm:$0xff] }
 0x199   : > { %v4219_v6 = vadd.f32 %v1243_v33, %v1242_v38  ;;  %v1231_v19 = vadd.f32 %v2679_v41, %v1230_v40  ;;  %vm1237_vm8 = vcmp.eq.f32.partialorder %v1236_v44, 8.507059e+37  ;;  %v928_v38 = vpop.f32.mrf.mxu2  ;;  %v5797_v44 = vld [vmem:[#allocation126_spill] sm:$0xff] }
 0x19a   : > { %5789 = vst [vmem:[#allocation28_spill] sm:$0xff] %v4242_v39 }
 0x19b   : > { %2682 = vtanh.f32 %v4219_v6  ;;  %v1235_v13 = vsel %vm1234_vm7, %v2679_v41, %v1231_v19 }
 0x19c   : > { %v1240_v7 = vsel %vm1237_vm8, %v1239_v20, %v1235_v13  ;;  %v5800_v20 = vld [vmem:[#allocation129_spill] sm:$0xff] }
 0x19f   : > { %v1045_v56 = vpop.f32.mrf.mxu0  ;;  %v1065_v9 = vpop.f32.mrf.mxu1 }
 0x1a0   : > { %v1108_v10 = vadd.f32 %v1045_v56, %v960_v37  ;;  %v1109_v11 = vadd.f32 %v1065_v9, %v961_v21 }
 0x1a1   : > { %v2683_v22 = vpop.eup %2682 }
 0x1a2   : > { %v2521_v17 = vmul.f32 -1.442695, %v1108_v10  ;;  %v2522_v14 = vmul.f32 -1.442695, %v1109_v11  ;;  %v1246_v23 = vmul.f32 %v2683_v22, %v1240_v7  ;;  %v5798_v10 = vld [vmem:[#allocation127_spill] sm:$0xff] }
 0x1a4   : > { %2684 = vpow2.f32 %v2521_v17  ;;  %1263 = vmatmul.f32.vlgmr.msra.gmra.mxu0 %v1246_v23  ;;  %1283 = vmatmul.f32.vlgmr.msra.gmra.mxu1 %v1246_v23 }
 0x1a5   : > { %2686 = vpow2.f32 %v2522_v14  ;;  %1303 = vmatmul.f32.vlgmr.msra.gmra.mxu2 %v1246_v23  ;;  %1323 = vmatmul.f32.vlgmr.msra.gmra.mxu3 %v1246_v23  ;;  %v5799_v14 = vld [vmem:[#allocation128_spill] sm:$0xff] }
 0x1a6   : > { %v1105_v33 = vpop.f32.mrf.mxu3  ;;  %1411 = vmatpush.msra.mxu0 %v3863_v47  ;;  %1431 = vmatpush.msra.mxu1 %v3865_v48  ;;  %v1085_v47 = vpop.f32.mrf.mxu2 }
 0x1a7   : > { %v1111_v18 = vadd.f32 %v1105_v33, %v963_v8  ;;  %1451 = vmatpush.msra.mxu2 %v3867_v45  ;;  %1471 = vmatpush.msra.mxu3 %v3869_v46  ;;  %v962_v45 = vadd.f32 %v4242_v39, %v928_v38  ;;  %v5790_v46 = vld [vmem:[#allocation119_spill] sm:$0xff]  ;;  %v5801_v8 = vld [vmem:[#allocation130_spill] sm:$0xff]  ;;  %v5803_v38 = vld [vmem:[#allocation132_spill] sm:$0xff] }
 0x1a8   : > { %1412 = vmatpush.msra.mxu0 %v3871_v50  ;;  %1432 = vmatpush.msra.mxu1 %v3873_v51 }
 0x1a9   : > { %v2523_v40 = vmul.f32 -1.442695, %v1111_v18  ;;  %1452 = vmatpush.msra.mxu2 %v3877_v43  ;;  %1472 = vmatpush.msra.mxu3 %v3879_v60  ;;  %v1110_v43 = vadd.f32 %v1085_v47, %v962_v45  ;;  %v5806_v45 = vld [vmem:[#allocation135_spill] sm:$0xff] }
 0x1aa   : > { %v2685_v41 = vpop.eup %2684  ;;  %1413 = vmatpush.msra.mxu0 %v3883_v58  ;;  %1433 = vmatpush.msra.mxu1 %v3885_v57  ;;  %v5791_v57 = vld [vmem:[#allocation120_spill] sm:$0xff] }
 0x1ab   : > { %v2687_v19 = vpop.eup %2686  ;;  %v4233_v37 = vadd.f32 1.0, %v2685_v41  ;;  %2688 = vpow2.f32 %v2523_v40  ;;  %1453 = vmatpush.msra.mxu2 %v3889_v1  ;;  %1473 = vmatpush.msra.mxu3 %v3891_v0  ;;  %v5792_v1 = vld [vmem:[#allocation121_spill] sm:$0xff] }
 0x1ac   : > { %v4237_v21 = vadd.f32 1.0, %v2687_v19  ;;  %1414 = vmatpush.msra.mxu0 %v3895_v61  ;;  %1434 = vmatpush.msra.mxu1 %v3897_v3  ;;  %v5793_v61 = vld [vmem:[#allocation122_spill] sm:$0xff]  ;;  %v5794_v3 = vld [vmem:[#allocation123_spill] sm:$0xff]  ;;  %v5804_v40 = vld [vmem:[#allocation133_spill] sm:$0xff] }
 0x1ad   : > { %2690 = vrcp.f32 %v4233_v37  ;;  %1454 = vmatpush.msra.mxu2 %v3901_v53  ;;  %1474 = vmatpush.msra.mxu3 %v5790_v46  ;;  %v1127_v9 = vand.u32 2147483648, %v4233_v37  ;;  %v1125_v17 = vand.u32 2147483647, %v4233_v37  ;;  %vm1121_vm11 = vweird.f32 %v4233_v37  ;;  %v591_v46 = vld [vmem:[#allocation6] sm:$0xff] }
 0x1ae   : > { %2692 = vrcp.f32 %v4237_v21  ;;  %1343 = vmatmul.f32.vlgmr.msrb.gmra.mxu0 %v1246_v23  ;;  %1363 = vmatmul.f32.vlgmr.msrb.gmra.mxu1 %v1246_v23  ;;  %v1146_v11 = vand.u32 2147483648, %v4237_v21  ;;  %v1144_v7 = vand.u32 2147483647, %v4237_v21  ;;  %vm1140_vm12 = vweird.f32 %v4237_v21 }
 0x1af   : > { %1383 = vmatmul.f32.vlgmr.msrb.gmra.mxu2 %v1246_v23  ;;  %1403 = vmatmul.f32.vlgmr.msrb.gmra.mxu3 %v1246_v23  ;;  %v5802_v23 = vld [vmem:[#allocation131_spill] sm:$0xff]  ;;  %v1128_v41 = vor.u32 1.1754944e-38, %v1127_v9  ;;  %vm1126_vm15 = vcmp.eq.f32.partialorder %v1125_v17, 8.507059e+37  ;;  %v5812_v9 = vld [vmem:[#allocation141_spill] sm:$0xff] }
 0x1b0   : > { %1415 = vmatpush.msra.mxu0 %v5791_v57  ;;  %1435 = vmatpush.msra.mxu1 %v5792_v1  ;;  %vm1145_vm0 = vcmp.eq.f32.partialorder %v1144_v7, 8.507059e+37  ;;  %v5820_v7 = vld [vmem:[#allocation149_spill] sm:$0xff] }
 0x1b1   : > { %v2689_v48 = vpop.eup %2688  ;;  %1455 = vmatpush.msra.mxu2 %v5793_v61  ;;  %1475 = vmatpush.msra.mxu3 %v5794_v3  ;;  %v5809_v3 = vld [vmem:[#allocation138_spill] sm:$0xff] }
 0x1b2   : > { %v4257_v50 = vadd.f32 1.0, %v2689_v48  ;;  %1416 = vmatpush.msra.mxu0 %v5795_v12  ;;  %1436 = vmatpush.msra.mxu1 %v5796_v26  ;;  %v5805_v48 = vld [vmem:[#allocation134_spill] sm:$0xff] }
 0x1b3   : > { %v2691_v51 = vpop.eup %2690  ;;  %1456 = vmatpush.msra.mxu2 %v5797_v44  ;;  %1476 = vmatpush.msra.mxu3 %v5798_v10  ;;  %v5813_v44 = vld [vmem:[#allocation142_spill] sm:$0xff]  ;;  %v5814_v10 = vld [vmem:[#allocation143_spill] sm:$0xff] }
 0x1b4   : > { %v2693_v60 = vpop.eup %2692  ;;  %v1117_v58 = vmul.f32 %v2691_v51, %v4233_v37  ;;  %2694 = vrcp.f32 %v4257_v50  ;;  %vm1122_vm9 = vweird.f32 %v2691_v51  ;;  %1417 = vmatpush.msra.mxu0 %v5799_v14  ;;  %1437 = vmatpush.msra.mxu1 %v5800_v20  ;;  %v1147_v37 = vor.u32 1.1754944e-38, %v1146_v11  ;;  %v5817_v14 = vld [vmem:[#allocation146_spill] sm:$0xff]  ;;  %v5818_v20 = vld [vmem:[#allocation147_spill] sm:$0xff] }
 0x1b5   : > { %v1136_v0 = vmul.f32 %v2693_v60, %v4237_v21  ;;  %2696 = vtanh.f32 %v1110_v43  ;;  %vm1141_vm10 = vweird.f32 %v2693_v60  ;;  %1457 = vmatpush.msra.mxu2 %v5801_v8  ;;  %1477 = vmatpush.msra.mxu3 %v5802_v23  ;;  %vm1123_vm13 = vmor %vm1121_vm11, %vm1122_vm9  ;;  %v5808_v21 = vld [vmem:[#allocation137_spill] sm:$0xff]  ;;  %v5821_v23 = vld [vmem:[#allocation150_spill] sm:$0xff]  ;;  %vm1160_vm2 = vweird.f32 %v4257_v50 }
 0x1b6   : > { %v1118_v53 = vsub.f32 1.0, %v1117_v58  ;;  %1418 = vmatpush.msra.mxu0 %v5803_v38  ;;  %1438 = vmatpush.msra.mxu1 %v5804_v40  ;;  %vm1142_vm14 = vmor %vm1140_vm12, %vm1141_vm10  ;;  %v5807_v58 = vld [vmem:[#allocation136_spill] sm:$0xff]  ;;  %v1166_v38 = vand.u32 2147483648, %v4257_v50 }
 0x1b7   : > { %v1137_v56 = vsub.f32 1.0, %v1136_v0  ;;  %1458 = vmatpush.msra.mxu2 %v5805_v48  ;;  %1478 = vmatpush.msra.mxu3 %v5806_v45  ;;  %v5823_v40 = vld [vmem:[#allocation152_spill] sm:$0xff]  ;;  %v5826_v48 = vld [vmem:[#allocation155_spill] sm:$0xff] }
 0x1b8   : > { %v1119_v13 = vmul.f32 %v2691_v51, %v1118_v53  ;;  %1419 = vmatpush.msra.mxu0 %v5807_v58  ;;  %1439 = vmatpush.msra.mxu1 %v5808_v21  ;;  %v5810_v53 = vld [vmem:[#allocation139_spill] sm:$0xff]  ;;  %v5827_v45 = vld [vmem:[#allocation156_spill] sm:$0xff]  ;;  %v4362_v21 = vld [vmem:[#allocation13 + $0x350] sm:$0xff] }
 0x1b9   : > { %v1138_v22 = vmul.f32 %v2693_v60, %v1137_v56  ;;  %1459 = vmatpush.msra.mxu2 %v5809_v3  ;;  %1479 = vmatpush.msra.mxu3 %v5810_v53  ;;  %v5811_v56 = vld [vmem:[#allocation140_spill] sm:$0xff]  ;;  %v4377_v3 = vld [vmem:[#allocation13 + $0x318] sm:$0xff]  ;;  %v4380_v53 = vld [vmem:[#allocation13 + $0x2c0] sm:$0xff] }
 0x1ba   : > { %v4278_v33 = vpop.eup %2694  ;;  %v1120_v18 = vadd.f32 %v2691_v51, %v1119_v13  ;;  %1420 = vmatpush.msra.mxu0 %v5811_v56  ;;  %1440 = vmatpush.msra.mxu1 %v5812_v9  ;;  %v5816_v13 = vld [vmem:[#allocation145_spill] sm:$0xff]  ;;  %v4389_v56 = vld [vmem:[#allocation13 + $0x2d8] sm:$0xff]  ;;  %v4392_v9 = vld [vmem:[#allocation13 + $0x280] sm:$0xff] }
 0x1bb   : > { %v1139_v19 = vadd.f32 %v2693_v60, %v1138_v22  ;;  %v1156_v47 = vmul.f32 %v4278_v33, %v4257_v50  ;;  %v2697_v57 = vpop.eup %2696  ;;  %1460 = vmatpush.msra.mxu2 %v5813_v44  ;;  %1480 = vmatpush.msra.mxu3 %v5814_v10  ;;  %v5819_v22 = vld [vmem:[#allocation148_spill] sm:$0xff]  ;;  %vm1161_vm1 = vweird.f32 %v4278_v33  ;;  %v4398_v44 = vld [vmem:[#allocation13 + $0x290] sm:$0xff]  ;;  %v4401_v10 = vld [vmem:[#allocation13 + $0x298] sm:$0xff] }
 0x1bc   : > { %v1124_v43 = vsel %vm1123_vm13, %v2691_v51, %v1120_v18  ;;  %1441 = vmatpush.msra.mxu1 %v5816_v13  ;;  %v5822_v18 = vld [vmem:[#allocation151_spill] sm:$0xff]  ;;  %vm1162_vm3 = vmor %vm1160_vm2, %vm1161_vm1  ;;  %v4410_v13 = vld [vmem:[#allocation13 + $0x250] sm:$0xff] }
 0x1bd   : > { %v1129_v1 = vsel %vm1126_vm15, %v1128_v41, %v1124_v43  ;;  %v1143_v0 = vsel %vm1142_vm14, %v2693_v60, %v1139_v19  ;;  %v1157_v61 = vsub.f32 1.0, %v1156_v47  ;;  %v5815_v60 = vld [vmem:[#allocation144_spill] sm:$0xff]  ;;  %1461 = vmatpush.msra.mxu2 %v5817_v14  ;;  %1481 = vmatpush.msra.mxu3 %v5818_v20  ;;  %v5824_v41 = vld [vmem:[#allocation153_spill] sm:$0xff]  ;;  %v1164_v19 = vand.u32 2147483647, %v4257_v50  ;;  %v5825_v47 = vld [vmem:[#allocation154_spill] sm:$0xff] }
 0x1be   : > { %v1148_v12 = vsel %vm1145_vm0, %v1147_v37, %v1143_v0  ;;  %v1171_v26 = vmul.f32 %v2697_v57, %v1129_v1  ;;  %1421 = vmatpush.msra.mxu0 %v5815_v60  ;;  %1442 = vmatpush.msra.mxu1 %v5820_v7  ;;  %v5828_v37 = vld [vmem:[#allocation157_spill] sm:$0xff]  ;;  %v1167_v43 = vor.u32 1.1754944e-38, %v1166_v38  ;;  %v4365_v57 = vld [vmem:[#allocation13 + $0x358] sm:$0xff]  ;;  %v4368_v1 = vld [vmem:[#allocation13 + $0x300] sm:$0xff] }
 0x1bf   : > { %v1170_v51 = vmul.f32 %v1148_v12, %v591_v46  ;;  %v1158_v11 = vmul.f32 %v4278_v33, %v1157_v61  ;;  %1462 = vmatpush.msra.mxu2 %v5821_v23  ;;  %1482 = vmatpush.msra.mxu3 %v5822_v18  ;;  %vm1165_vm4 = vcmp.eq.f32.partialorder %v1164_v19, 8.507059e+37  ;;  %v4371_v0 = vld [vmem:[#allocation13 + $0x308] sm:$0xff]  ;;  %v4374_v61 = vld [vmem:[#allocation13 + $0x310] sm:$0xff]  ;;  %v4413_v14 = vld [vmem:[#allocation13 + $0x258] sm:$0xff] }
 0x1c0   : > { %1422 = vmatpush.msra.mxu0 %v5819_v22  ;;  %1443 = vmatpush.msra.mxu1 %v5824_v41  ;;  %v4383_v12 = vld [vmem:[#allocation13 + $0x2c8] sm:$0xff]  ;;  %v4416_v20 = vld [vmem:[#allocation13 + $0x200] sm:$0xff]  ;;  %v4422_v7 = vld [vmem:[#allocation13 + $0x210] sm:$0xff] }
 0x1c1   : > { %v4301_v17 = vadd.f32 %v1171_v26, %v1170_v51  ;;  %v1159_v8 = vadd.f32 %v4278_v33, %v1158_v11  ;;  %1463 = vmatpush.msra.mxu2 %v5825_v47  ;;  %1483 = vmatpush.msra.mxu3 %v5826_v48  ;;  %v4386_v26 = vld [vmem:[#allocation13 + $0x2d0] sm:$0xff]  ;;  %v4395_v51 = vld [vmem:[#allocation13 + $0x288] sm:$0xff]  ;;  %v4404_v11 = vld [vmem:[#allocation13 + $0x240] sm:$0xff] }
 0x1c2   : > { %1423 = vmatpush.msra.mxu0 %v5823_v40  ;;  %1444 = vmatpush.msra.mxu1 %v5828_v37  ;;  %v4407_v60 = vld [vmem:[#allocation13 + $0x248] sm:$0xff]  ;;  %v4428_v23 = vld [vmem:[#allocation13 + $0x1c0] sm:$0xff]  ;;  %v4434_v38 = vld [vmem:[#allocation13 + $0x1d0] sm:$0xff] }
 0x1c3   : > { %2698 = vtanh.f32 %v4301_v17  ;;  %v1163_v46 = vsel %vm1162_vm3, %v4278_v33, %v1159_v8  ;;  %1464 = vmatpush.msra.mxu2 %v4021_v52  ;;  %1484 = vmatpush.msra.mxu3 %v4023_v4  ;;  %v4332_v52 = vld [vmem:[#allocation13 + $0x3c0] sm:$0xff]  ;;  %v4350_v4 = vld [vmem:[#allocation13 + $0x390] sm:$0xff]  ;;  %v4419_v22 = vld [vmem:[#allocation13 + $0x208] sm:$0xff]  ;;  %5829 = vst [vmem:[#allocation29_spill] sm:$0xff] %v4428_v23 }
 0x1c4   : > { %1424 = vmatpush.msra.mxu0 %v5827_v45  ;;  %1445 = vmatpush.msra.mxu1 %v4029_v54  ;;  %v1168_v58 = vsel %vm1165_vm4, %v1167_v43, %v1163_v46  ;;  %v4356_v54 = vld [vmem:[#allocation13 + $0x340] sm:$0xff]  ;;  %v4425_v8 = vld [vmem:[#allocation13 + $0x218] sm:$0xff]  ;;  %v4431_v18 = vld [vmem:[#allocation13 + $0x1c8] sm:$0xff]  ;;  %5831 = vst [vmem:[#allocation31_spill] sm:$0xff] %v4434_v38 }
 0x1c5   : > { %1465 = vmatpush.msra.mxu2 %v4033_v2  ;;  %1485 = vmatpush.msra.mxu3 %v4035_v63  ;;  %v4335_v2 = vld [vmem:[#allocation13 + $0x3c8] sm:$0xff]  ;;  %5830 = vst [vmem:[#allocation30_spill] sm:$0xff] %v4431_v18  ;;  %v4437_v40 = vld [vmem:[#allocation13 + $0x1d8] sm:$0xff]  ;;  %v4440_v41 = vld [vmem:[#allocation13 + $0x180] sm:$0xff] }
 0x1c6   : > { %1425 = vmatpush.msra.mxu0 %v4027_v49  ;;  %1446 = vmatpush.msra.mxu1 %v4041_v5  ;;  %v4341_v5 = vld [vmem:[#allocation13 + $0x3d8] sm:$0xff]  ;;  %v4359_v63 = vld [vmem:[#allocation13 + $0x348] sm:$0xff]  ;;  %5832 = vst [vmem:[#allocation32_spill] sm:$0xff] %v4437_v40  ;;  %v4446_v47 = vld [vmem:[#allocation13 + $0x190] sm:$0xff] }
 0x1c7   : > { %1466 = vmatpush.msra.mxu2 %v4045_v55  ;;  %1486 = vmatpush.msra.mxu3 %v4047_v59  ;;  %v4344_v55 = vld [vmem:[#allocation13 + $0x380] sm:$0xff]  ;;  %v4347_v59 = vld [vmem:[#allocation13 + $0x388] sm:$0xff]  ;;  %v4353_v49 = vld [vmem:[#allocation13 + $0x398] sm:$0xff]  ;;  %5833 = vst [vmem:[#allocation33_spill] sm:$0xff] %v4440_v41 }
 0x1c8   : > { %1426 = vmatpush.msra.mxu0 %v4039_v62  ;;  %1650 = vmatpush.msrb.mxu1 %v4335_v2  ;;  %v4338_v62 = vld [vmem:[#allocation13 + $0x3d0] sm:$0xff]  ;;  %v4443_v19 = vld [vmem:[#allocation13 + $0x188] sm:$0xff]  ;;  %5835 = vst [vmem:[#allocation35_spill] sm:$0xff] %v4446_v47  ;;  %v4449_v48 = vld [vmem:[#allocation13 + $0x198] sm:$0xff] }
 0x1c9   : > { %v2699_v50 = vpop.eup %2698  ;;  %1670 = vmatpush.msrb.mxu2 %v4338_v62  ;;  %1690 = vmatpush.msrb.mxu3 %v4341_v5  ;;  %5834 = vst [vmem:[#allocation34_spill] sm:$0xff] %v4443_v19  ;;  %v4452_v45 = vld [vmem:[#allocation13 + $0x140] sm:$0xff]  ;;  %v4455_v37 = vld [vmem:[#allocation13 + $0x148] sm:$0xff]  ;;  %v4458_v46 = vld [vmem:[#allocation13 + $0x150] sm:$0xff] }
 0x1ca   : > { %v1174_v33 = vmul.f32 %v2699_v50, %v1168_v58  ;;  %1630 = vmatpush.msrb.mxu0 %v4332_v52  ;;  %1651 = vmatpush.msrb.mxu1 %v4347_v59  ;;  %5836 = vst [vmem:[#allocation36_spill] sm:$0xff] %v4449_v48  ;;  %v4461_v43 = vld [vmem:[#allocation13 + $0x158] sm:$0xff]  ;;  %v4464_v50 = vld [vmem:[#allocation13 + $0x100] sm:$0xff]  ;;  %v4467_v58 = vld [vmem:[#allocation13 + $0x108] sm:$0xff] }
 0x1cb   : > { %1671 = vmatpush.msrb.mxu2 %v4350_v4  ;;  %1691 = vmatpush.msrb.mxu3 %v4353_v49  ;;  %5837 = vst [vmem:[#allocation37_spill] sm:$0xff] %v4452_v45 }
 0x1cc   : > { %1427 = vmatmul.f32.vlgmr.msra.gmra.mxu0 %v1174_v33  ;;  %1447 = vmatmul.f32.vlgmr.msra.gmra.mxu1 %v1174_v33  ;;  %5838 = vst [vmem:[#allocation38_spill] sm:$0xff] %v4455_v37 }
 0x1cd   : > { %1467 = vmatmul.f32.vlgmr.msra.gmra.mxu2 %v1174_v33  ;;  %1487 = vmatmul.f32.vlgmr.msra.gmra.mxu3 %v1174_v33  ;;  %5839 = vst [vmem:[#allocation39_spill] sm:$0xff] %v4458_v46  ;;  %v4470_v33 = vld [vmem:[#allocation13 + $0x110] sm:$0xff] }
 0x1ce   : > { %1631 = vmatpush.msrb.mxu0 %v4344_v55  ;;  %1652 = vmatpush.msrb.mxu1 %v4359_v63  ;;  %5840 = vst [vmem:[#allocation40_spill] sm:$0xff] %v4461_v43 }
 0x1cf   : > { %1672 = vmatpush.msrb.mxu2 %v4362_v21  ;;  %1692 = vmatpush.msrb.mxu3 %v4365_v57  ;;  %5841 = vst [vmem:[#allocation41_spill] sm:$0xff] %v4464_v50 }
 0x1d0   : > { %1632 = vmatpush.msrb.mxu0 %v4356_v54  ;;  %1653 = vmatpush.msrb.mxu1 %v4371_v0  ;;  %5842 = vst [vmem:[#allocation42_spill] sm:$0xff] %v4467_v58 }
 0x1d1   : > { %1673 = vmatpush.msrb.mxu2 %v4374_v61  ;;  %1693 = vmatpush.msrb.mxu3 %v4377_v3  ;;  %5843 = vst [vmem:[#allocation43_spill] sm:$0xff] %v4470_v33 }
 0x1d2   : > { %1633 = vmatpush.msrb.mxu0 %v4368_v1  ;;  %1654 = vmatpush.msrb.mxu1 %v4383_v12 }
 0x1d3   : > { %1674 = vmatpush.msrb.mxu2 %v4386_v26  ;;  %1694 = vmatpush.msrb.mxu3 %v4389_v56 }
 0x1d4   : > { %1634 = vmatpush.msrb.mxu0 %v4380_v53  ;;  %1655 = vmatpush.msrb.mxu1 %v4395_v51 }
 0x1d5   : > { %1675 = vmatpush.msrb.mxu2 %v4398_v44  ;;  %1695 = vmatpush.msrb.mxu3 %v4401_v10 }
 0x1d6   : > { %1635 = vmatpush.msrb.mxu0 %v4392_v9  ;;  %1656 = vmatpush.msrb.mxu1 %v4407_v60 }
 0x1d7   : > { %1676 = vmatpush.msrb.mxu2 %v4410_v13  ;;  %1696 = vmatpush.msrb.mxu3 %v4413_v14 }
 0x1d8   : > { %1636 = vmatpush.msrb.mxu0 %v4404_v11  ;;  %1657 = vmatpush.msrb.mxu1 %v4419_v22 }
 0x1d9   : > { %1677 = vmatpush.msrb.mxu2 %v4422_v7  ;;  %1697 = vmatpush.msrb.mxu3 %v4425_v8 }
 0x1da   : > { %1637 = vmatpush.msrb.mxu0 %v4416_v20  ;;  %1658 = vmatpush.msrb.mxu1 %v4431_v18 }
 0x1db   : > { %1678 = vmatpush.msrb.mxu2 %v4434_v38  ;;  %1698 = vmatpush.msrb.mxu3 %v4437_v40 }
 0x1dc   : > { %1638 = vmatpush.msrb.mxu0 %v4428_v23  ;;  %1659 = vmatpush.msrb.mxu1 %v4443_v19 }
 0x1dd   : > { %1679 = vmatpush.msrb.mxu2 %v4446_v47  ;;  %1699 = vmatpush.msrb.mxu3 %v4449_v48 }
 0x1de   : > { %1639 = vmatpush.msrb.mxu0 %v4440_v41  ;;  %1660 = vmatpush.msrb.mxu1 %v4455_v37 }
 0x1df   : > { %1680 = vmatpush.msrb.mxu2 %v4458_v46  ;;  %1700 = vmatpush.msrb.mxu3 %v4461_v43 }
 0x1e0   : > { %1640 = vmatpush.msrb.mxu0 %v4452_v45  ;;  %1661 = vmatpush.msrb.mxu1 %v4467_v58  ;;  %v4485_v58 = vld [vmem:[#allocation13 + $0xd8] sm:$0xff] }
 0x1e1   : > { %1681 = vmatpush.msrb.mxu2 %v4470_v33  ;;  %1701 = vmatpush.msrb.mxu3 %v4473_v31  ;;  %5848 = vst [vmem:[#allocation48_spill] sm:$0xff] %v4485_v58  ;;  %v4488_v33 = vld [vmem:[#allocation13 + $0x80] sm:$0xff]  ;;  %v4491_v31 = vld [vmem:[#allocation13 + $0x88] sm:$0xff] }
 0x1e2   : > { %1641 = vmatpush.msrb.mxu0 %v4464_v50  ;;  %1662 = vmatpush.msrb.mxu1 %v4479_v28  ;;  %v4482_v50 = vld [vmem:[#allocation13 + $0xd0] sm:$0xff]  ;;  %5849 = vst [vmem:[#allocation49_spill] sm:$0xff] %v4488_v33  ;;  %v4497_v28 = vld [vmem:[#allocation13 + $0x98] sm:$0xff] }
 0x1e3   : > { %5847 = vst [vmem:[#allocation47_spill] sm:$0xff] %v4482_v50  ;;  %1682 = vmatpush.msrb.mxu2 %v4482_v50  ;;  %1702 = vmatpush.msrb.mxu3 %v4485_v58  ;;  %v4500_v50 = vld [vmem:[#allocation13 + $0x40] sm:$0xff]  ;;  %v4503_v58 = vld [vmem:[#allocation13 + $0x48] sm:$0xff] }
 0x1e4   : > { %1642 = vmatpush.msrb.mxu0 %v4476_v29  ;;  %5850 = vst [vmem:[#allocation50_spill] sm:$0xff] %v4491_v31  ;;  %1663 = vmatpush.msrb.mxu1 %v4491_v31  ;;  %v4494_v29 = vld [vmem:[#allocation13 + $0x90] sm:$0xff]  ;;  %v4509_v31 = vld [vmem:[#allocation13 + $0x58] sm:$0xff] }
 0x1e5   : > { %5851 = vst [vmem:[#allocation51_spill] sm:$0xff] %v4494_v29  ;;  %1683 = vmatpush.msrb.mxu2 %v4494_v29  ;;  %1703 = vmatpush.msrb.mxu3 %v4497_v28  ;;  %v4512_v29 = vld [vmem:[#allocation13] sm:$0xff] }
 0x1e6   : > { %1643 = vmatpush.msrb.mxu0 %v4488_v33  ;;  %5852 = vst [vmem:[#allocation52_spill] sm:$0xff] %v4497_v28  ;;  %1664 = vmatpush.msrb.mxu1 %v4503_v58  ;;  %v4506_v33 = vld [vmem:[#allocation13 + $0x50] sm:$0xff]  ;;  %v4515_v28 = vld [vmem:[#allocation13 + $0x8] sm:$0xff] }
 0x1e7   : > { %5853 = vst [vmem:[#allocation53_spill] sm:$0xff] %v4500_v50  ;;  %1684 = vmatpush.msrb.mxu2 %v4506_v33  ;;  %1704 = vmatpush.msrb.mxu3 %v4509_v31 }
 0x1e8   : > { %1644 = vmatpush.msrb.mxu0 %v4500_v50  ;;  %5854 = vst [vmem:[#allocation54_spill] sm:$0xff] %v4503_v58  ;;  %1665 = vmatpush.msrb.mxu1 %v4515_v28  ;;  %v4518_v50 = vld [vmem:[#allocation13 + $0x10] sm:$0xff]  ;;  %v4521_v58 = vld [vmem:[#allocation13 + $0x18] sm:$0xff] }
 0x1e9   : > { %5855 = vst [vmem:[#allocation55_spill] sm:$0xff] %v4506_v33  ;;  %1685 = vmatpush.msrb.mxu2 %v4518_v50  ;;  %1705 = vmatpush.msrb.mxu3 %v4521_v58  ;;  %v4524_v33 = vld [vmem:[#allocation13 + $0x3e0] sm:$0xff] }
 0x1ea   : > { %5856 = vst [vmem:[#allocation56_spill] sm:$0xff] %v4509_v31  ;;  %1645 = vmatpush.msrb.mxu0 %v4512_v29  ;;  %v4527_v31 = vld [vmem:[#allocation13 + $0x3e8] sm:$0xff] }
 0x1eb   : > { %5857 = vst [vmem:[#allocation57_spill] sm:$0xff] %v4512_v29  ;;  %1730 = vmatpush.msra.mxu1 %v4527_v31  ;;  %v4530_v29 = vld [vmem:[#allocation13 + $0x3f0] sm:$0xff] }
 0x1ec   : > { %5858 = vst [vmem:[#allocation58_spill] sm:$0xff] %v4515_v28  ;;  %1710 = vmatpush.msra.mxu0 %v4524_v33  ;;  %1750 = vmatpush.msra.mxu2 %v4530_v29  ;;  %v4533_v28 = vld [vmem:[#allocation13 + $0x3f8] sm:$0xff] }
 0x1ed   : > { %5859 = vst [vmem:[#allocation59_spill] sm:$0xff] %v4518_v50  ;;  %1770 = vmatpush.msra.mxu3 %v4533_v28  ;;  %v4536_v50 = vld [vmem:[#allocation13 + $0x3a0] sm:$0xff] }
 0x1ee   : > { %5860 = vst [vmem:[#allocation60_spill] sm:$0xff] %v4521_v58  ;;  %1711 = vmatpush.msra.mxu0 %v4536_v50  ;;  %v4539_v58 = vld [vmem:[#allocation13 + $0x3a8] sm:$0xff] }
 0x1ef   : > { %5861 = vst [vmem:[#allocation61_spill] sm:$0xff] %v4524_v33  ;;  %1731 = vmatpush.msra.mxu1 %v4539_v58  ;;  %v4542_v33 = vld [vmem:[#allocation13 + $0x3b0] sm:$0xff] }
 0x1f0   : > { %5862 = vst [vmem:[#allocation62_spill] sm:$0xff] %v4527_v31  ;;  %1751 = vmatpush.msra.mxu2 %v4542_v33  ;;  %v4545_v31 = vld [vmem:[#allocation13 + $0x3b8] sm:$0xff] }
 0x1f1   : > { %5863 = vst [vmem:[#allocation63_spill] sm:$0xff] %v4530_v29  ;;  %1771 = vmatpush.msra.mxu3 %v4545_v31  ;;  %v4548_v29 = vld [vmem:[#allocation13 + $0x360] sm:$0xff] }
 0x1f2   : > { %5864 = vst [vmem:[#allocation64_spill] sm:$0xff] %v4533_v28  ;;  %1712 = vmatpush.msra.mxu0 %v4548_v29  ;;  %v4551_v28 = vld [vmem:[#allocation13 + $0x368] sm:$0xff] }
 0x1f3   : > { %5865 = vst [vmem:[#allocation65_spill] sm:$0xff] %v4536_v50  ;;  %1732 = vmatpush.msra.mxu1 %v4551_v28  ;;  %v4554_v50 = vld [vmem:[#allocation13 + $0x370] sm:$0xff] }
 0x1f4   : > { %5866 = vst [vmem:[#allocation66_spill] sm:$0xff] %v4539_v58  ;;  %1752 = vmatpush.msra.mxu2 %v4554_v50  ;;  %v4557_v58 = vld [vmem:[#allocation13 + $0x378] sm:$0xff] }
 0x1f5   : > { %5867 = vst [vmem:[#allocation67_spill] sm:$0xff] %v4542_v33  ;;  %1772 = vmatpush.msra.mxu3 %v4557_v58  ;;  %v4560_v33 = vld [vmem:[#allocation13 + $0x320] sm:$0xff] }
 0x1f6   : > { %5868 = vst [vmem:[#allocation68_spill] sm:$0xff] %v4545_v31  ;;  %1713 = vmatpush.msra.mxu0 %v4560_v33  ;;  %v4563_v31 = vld [vmem:[#allocation13 + $0x328] sm:$0xff] }
 0x1f7   : > { %5869 = vst [vmem:[#allocation69_spill] sm:$0xff] %v4548_v29  ;;  %1733 = vmatpush.msra.mxu1 %v4563_v31  ;;  %v4566_v29 = vld [vmem:[#allocation13 + $0x330] sm:$0xff] }
 0x1f8   : > { %5870 = vst [vmem:[#allocation70_spill] sm:$0xff] %v4551_v28  ;;  %1753 = vmatpush.msra.mxu2 %v4566_v29  ;;  %v4569_v28 = vld [vmem:[#allocation13 + $0x338] sm:$0xff] }
 0x1f9   : > { %5871 = vst [vmem:[#allocation71_spill] sm:$0xff] %v4554_v50  ;;  %1773 = vmatpush.msra.mxu3 %v4569_v28  ;;  %v4572_v50 = vld [vmem:[#allocation13 + $0x2e0] sm:$0xff] }
 0x1fa   : > { %5872 = vst [vmem:[#allocation72_spill] sm:$0xff] %v4557_v58  ;;  %1714 = vmatpush.msra.mxu0 %v4572_v50  ;;  %v4575_v58 = vld [vmem:[#allocation13 + $0x2e8] sm:$0xff] }
 0x1fb   : > { %5873 = vst [vmem:[#allocation73_spill] sm:$0xff] %v4560_v33  ;;  %1734 = vmatpush.msra.mxu1 %v4575_v58  ;;  %v4578_v33 = vld [vmem:[#allocation13 + $0x2f0] sm:$0xff] }
 0x1fc   : > { %5874 = vst [vmem:[#allocation74_spill] sm:$0xff] %v4563_v31  ;;  %1754 = vmatpush.msra.mxu2 %v4578_v33  ;;  %v4581_v31 = vld [vmem:[#allocation13 + $0x2f8] sm:$0xff] }
 0x1fd   : > { %5875 = vst [vmem:[#allocation75_spill] sm:$0xff] %v4566_v29  ;;  %1774 = vmatpush.msra.mxu3 %v4581_v31  ;;  %v4584_v29 = vld [vmem:[#allocation13 + $0x2a0] sm:$0xff] }
 0x1fe   : > { %5876 = vst [vmem:[#allocation76_spill] sm:$0xff] %v4569_v28  ;;  %1715 = vmatpush.msra.mxu0 %v4584_v29  ;;  %v4587_v28 = vld [vmem:[#allocation13 + $0x2a8] sm:$0xff] }
 0x1ff   : > { %5877 = vst [vmem:[#allocation78_spill] sm:$0xff] %v4572_v50  ;;  %1735 = vmatpush.msra.mxu1 %v4587_v28  ;;  %v4590_v50 = vld [vmem:[#allocation13 + $0x2b0] sm:$0xff] }
 0x200   : > { %5878 = vst [vmem:[#allocation79_spill] sm:$0xff] %v4575_v58  ;;  %1755 = vmatpush.msra.mxu2 %v4590_v50  ;;  %v4593_v58 = vld [vmem:[#allocation13 + $0x2b8] sm:$0xff] }
 0x201   : > { %5879 = vst [vmem:[#allocation81_spill] sm:$0xff] %v4578_v33  ;;  %1775 = vmatpush.msra.mxu3 %v4593_v58  ;;  %v4596_v33 = vld [vmem:[#allocation13 + $0x260] sm:$0xff] }
 0x202   : > { %5880 = vst [vmem:[#allocation82_spill] sm:$0xff] %v4581_v31  ;;  %1716 = vmatpush.msra.mxu0 %v4596_v33  ;;  %v4599_v31 = vld [vmem:[#allocation13 + $0x268] sm:$0xff] }
 0x203   : > { %5881 = vst [vmem:[#allocation83_spill] sm:$0xff] %v4584_v29  ;;  %1736 = vmatpush.msra.mxu1 %v4599_v31  ;;  %v4602_v29 = vld [vmem:[#allocation13 + $0x270] sm:$0xff] }
 0x204   : > { %5882 = vst [vmem:[#allocation84_spill] sm:$0xff] %v4587_v28  ;;  %1756 = vmatpush.msra.mxu2 %v4602_v29  ;;  %v4605_v28 = vld [vmem:[#allocation13 + $0x278] sm:$0xff] }
 0x205   : > { %5883 = vst [vmem:[#allocation85_spill] sm:$0xff] %v4590_v50  ;;  %1776 = vmatpush.msra.mxu3 %v4605_v28  ;;  %v4608_v50 = vld [vmem:[#allocation13 + $0x220] sm:$0xff] }
 0x206   : > { %5884 = vst [vmem:[#allocation86_spill] sm:$0xff] %v4593_v58  ;;  %1717 = vmatpush.msra.mxu0 %v4608_v50  ;;  %v4611_v58 = vld [vmem:[#allocation13 + $0x228] sm:$0xff] }
 0x207   : > { %5885 = vst [vmem:[#allocation87_spill] sm:$0xff] %v4596_v33  ;;  %1737 = vmatpush.msra.mxu1 %v4611_v58  ;;  %v4614_v33 = vld [vmem:[#allocation13 + $0x230] sm:$0xff] }
 0x208   : > { %5886 = vst [vmem:[#allocation88_spill] sm:$0xff] %v4599_v31  ;;  %1757 = vmatpush.msra.mxu2 %v4614_v33  ;;  %v4617_v31 = vld [vmem:[#allocation13 + $0x238] sm:$0xff] }
 0x209   : > { %5887 = vst [vmem:[#allocation90_spill] sm:$0xff] %v4602_v29  ;;  %1777 = vmatpush.msra.mxu3 %v4617_v31  ;;  %v4620_v29 = vld [vmem:[#allocation13 + $0x1e0] sm:$0xff] }
 0x20a   : > { %5888 = vst [vmem:[#allocation91_spill] sm:$0xff] %v4605_v28  ;;  %1718 = vmatpush.msra.mxu0 %v4620_v29  ;;  %v4623_v28 = vld [vmem:[#allocation13 + $0x1e8] sm:$0xff] }
 0x20b   : > { %5889 = vst [vmem:[#allocation92_spill] sm:$0xff] %v4608_v50  ;;  %1738 = vmatpush.msra.mxu1 %v4623_v28  ;;  %v4626_v50 = vld [vmem:[#allocation13 + $0x1f0] sm:$0xff] }
 0x20c   : > { %5890 = vst [vmem:[#allocation93_spill] sm:$0xff] %v4611_v58  ;;  %1758 = vmatpush.msra.mxu2 %v4626_v50  ;;  %v4629_v58 = vld [vmem:[#allocation13 + $0x1f8] sm:$0xff] }
 0x20d   : > { %5891 = vst [vmem:[#allocation94_spill] sm:$0xff] %v4614_v33  ;;  %1778 = vmatpush.msra.mxu3 %v4629_v58  ;;  %v4632_v33 = vld [vmem:[#allocation13 + $0x1a0] sm:$0xff] }
 0x20e   : > { %5892 = vst [vmem:[#allocation95_spill] sm:$0xff] %v4617_v31  ;;  %1719 = vmatpush.msra.mxu0 %v4632_v33  ;;  %v4635_v31 = vld [vmem:[#allocation13 + $0x1a8] sm:$0xff] }
 0x20f   : > { %5893 = vst [vmem:[#allocation96_spill] sm:$0xff] %v4620_v29  ;;  %1739 = vmatpush.msra.mxu1 %v4635_v31  ;;  %v4638_v29 = vld [vmem:[#allocation13 + $0x1b0] sm:$0xff] }
 0x210   : > { %5894 = vst [vmem:[#allocation97_spill] sm:$0xff] %v4623_v28  ;;  %1759 = vmatpush.msra.mxu2 %v4638_v29  ;;  %v4641_v28 = vld [vmem:[#allocation13 + $0x1b8] sm:$0xff] }
 0x211   : > { %5895 = vst [vmem:[#allocation98_spill] sm:$0xff] %v4626_v50  ;;  %1779 = vmatpush.msra.mxu3 %v4641_v28  ;;  %v4644_v50 = vld [vmem:[#allocation13 + $0x160] sm:$0xff] }
 0x212   : > { %5896 = vst [vmem:[#allocation99_spill] sm:$0xff] %v4629_v58  ;;  %1720 = vmatpush.msra.mxu0 %v4644_v50  ;;  %v4647_v58 = vld [vmem:[#allocation13 + $0x168] sm:$0xff] }
 0x213   : > { %5897 = vst [vmem:[#allocation100_spill] sm:$0xff] %v4632_v33  ;;  %1740 = vmatpush.msra.mxu1 %v4647_v58  ;;  %v4650_v33 = vld [vmem:[#allocation13 + $0x170] sm:$0xff] }
 0x214   : > { %5898 = vst [vmem:[#allocation101_spill] sm:$0xff] %v4635_v31  ;;  %1760 = vmatpush.msra.mxu2 %v4650_v33  ;;  %v4653_v31 = vld [vmem:[#allocation13 + $0x178] sm:$0xff] }
 0x215   : > { %5899 = vst [vmem:[#allocation103_spill] sm:$0xff] %v4638_v29  ;;  %1780 = vmatpush.msra.mxu3 %v4653_v31  ;;  %v4656_v29 = vld [vmem:[#allocation13 + $0x120] sm:$0xff] }
 0x216   : > { %5900 = vst [vmem:[#allocation104_spill] sm:$0xff] %v4641_v28  ;;  %1721 = vmatpush.msra.mxu0 %v4656_v29  ;;  %v4659_v28 = vld [vmem:[#allocation13 + $0x128] sm:$0xff] }
 0x217   : > { %5901 = vst [vmem:[#allocation105_spill] sm:$0xff] %v4644_v50  ;;  %1741 = vmatpush.msra.mxu1 %v4659_v28  ;;  %v4662_v50 = vld [vmem:[#allocation13 + $0x130] sm:$0xff] }
 0x218   : > { %5902 = vst [vmem:[#allocation106_spill] sm:$0xff] %v4647_v58  ;;  %1761 = vmatpush.msra.mxu2 %v4662_v50  ;;  %v4665_v58 = vld [vmem:[#allocation13 + $0x138] sm:$0xff] }
 0x219   : > { %5903 = vst [vmem:[#allocation107_spill] sm:$0xff] %v4650_v33  ;;  %1781 = vmatpush.msra.mxu3 %v4665_v58  ;;  %v4668_v33 = vld [vmem:[#allocation13 + $0xe0] sm:$0xff] }
 0x21a   : > { %5904 = vst [vmem:[#allocation108_spill] sm:$0xff] %v4653_v31  ;;  %1722 = vmatpush.msra.mxu0 %v4668_v33  ;;  %v4671_v31 = vld [vmem:[#allocation13 + $0xe8] sm:$0xff] }
 0x21b   : > { %5905 = vst [vmem:[#allocation109_spill] sm:$0xff] %v4656_v29  ;;  %1742 = vmatpush.msra.mxu1 %v4671_v31  ;;  %v4674_v29 = vld [vmem:[#allocation13 + $0xf0] sm:$0xff] }
 0x21c   : > { %5906 = vst [vmem:[#allocation110_spill] sm:$0xff] %v4659_v28  ;;  %1762 = vmatpush.msra.mxu2 %v4674_v29  ;;  %v4677_v28 = vld [vmem:[#allocation13 + $0xf8] sm:$0xff] }
 0x21d   : > { %5907 = vst [vmem:[#allocation111_spill] sm:$0xff] %v4662_v50  ;;  %1782 = vmatpush.msra.mxu3 %v4677_v28  ;;  %v4680_v50 = vld [vmem:[#allocation13 + $0xa0] sm:$0xff] }
 0x21e   : > { %5908 = vst [vmem:[#allocation112_spill] sm:$0xff] %v4665_v58  ;;  %1723 = vmatpush.msra.mxu0 %v4680_v50  ;;  %v4683_v58 = vld [vmem:[#allocation13 + $0xa8] sm:$0xff] }
 0x21f   : > { %5909 = vst [vmem:[#allocation113_spill] sm:$0xff] %v4668_v33  ;;  %1743 = vmatpush.msra.mxu1 %v4683_v58  ;;  %v4686_v33 = vld [vmem:[#allocation13 + $0xb0] sm:$0xff] }
 0x220   : > { %5910 = vst [vmem:[#allocation114_spill] sm:$0xff] %v4671_v31  ;;  %1763 = vmatpush.msra.mxu2 %v4686_v33  ;;  %v4689_v31 = vld [vmem:[#allocation13 + $0xb8] sm:$0xff] }
 0x221   : > { %5911 = vst [vmem:[#allocation115_spill] sm:$0xff] %v4674_v29  ;;  %1783 = vmatpush.msra.mxu3 %v4689_v31  ;;  %v4692_v29 = vld [vmem:[#allocation13 + $0x60] sm:$0xff]  ;;  %v1264_v43 = vpop.f32.mrf.mxu0 }
 0x222   : > { %5912 = vst [vmem:[#allocation116_spill] sm:$0xff] %v4677_v28  ;;  %1724 = vmatpush.msra.mxu0 %v4692_v29  ;;  %v4695_v28 = vld [vmem:[#allocation13 + $0x68] sm:$0xff] }
 0x223   : > { %5913 = vst [vmem:[#allocation117_spill] sm:$0xff] %v4680_v50  ;;  %1744 = vmatpush.msra.mxu1 %v4695_v28  ;;  %v4698_v50 = vld [vmem:[#allocation13 + $0x70] sm:$0xff] }
 0x224   : > { %5914 = vst [vmem:[#allocation118_spill] sm:$0xff] %v4683_v58  ;;  %1764 = vmatpush.msra.mxu2 %v4698_v50  ;;  %v4701_v58 = vld [vmem:[#allocation13 + $0x78] sm:$0xff] }
 0x225   : > { %5915 = vst [vmem:[#allocation119_spill] sm:$0xff] %v4686_v33  ;;  %1784 = vmatpush.msra.mxu3 %v4701_v58  ;;  %v4704_v33 = vld [vmem:[#allocation13 + $0x20] sm:$0xff] }
 0x226   : > { %5916 = vst [vmem:[#allocation120_spill] sm:$0xff] %v4689_v31  ;;  %1725 = vmatpush.msra.mxu0 %v4704_v33  ;;  %v4707_v31 = vld [vmem:[#allocation13 + $0x28] sm:$0xff] }
 0x227   : > { %5917 = vst [vmem:[#allocation121_spill] sm:$0xff] %v4692_v29  ;;  %1745 = vmatpush.msra.mxu1 %v4707_v31  ;;  %v4710_v29 = vld [vmem:[#allocation13 + $0x30] sm:$0xff] }
 0x228   : > { %5918 = vst [vmem:[#allocation122_spill] sm:$0xff] %v4695_v28  ;;  %1765 = vmatpush.msra.mxu2 %v4710_v29  ;;  %v4713_v28 = vld [vmem:[#allocation13 + $0x38] sm:$0xff]  ;;  %v1324_v48 = vpop.f32.mrf.mxu3 }
 0x229   : > { %5919 = vst [vmem:[#allocation123_spill] sm:$0xff] %v4698_v50  ;;  %1785 = vmatpush.msra.mxu3 %v4713_v28  ;;  %v560_v50 = vadd.f32 %v5784_v32, %v4183_v24 }
 0x22a   : > { %5920 = vst [vmem:[#allocation124_spill] sm:$0xff] %v4701_v58  ;;  %v561_v58 = vadd.f32 %v5785_v34, %v4185_v25  ;;  %v1304_v25 = vpop.f32.mrf.mxu2 }
 0x22b   : > { %5921 = vst [vmem:[#allocation125_spill] sm:$0xff] %v4704_v33  ;;  %v1284_v33 = vpop.f32.mrf.mxu1  ;;  %v1563_v46 = vadd.f32 %v1264_v43, %v560_v50 }
 0x22c   : > { %5922 = vst [vmem:[#allocation126_spill] sm:$0xff] %v4707_v31  ;;  %v1564_v37 = vadd.f32 %v1284_v33, %v561_v58 }
 0x22d   : > { %5923 = vst [vmem:[#allocation127_spill] sm:$0xff] %v4710_v29  ;;  %v2530_v45 = vmul.f32 -1.442695, %v1563_v46  ;;  %v563_v29 = vadd.f32 %v5786_v42, %v4187_v27 }
 0x22e   : > { %5924 = vst [vmem:[#allocation128_spill] sm:$0xff] %v4713_v28  ;;  %v2531_v31 = vmul.f32 -1.442695, %v1564_v37  ;;  %v562_v37 = vadd.f32 %v5788_v16, %v4193_v30  ;;  %v1344_v16 = vpop.f32.mrf.mxu0 }
 0x22f   : > { %2700 = vpow2.f32 %v2530_v45  ;;  %v1566_v47 = vadd.f32 %v1324_v48, %v563_v29 }
 0x230   : > { %2702 = vpow2.f32 %v2531_v31  ;;  %v1565_v50 = vadd.f32 %v1304_v25, %v562_v37 }
 0x231   : > { %v2532_v28 = vmul.f32 -1.442695, %v1566_v47 }
 0x233   : > { %2704 = vpow2.f32 %v2532_v28 }
 0x235   : > { %v2701_v19 = vpop.eup %2700 }
 0x236   : > { %v2703_v41 = vpop.eup %2702  ;;  %v1570_v24 = vadd.f32 1.0, %v2701_v19 }
 0x237   : > { %v1589_v32 = vadd.f32 1.0, %v2703_v41 }
 0x238   : > { %2706 = vrcp.f32 %v1570_v24  ;;  %v1582_v58 = vand.u32 2147483648, %v1570_v24  ;;  %v1580_v19 = vand.u32 2147483647, %v1570_v24  ;;  %vm1576_vm7 = vweird.f32 %v1570_v24 }
 0x239   : > { %2708 = vrcp.f32 %v1589_v32  ;;  %v2705_v43 = vpop.eup %2704  ;;  %v1601_v28 = vand.u32 2147483648, %v1589_v32  ;;  %v1599_v42 = vand.u32 2147483647, %v1589_v32  ;;  %vm1595_vm8 = vweird.f32 %v1589_v32 }
 0x23a   : > { %v1609_v45 = vadd.f32 1.0, %v2705_v43  ;;  %v1583_v25 = vor.u32 1.1754944e-38, %v1582_v58  ;;  %vm1581_vm11 = vcmp.eq.f32.partialorder %v1580_v19, 8.507059e+37 }
 0x23b   : > { %vm1600_vm12 = vcmp.eq.f32.partialorder %v1599_v42, 8.507059e+37 }
 0x23c   : > { %2710 = vrcp.f32 %v1609_v45  ;;  %v1621_v19 = vand.u32 2147483648, %v1609_v45  ;;  %vm1615_vm14 = vweird.f32 %v1609_v45 }
 0x23d   : > { %2712 = vtanh.f32 %v1565_v50 }
 0x23e   : > { %v2707_v46 = vpop.eup %2706 }
 0x23f   : > { %v2709_v27 = vpop.eup %2708  ;;  %v1572_v31 = vmul.f32 %v2707_v46, %v1570_v24  ;;  %vm1577_vm5 = vweird.f32 %v2707_v46 }
 0x240   : > { %v1591_v29 = vmul.f32 %v2709_v27, %v1589_v32  ;;  %vm1596_vm6 = vweird.f32 %v2709_v27  ;;  %vm1578_vm9 = vmor %vm1576_vm7, %vm1577_vm5 }
 0x241   : > { %v1573_v47 = vsub.f32 1.0, %v1572_v31  ;;  %v1364_v31 = vpop.f32.mrf.mxu1  ;;  %vm1597_vm10 = vmor %vm1595_vm8, %vm1596_vm6 }
 0x242   : > { %v1592_v48 = vsub.f32 1.0, %v1591_v29  ;;  %v2711_v34 = vpop.eup %2710  ;;  %v1602_v29 = vor.u32 1.1754944e-38, %v1601_v28  ;;  %v1408_v28 = vadd.f32 %v1364_v31, %v4216_v36 }
 0x243   : > { %v1574_v41 = vmul.f32 %v2707_v46, %v1573_v47  ;;  %v1611_v37 = vmul.f32 %v2711_v34, %v1609_v45  ;;  %v2713_v47 = vpop.eup %2712  ;;  %vm1616_vm13 = vweird.f32 %v2711_v34 }
 0x244   : > { %v1593_v33 = vmul.f32 %v2709_v27, %v1592_v48  ;;  %vm1617_vm15 = vmor %vm1615_vm14, %vm1616_vm13 }
 0x245   : > { %v1575_v30 = vadd.f32 %v2707_v46, %v1574_v41  ;;  %v1612_v48 = vsub.f32 1.0, %v1611_v37 }
 0x246   : > { %v1594_v43 = vadd.f32 %v2709_v27, %v1593_v33  ;;  %v1407_v33 = vadd.f32 %v1344_v16, %v4213_v35 }
 0x247   : > { %v1579_v50 = vsel %vm1578_vm9, %v2707_v46, %v1575_v30  ;;  %v1613_v32 = vmul.f32 %v2711_v34, %v1612_v48  ;;  %v1404_v46 = vpop.f32.mrf.mxu3  ;;  %v4731_v48 = vld [vmem:[#allocation15 + $0x1e0] sm:$0xff] }
 0x248   : > { %v1584_v40 = vsel %vm1581_vm11, %v1583_v25, %v1579_v50  ;;  %v1598_v38 = vsel %vm1597_vm10, %v2709_v27, %v1594_v43  ;;  %v1622_v25 = vor.u32 1.1754944e-38, %v1621_v19  ;;  %v1410_v37 = vadd.f32 %v1404_v46, %v4228_v15  ;;  %v4747_v19 = vld [vmem:[#allocation15 + $0x1c0] sm:$0xff] }
 0x249   : > { %v1603_v18 = vsel %vm1600_vm12, %v1602_v29, %v1598_v38  ;;  %v1626_v23 = vmul.f32 %v2713_v47, %v1584_v40  ;;  %v1614_v58 = vadd.f32 %v2711_v34, %v1613_v32  ;;  %v1428_v27 = vpop.f32.mrf.mxu0  ;;  %v1448_v42 = vpop.f32.mrf.mxu1  ;;  %v1619_v38 = vand.u32 2147483647, %v1609_v45 }
 0x24a   : > { %v1625_v24 = vmul.f32 %v1603_v18, %v4219_v6  ;;  %v1491_v40 = vadd.f32 %v1428_v27, %v1407_v33  ;;  %v1492_v30 = vadd.f32 %v1448_v42, %v1408_v28  ;;  %v1384_v47 = vpop.f32.mrf.mxu2  ;;  %v4739_v33 = vld [vmem:[#allocation15 + $0x1f0] sm:$0xff]  ;;  %v4742_v28 = vld [vmem:[#allocation15 + $0x1f8] sm:$0xff]  ;;  %v4750_v27 = vld [vmem:[#allocation15 + $0x1c8] sm:$0xff] }
 0x24b   : > { %v1618_v6 = vsel %vm1617_vm15, %v2711_v34, %v1614_v58  ;;  %vm1620_vm0 = vcmp.eq.f32.partialorder %v1619_v38, 8.507059e+37  ;;  %v4754_v42 = vld [vmem:[#allocation15 + $0x1d0] sm:$0xff]  ;;  %v4757_v38 = vld [vmem:[#allocation15 + $0x1d8] sm:$0xff] }
 0x24c   : > { %v4725_v41 = vadd.f32 %v1626_v23, %v1625_v24  ;;  %v2527_v23 = vmul.f32 -1.442695, %v1491_v40  ;;  %v2528_v18 = vmul.f32 -1.442695, %v1492_v30  ;;  %v1623_v43 = vsel %vm1620_vm0, %v1622_v25, %v1618_v6  ;;  %v4734_v24 = vld [vmem:[#allocation15 + $0x1e8] sm:$0xff]  ;;  %5925 = vst [vmem:[#allocation129_spill] sm:$0xff] %v4754_v42 }
 0x24d   : > { %5926 = vst [vmem:[#allocation130_spill] sm:$0xff] %v4757_v38  ;;  %v4761_v40 = vld [vmem:[#allocation15 + $0x1a0] sm:$0xff]  ;;  %v4764_v30 = vld [vmem:[#allocation15 + $0x1a8] sm:$0xff]  ;;  %v4767_v6 = vld [vmem:[#allocation15 + $0x1b0] sm:$0xff] }
 0x24e   : > { %2714 = vtanh.f32 %v4725_v41  ;;  %5927 = vst [vmem:[#allocation131_spill] sm:$0xff] %v4761_v40  ;;  %v4773_v25 = vld [vmem:[#allocation15 + $0x180] sm:$0xff] }
 0x24f   : > { %2716 = vpow2.f32 %v2527_v23  ;;  %5928 = vst [vmem:[#allocation132_spill] sm:$0xff] %v4764_v30  ;;  %v4770_v23 = vld [vmem:[#allocation15 + $0x1b8] sm:$0xff] }
 0x250   : > { %2718 = vpow2.f32 %v2528_v18  ;;  %v1488_v29 = vpop.f32.mrf.mxu3  ;;  %5929 = vst [vmem:[#allocation133_spill] sm:$0xff] %v4767_v6 }
 0x251   : > { %v1494_v50 = vadd.f32 %v1488_v29, %v1410_v37  ;;  %5930 = vst [vmem:[#allocation134_spill] sm:$0xff] %v4770_v23  ;;  %v1409_v37 = vadd.f32 %v1384_v47, %v4242_v39  ;;  %v4780_v29 = vld [vmem:[#allocation15 + $0x190] sm:$0xff]  ;;  %v4809_v39 = vld [vmem:[#allocation15 + $0x140] sm:$0xff] }
 0x252   : > { %v1468_v18 = vpop.f32.mrf.mxu2  ;;  %5931 = vst [vmem:[#allocation135_spill] sm:$0xff] %v4773_v25 }
 0x253   : > { %v2529_v45 = vmul.f32 -1.442695, %v1494_v50  ;;  %5933 = vst [vmem:[#allocation137_spill] sm:$0xff] %v4780_v29  ;;  %v4783_v50 = vld [vmem:[#allocation15 + $0x198] sm:$0xff] }
 0x254   : > { %v2715_v16 = vpop.eup %2714  ;;  %5934 = vst [vmem:[#allocation138_spill] sm:$0xff] %v4783_v50 }
 0x255   : > { %v1629_v31 = vmul.f32 %v2715_v16, %v1623_v43  ;;  %v2717_v34 = vpop.eup %2716  ;;  %2720 = vpow2.f32 %v2529_v45  ;;  %v4776_v16 = vld [vmem:[#allocation15 + $0x188] sm:$0xff]  ;;  %5939 = vst [vmem:[#allocation143_spill] sm:$0xff] %v4809_v39 }
 0x256   : > { %v2719_v32 = vpop.eup %2718  ;;  %v4737_v58 = vadd.f32 1.0, %v2717_v34  ;;  %5932 = vst [vmem:[#allocation136_spill] sm:$0xff] %v4776_v16 }
 0x257   : > { %1646 = vmatmul.f32.vlgmr.msrb.gmra.mxu0 %v1629_v31  ;;  %1666 = vmatmul.f32.vlgmr.msrb.gmra.mxu1 %v1629_v31  ;;  %v4745_v46 = vadd.f32 1.0, %v2719_v32  ;;  %v1493_v32 = vadd.f32 %v1468_v18, %v1409_v37  ;;  %v4803_v37 = vld [vmem:[#allocation15 + $0x170] sm:$0xff] }
 0x258   : > { %1686 = vmatmul.f32.vlgmr.msrb.gmra.mxu2 %v1629_v31  ;;  %1706 = vmatmul.f32.vlgmr.msrb.gmra.mxu3 %v1629_v31  ;;  %2722 = vrcp.f32 %v4737_v58  ;;  %5937 = vst [vmem:[#allocation141_spill] sm:$0xff] %v4803_v37  ;;  %vm1504_vm3 = vweird.f32 %v4737_v58 }
 0x259   : > { %1794 = vmatpush.msrb.mxu0 %v4731_v48  ;;  %1814 = vmatpush.msrb.mxu1 %v4734_v24  ;;  %2724 = vrcp.f32 %v4745_v46  ;;  %vm1523_vm4 = vweird.f32 %v4745_v46 }
 0x25a   : > { %1834 = vmatpush.msrb.mxu2 %v4739_v33  ;;  %1854 = vmatpush.msrb.mxu3 %v4742_v28 }
 0x25b   : > { %1795 = vmatpush.msrb.mxu0 %v4747_v19  ;;  %1815 = vmatpush.msrb.mxu1 %v4750_v27  ;;  %v2721_v43 = vpop.eup %2720 }
 0x25c   : > { %1835 = vmatpush.msrb.mxu2 %v4754_v42  ;;  %1855 = vmatpush.msrb.mxu3 %v4757_v38  ;;  %v4786_v45 = vadd.f32 1.0, %v2721_v43  ;;  %v4798_v43 = vld [vmem:[#allocation15 + $0x168] sm:$0xff]  ;;  %v4885_v42 = vld [vmem:[#allocation15 + $0xf0] sm:$0xff] }
 0x25d   : > { %1796 = vmatpush.msrb.mxu0 %v4761_v40  ;;  %1816 = vmatpush.msrb.mxu1 %v4764_v30  ;;  %5936 = vst [vmem:[#allocation140_spill] sm:$0xff] %v4798_v43  ;;  %v4861_v30 = vld [vmem:[#allocation15 + $0x110] sm:$0xff] }
 0x25e   : > { %1836 = vmatpush.msrb.mxu2 %v4767_v6  ;;  %1856 = vmatpush.msrb.mxu3 %v4770_v23  ;;  %v4788_v34 = vpop.eup %2722  ;;  %2726 = vrcp.f32 %v4786_v45  ;;  %v4816_v23 = vld [vmem:[#allocation15 + $0x150] sm:$0xff]  ;;  %5951 = vst [vmem:[#allocation153_spill] sm:$0xff] %v4861_v30  ;;  %vm1543_vm10 = vweird.f32 %v4786_v45 }
 0x25f   : > { %1797 = vmatpush.msrb.mxu0 %v4773_v25  ;;  %1817 = vmatpush.msrb.mxu1 %v4776_v16  ;;  %v4790_v16 = vpop.eup %2724  ;;  %v1500_v47 = vmul.f32 %v4788_v34, %v4737_v58  ;;  %v1510_v25 = vand.u32 2147483648, %v4737_v58  ;;  %2728 = vtanh.f32 %v1493_v32  ;;  %5941 = vst [vmem:[#allocation145_spill] sm:$0xff] %v4816_v23  ;;  %vm1505_vm1 = vweird.f32 %v4788_v34  ;;  %v4829_v32 = vld [vmem:[#allocation15 + $0x128] sm:$0xff] }
 0x260   : > { %1837 = vmatpush.msrb.mxu2 %v4780_v29  ;;  %1857 = vmatpush.msrb.mxu3 %v4783_v50  ;;  %v4795_v29 = vld [vmem:[#allocation15 + $0x160] sm:$0xff]  ;;  %v1519_v18 = vmul.f32 %v4790_v16, %v4745_v46  ;;  %5944 = vst [vmem:[#allocation148_spill] sm:$0xff] %v4829_v32  ;;  %vm1524_vm2 = vweird.f32 %v4790_v16  ;;  %vm4854_vm5 = vmor %vm1504_vm3, %vm1505_vm1 }
 0x261   : > { %1726 = vmatmul.f32.vlgmr.msra.gmra.mxu0 %v1629_v31  ;;  %1746 = vmatmul.f32.vlgmr.msra.gmra.mxu1 %v1629_v31  ;;  %5935 = vst [vmem:[#allocation139_spill] sm:$0xff] %v4795_v29  ;;  %v1501_v50 = vsub.f32 1.0, %v1500_v47  ;;  %v1529_v47 = vand.u32 2147483648, %v4745_v46  ;;  %vm4869_vm6 = vmor %vm1523_vm4, %vm1524_vm2 }
 0x262   : > { %1766 = vmatmul.f32.vlgmr.msra.gmra.mxu2 %v1629_v31  ;;  %1786 = vmatmul.f32.vlgmr.msra.gmra.mxu3 %v1629_v31  ;;  %v4806_v31 = vld [vmem:[#allocation15 + $0x178] sm:$0xff] }
 0x263   : > { %1798 = vmatpush.msrb.mxu0 %v4795_v29  ;;  %1818 = vmatpush.msrb.mxu1 %v4798_v43  ;;  %5938 = vst [vmem:[#allocation142_spill] sm:$0xff] %v4806_v31  ;;  %v4812_v29 = vld [vmem:[#allocation15 + $0x148] sm:$0xff]  ;;  %v1520_v43 = vsub.f32 1.0, %v1519_v18  ;;  %v4826_v18 = vld [vmem:[#allocation15 + $0x120] sm:$0xff] }
 0x264   : > { %1838 = vmatpush.msrb.mxu2 %v4803_v37  ;;  %1858 = vmatpush.msrb.mxu3 %v4806_v31  ;;  %5940 = vst [vmem:[#allocation144_spill] sm:$0xff] %v4812_v29  ;;  %v4819_v37 = vld [vmem:[#allocation15 + $0x158] sm:$0xff]  ;;  %v4835_v31 = vld [vmem:[#allocation15 + $0x130] sm:$0xff]  ;;  %v4841_v6 = vpop.eup %2726 }
 0x265   : > { %1799 = vmatpush.msrb.mxu0 %v4809_v39  ;;  %1819 = vmatpush.msrb.mxu1 %v4812_v29  ;;  %5942 = vst [vmem:[#allocation146_spill] sm:$0xff] %v4819_v37  ;;  %v1502_v39 = vmul.f32 %v4788_v34, %v1501_v50  ;;  %v1508_v29 = vand.u32 2147483647, %v4737_v58  ;;  %v4838_v50 = vld [vmem:[#allocation15 + $0x138] sm:$0xff]  ;;  %v1539_v58 = vmul.f32 %v4841_v6, %v4786_v45  ;;  %vm1544_vm9 = vweird.f32 %v4841_v6 }
 0x266   : > { %1839 = vmatpush.msrb.mxu2 %v4816_v23  ;;  %1859 = vmatpush.msrb.mxu3 %v4819_v37  ;;  %5943 = vst [vmem:[#allocation147_spill] sm:$0xff] %v4826_v18  ;;  %v1521_v23 = vmul.f32 %v4790_v16, %v1520_v43  ;;  %v1527_v37 = vand.u32 2147483647, %v4745_v46  ;;  %v4848_v43 = vld [vmem:[#allocation15 + $0x108] sm:$0xff]  ;;  %v4916_v46 = vld [vmem:[#allocation15 + $0xb8] sm:$0xff]  ;;  %vm4951_vm11 = vmor %vm1543_vm10, %vm1544_vm9 }
 0x267   : > { %1800 = vmatpush.msrb.mxu0 %v4826_v18  ;;  %1820 = vmatpush.msrb.mxu1 %v4829_v32  ;;  %5945 = vst [vmem:[#allocation149_spill] sm:$0xff] %v4835_v31  ;;  %v1503_v18 = vadd.f32 %v4788_v34, %v1502_v39  ;;  %v4845_v32 = vld [vmem:[#allocation15 + $0x100] sm:$0xff]  ;;  %vm1509_vm7 = vcmp.eq.f32.partialorder %v1508_v29, 8.507059e+37  ;;  %v4888_v29 = vld [vmem:[#allocation15 + $0xf8] sm:$0xff] }
 0x268   : > { %1840 = vmatpush.msrb.mxu2 %v4835_v31  ;;  %5946 = vst [vmem:[#allocation150_spill] sm:$0xff] %v4838_v50  ;;  %1860 = vmatpush.msrb.mxu3 %v4838_v50  ;;  %v1511_v31 = vor.u32 1.1754944e-38, %v1510_v25  ;;  %v1522_v39 = vadd.f32 %v4790_v16, %v1521_v23  ;;  %v1530_v25 = vor.u32 1.1754944e-38, %v1529_v47  ;;  %vm1528_vm8 = vcmp.eq.f32.partialorder %v1527_v37, 8.507059e+37  ;;  %v4891_v50 = vld [vmem:[#allocation15 + $0xc0] sm:$0xff]  ;;  %v4898_v37 = vld [vmem:[#allocation15 + $0xd0] sm:$0xff] }
 0x269   : > { %5947 = vst [vmem:[#allocation151_spill] sm:$0xff] %v4845_v32  ;;  %1801 = vmatpush.msrb.mxu0 %v4845_v32  ;;  %1821 = vmatpush.msrb.mxu1 %v4848_v43  ;;  %v4864_v32 = vld [vmem:[#allocation15 + $0x118] sm:$0xff]  ;;  %v1507_v23 = vsel %vm4854_vm5, %v4788_v34, %v1503_v18  ;;  %v1540_v47 = vsub.f32 1.0, %v1539_v58 }
 0x26a   : > { %5948 = vst [vmem:[#allocation152_spill] sm:$0xff] %v4848_v43  ;;  %1841 = vmatpush.msrb.mxu2 %v4861_v30  ;;  %1861 = vmatpush.msrb.mxu3 %v4864_v32  ;;  %v4876_v43 = vld [vmem:[#allocation15 + $0xe0] sm:$0xff]  ;;  %v4879_v30 = vld [vmem:[#allocation15 + $0xe8] sm:$0xff]  ;;  %v1512_v40 = vsel %vm1509_vm7, %v1511_v31, %v1507_v23  ;;  %v1526_v38 = vsel %vm4869_vm6, %v4790_v16, %v1522_v39  ;;  %v4901_v39 = vld [vmem:[#allocation15 + $0xd8] sm:$0xff] }
 0x26b   : > { %5952 = vst [vmem:[#allocation154_spill] sm:$0xff] %v4864_v32  ;;  %1802 = vmatpush.msrb.mxu0 %v4876_v43  ;;  %1822 = vmatpush.msrb.mxu1 %v4879_v30  ;;  %v2729_v32 = vpop.eup %2728  ;;  %v1531_v34 = vsel %vm1528_vm8, %v1530_v25, %v1526_v38  ;;  %v4894_v31 = vld [vmem:[#allocation15 + $0xc8] sm:$0xff]  ;;  %v1541_v38 = vmul.f32 %v4841_v6, %v1540_v47  ;;  %v4919_v25 = vld [vmem:[#allocation15 + $0x80] sm:$0xff] }
 0x26c   : > { %1842 = vmatpush.msrb.mxu2 %v4885_v42  ;;  %1862 = vmatpush.msrb.mxu3 %v4888_v29  ;;  %v1554_v18 = vmul.f32 %v2729_v32, %v1512_v40  ;;  %v1553_v16 = vmul.f32 %v1531_v34, %v4301_v17  ;;  %v4905_v40 = vld [vmem:[#allocation15 + $0xa0] sm:$0xff]  ;;  %v4908_v32 = vld [vmem:[#allocation15 + $0xa8] sm:$0xff]  ;;  %v4913_v17 = vld [vmem:[#allocation15 + $0xb0] sm:$0xff]  ;;  %5957 = vst [vmem:[#allocation157_spill] sm:$0xff] %v4916_v46 }
 0x26d   : > { %1803 = vmatpush.msrb.mxu0 %v4891_v50  ;;  %1823 = vmatpush.msrb.mxu1 %v4894_v31  ;;  %5955 = vst [vmem:[#allocation155_spill] sm:$0xff] %v4908_v32  ;;  %v4922_v23 = vld [vmem:[#allocation15 + $0x88] sm:$0xff]  ;;  %v1542_v47 = vadd.f32 %v4841_v6, %v1541_v38  ;;  %v4928_v34 = vld [vmem:[#allocation15 + $0x90] sm:$0xff]  ;;  %v1547_v38 = vand.u32 2147483647, %v4786_v45 }
 0x26e   : > { %1843 = vmatpush.msrb.mxu2 %v4898_v37  ;;  %1863 = vmatpush.msrb.mxu3 %v4901_v39  ;;  %v4911_v58 = vadd.f32 %v1554_v18, %v1553_v16  ;;  %5956 = vst [vmem:[#allocation156_spill] sm:$0xff] %v4913_v17  ;;  %v4931_v18 = vld [vmem:[#allocation15 + $0x98] sm:$0xff]  ;;  %v1549_v16 = vand.u32 2147483648, %v4786_v45 }
 0x26f   : > { %1804 = vmatpush.msrb.mxu0 %v4905_v40  ;;  %1824 = vmatpush.msrb.mxu1 %v4908_v32  ;;  %5958 = vst [vmem:[#allocation158_spill] sm:$0xff] %v4919_v25  ;;  %v1546_v45 = vsel %vm4951_vm11, %v4841_v6, %v1542_v47  ;;  %v4970_v32 = vld [vmem:[#allocation15 + $0x20] sm:$0xff]  ;;  %vm1548_vm12 = vcmp.eq.f32.partialorder %v1547_v38, 8.507059e+37  ;;  %v4976_v6 = vld [vmem:[#allocation15 + $0x30] sm:$0xff]  ;;  %v4979_v47 = vld [vmem:[#allocation15 + $0x38] sm:$0xff] }
 0x270   : > { %1844 = vmatpush.msrb.mxu2 %v4913_v17  ;;  %1864 = vmatpush.msrb.mxu3 %v4916_v46  ;;  %5959 = vst [vmem:[#allocation159_spill] sm:$0xff] %v4922_v23  ;;  %2730 = vtanh.f32 %v4911_v58  ;;  %v4943_v46 = vld [vmem:[#allocation15 + $0x70] sm:$0xff]  ;;  %v1550_v17 = vor.u32 1.1754944e-38, %v1549_v16  ;;  %v4982_v16 = vld [vmem:[#allocation15] sm:$0xff] }
 0x271   : > { %1805 = vmatpush.msrb.mxu0 %v4919_v25  ;;  %1825 = vmatpush.msrb.mxu1 %v4922_v23  ;;  %5960 = vst [vmem:[#allocation160_spill] sm:$0xff] %v4928_v34  ;;  %v4935_v25 = vld [vmem:[#allocation15 + $0x60] sm:$0xff]  ;;  %v4938_v23 = vld [vmem:[#allocation15 + $0x68] sm:$0xff]  ;;  %v4988_v38 = vld [vmem:[#allocation15 + $0x10] sm:$0xff] }
 0x272   : > { %1845 = vmatpush.msrb.mxu2 %v4928_v34  ;;  %5961 = vst [vmem:[#allocation161_spill] sm:$0xff] %v4931_v18  ;;  %1865 = vmatpush.msrb.mxu3 %v4931_v18  ;;  %v4946_v34 = vld [vmem:[#allocation15 + $0x78] sm:$0xff]  ;;  %v4955_v18 = vld [vmem:[#allocation15 + $0x40] sm:$0xff] }
 0x273   : > { %5962 = vst [vmem:[#allocation162_spill] sm:$0xff] %v4935_v25  ;;  %1806 = vmatpush.msrb.mxu0 %v4935_v25  ;;  %1826 = vmatpush.msrb.mxu1 %v4938_v23 }
 0x274   : > { %5963 = vst [vmem:[#allocation163_spill] sm:$0xff] %v4938_v23  ;;  %1846 = vmatpush.msrb.mxu2 %v4943_v46  ;;  %1866 = vmatpush.msrb.mxu3 %v4946_v34  ;;  %v4958_v23 = vld [vmem:[#allocation15 + $0x48] sm:$0xff] }
 0x275   : > { %5964 = vst [vmem:[#allocation164_spill] sm:$0xff] %v4943_v46  ;;  %1807 = vmatpush.msrb.mxu0 %v4955_v18  ;;  %1827 = vmatpush.msrb.mxu1 %v4958_v23  ;;  %v4964_v46 = vld [vmem:[#allocation15 + $0x50] sm:$0xff] }
 0x276   : > { %5965 = vst [vmem:[#allocation165_spill] sm:$0xff] %v4946_v34  ;;  %1847 = vmatpush.msrb.mxu2 %v4964_v46  ;;  %v4967_v34 = vld [vmem:[#allocation15 + $0x58] sm:$0xff]  ;;  %v2731_v25 = vpop.eup %2730 }
 0x277   : > { %5968 = vst [vmem:[#allocation166_spill] sm:$0xff] %v4955_v18  ;;  %1867 = vmatpush.msrb.mxu3 %v4967_v34  ;;  %1808 = vmatpush.msrb.mxu0 %v4970_v32  ;;  %v4973_v18 = vld [vmem:[#allocation15 + $0x28] sm:$0xff] }
 0x278   : > { %5969 = vst [vmem:[#allocation167_spill] sm:$0xff] %v4964_v46  ;;  %1828 = vmatpush.msrb.mxu1 %v4973_v18  ;;  %1848 = vmatpush.msrb.mxu2 %v4976_v6  ;;  %v4991_v46 = vld [vmem:[#allocation15 + $0x18] sm:$0xff] }
 0x279   : > { %5970 = vst [vmem:[#allocation168_spill] sm:$0xff] %v4967_v34  ;;  %1868 = vmatpush.msrb.mxu3 %v4979_v47  ;;  %v1551_v34 = vsel %vm1548_vm12, %v1550_v17, %v1546_v45  ;;  %1809 = vmatpush.msrb.mxu0 %v4982_v16  ;;  %v6005_v17 = vld [vmem:[#allocation61_spill] sm:$0xff]  ;;  %v6008_v45 = vld [vmem:[#allocation64_spill] sm:$0xff] }
 0x27a   : > { %5971 = vst [vmem:[#allocation169_spill] sm:$0xff] %v4970_v32  ;;  %v4985_v32 = vld [vmem:[#allocation15 + $0x8] sm:$0xff]  ;;  %1849 = vmatpush.msrb.mxu2 %v4988_v38 }
 0x27b   : > { %5972 = vst [vmem:[#allocation170_spill] sm:$0xff] %v4973_v18  ;;  %1829 = vmatpush.msrb.mxu1 %v4985_v32  ;;  %v1557_v18 = vmul.f32 %v2731_v25, %v1551_v34  ;;  %1869 = vmatpush.msrb.mxu3 %v4991_v46  ;;  %v6006_v34 = vld [vmem:[#allocation62_spill] sm:$0xff]  ;;  %v6009_v25 = vld [vmem:[#allocation65_spill] sm:$0xff] }
 0x27c   : > { %2013 = vmatpush.msra.mxu0 %v4332_v52  ;;  %2053 = vmatpush.msra.mxu2 %v4338_v62  ;;  %v5973_v52 = vld [vmem:[#allocation29_spill] sm:$0xff]  ;;  %v5975_v62 = vld [vmem:[#allocation31_spill] sm:$0xff] }
 0x27d   : > { %1810 = vmatmul.f32.vlgmr.msrb.gmra.mxu0 %v1557_v18  ;;  %1830 = vmatmul.f32.vlgmr.msrb.gmra.mxu1 %v1557_v18 }
 0x27e   : > { %1850 = vmatmul.f32.vlgmr.msrb.gmra.mxu2 %v1557_v18  ;;  %1870 = vmatmul.f32.vlgmr.msrb.gmra.mxu3 %v1557_v18  ;;  %v6007_v18 = vld [vmem:[#allocation63_spill] sm:$0xff] }
 0x27f   : > { %2033 = vmatpush.msra.mxu1 %v4335_v2  ;;  %2073 = vmatpush.msra.mxu3 %v4341_v5  ;;  %v5974_v2 = vld [vmem:[#allocation30_spill] sm:$0xff]  ;;  %v5976_v5 = vld [vmem:[#allocation32_spill] sm:$0xff] }
 0x280   : > { %2014 = vmatpush.msra.mxu0 %v4344_v55  ;;  %2054 = vmatpush.msra.mxu2 %v4350_v4  ;;  %v5977_v55 = vld [vmem:[#allocation33_spill] sm:$0xff]  ;;  %v5979_v4 = vld [vmem:[#allocation35_spill] sm:$0xff] }
 0x281   : > { %2034 = vmatpush.msra.mxu1 %v4347_v59  ;;  %2074 = vmatpush.msra.mxu3 %v4353_v49  ;;  %v5978_v59 = vld [vmem:[#allocation34_spill] sm:$0xff]  ;;  %v5980_v49 = vld [vmem:[#allocation36_spill] sm:$0xff] }
 0x282   : > { %2015 = vmatpush.msra.mxu0 %v4356_v54  ;;  %2055 = vmatpush.msra.mxu2 %v4362_v21  ;;  %v5981_v54 = vld [vmem:[#allocation37_spill] sm:$0xff]  ;;  %v5983_v21 = vld [vmem:[#allocation39_spill] sm:$0xff] }
 0x283   : > { %2035 = vmatpush.msra.mxu1 %v4359_v63  ;;  %2075 = vmatpush.msra.mxu3 %v4365_v57  ;;  %v5982_v63 = vld [vmem:[#allocation38_spill] sm:$0xff]  ;;  %v5984_v57 = vld [vmem:[#allocation40_spill] sm:$0xff] }
 0x284   : > { %2016 = vmatpush.msra.mxu0 %v4368_v1  ;;  %2056 = vmatpush.msra.mxu2 %v4374_v61  ;;  %v5985_v1 = vld [vmem:[#allocation41_spill] sm:$0xff]  ;;  %v5987_v61 = vld [vmem:[#allocation43_spill] sm:$0xff] }
 0x285   : > { %2036 = vmatpush.msra.mxu1 %v4371_v0  ;;  %2076 = vmatpush.msra.mxu3 %v4377_v3  ;;  %v5986_v0 = vld [vmem:[#allocation42_spill] sm:$0xff]  ;;  %v5988_v3 = vld [vmem:[#allocation44_spill] sm:$0xff] }
 0x286   : > { %2017 = vmatpush.msra.mxu0 %v4380_v53  ;;  %2057 = vmatpush.msra.mxu2 %v4386_v26  ;;  %v5989_v53 = vld [vmem:[#allocation45_spill] sm:$0xff]  ;;  %v5991_v26 = vld [vmem:[#allocation47_spill] sm:$0xff] }
 0x287   : > { %2037 = vmatpush.msra.mxu1 %v4383_v12  ;;  %2077 = vmatpush.msra.mxu3 %v4389_v56  ;;  %v5990_v12 = vld [vmem:[#allocation46_spill] sm:$0xff]  ;;  %v5992_v56 = vld [vmem:[#allocation48_spill] sm:$0xff] }
 0x288   : > { %2018 = vmatpush.msra.mxu0 %v4392_v9  ;;  %2058 = vmatpush.msra.mxu2 %v4398_v44  ;;  %v5993_v9 = vld [vmem:[#allocation49_spill] sm:$0xff]  ;;  %v5995_v44 = vld [vmem:[#allocation51_spill] sm:$0xff] }
 0x289   : > { %2038 = vmatpush.msra.mxu1 %v4395_v51  ;;  %2078 = vmatpush.msra.mxu3 %v4401_v10  ;;  %v5994_v51 = vld [vmem:[#allocation50_spill] sm:$0xff]  ;;  %v5996_v10 = vld [vmem:[#allocation52_spill] sm:$0xff] }
 0x28a   : > { %2019 = vmatpush.msra.mxu0 %v4404_v11  ;;  %2059 = vmatpush.msra.mxu2 %v4410_v13  ;;  %v5997_v11 = vld [vmem:[#allocation53_spill] sm:$0xff]  ;;  %v5999_v13 = vld [vmem:[#allocation55_spill] sm:$0xff] }
 0x28b   : > { %2039 = vmatpush.msra.mxu1 %v4407_v60  ;;  %2079 = vmatpush.msra.mxu3 %v4413_v14  ;;  %v5998_v60 = vld [vmem:[#allocation54_spill] sm:$0xff]  ;;  %v6000_v14 = vld [vmem:[#allocation56_spill] sm:$0xff] }
 0x28c   : > { %2020 = vmatpush.msra.mxu0 %v4416_v20  ;;  %2060 = vmatpush.msra.mxu2 %v4422_v7  ;;  %v6001_v20 = vld [vmem:[#allocation57_spill] sm:$0xff]  ;;  %v6003_v7 = vld [vmem:[#allocation59_spill] sm:$0xff] }
 0x28d   : > { %2040 = vmatpush.msra.mxu1 %v4419_v22  ;;  %2080 = vmatpush.msra.mxu3 %v4425_v8  ;;  %v6002_v22 = vld [vmem:[#allocation58_spill] sm:$0xff]  ;;  %v6004_v8 = vld [vmem:[#allocation60_spill] sm:$0xff] }
 0x28e   : > { %2021 = vmatpush.msra.mxu0 %v5973_v52  ;;  %2061 = vmatpush.msra.mxu2 %v5975_v62  ;;  %v6010_v52 = vld [vmem:[#allocation66_spill] sm:$0xff]  ;;  %v6012_v62 = vld [vmem:[#allocation68_spill] sm:$0xff] }
 0x28f   : > { %2041 = vmatpush.msra.mxu1 %v5974_v2  ;;  %2081 = vmatpush.msra.mxu3 %v5976_v5  ;;  %v6011_v2 = vld [vmem:[#allocation67_spill] sm:$0xff]  ;;  %v6013_v5 = vld [vmem:[#allocation69_spill] sm:$0xff] }
 0x290   : > { %2022 = vmatpush.msra.mxu0 %v5977_v55  ;;  %2062 = vmatpush.msra.mxu2 %v5979_v4  ;;  %v6014_v55 = vld [vmem:[#allocation70_spill] sm:$0xff]  ;;  %v6016_v4 = vld [vmem:[#allocation72_spill] sm:$0xff] }
 0x291   : > { %2042 = vmatpush.msra.mxu1 %v5978_v59  ;;  %2082 = vmatpush.msra.mxu3 %v5980_v49  ;;  %v6015_v59 = vld [vmem:[#allocation71_spill] sm:$0xff]  ;;  %v6017_v49 = vld [vmem:[#allocation73_spill] sm:$0xff] }
 0x292   : > { %2023 = vmatpush.msra.mxu0 %v5981_v54  ;;  %2063 = vmatpush.msra.mxu2 %v5983_v21  ;;  %v6018_v54 = vld [vmem:[#allocation74_spill] sm:$0xff]  ;;  %v6020_v21 = vld [vmem:[#allocation76_spill] sm:$0xff] }
 0x293   : > { %2043 = vmatpush.msra.mxu1 %v5982_v63  ;;  %2083 = vmatpush.msra.mxu3 %v5984_v57  ;;  %v6019_v63 = vld [vmem:[#allocation75_spill] sm:$0xff]  ;;  %v6021_v57 = vld [vmem:[#allocation78_spill] sm:$0xff] }
 0x294   : > { %2024 = vmatpush.msra.mxu0 %v5985_v1  ;;  %2064 = vmatpush.msra.mxu2 %v5987_v61  ;;  %v6022_v1 = vld [vmem:[#allocation79_spill] sm:$0xff]  ;;  %v6024_v61 = vld [vmem:[#allocation82_spill] sm:$0xff] }
 0x295   : > { %2044 = vmatpush.msra.mxu1 %v5986_v0  ;;  %2084 = vmatpush.msra.mxu3 %v5988_v3  ;;  %v6023_v0 = vld [vmem:[#allocation81_spill] sm:$0xff]  ;;  %v6025_v3 = vld [vmem:[#allocation83_spill] sm:$0xff] }
 0x296   : > { %2025 = vmatpush.msra.mxu0 %v5989_v53  ;;  %2065 = vmatpush.msra.mxu2 %v5991_v26  ;;  %v6026_v53 = vld [vmem:[#allocation84_spill] sm:$0xff]  ;;  %v6028_v26 = vld [vmem:[#allocation86_spill] sm:$0xff] }
 0x297   : > { %2045 = vmatpush.msra.mxu1 %v5990_v12  ;;  %2085 = vmatpush.msra.mxu3 %v5992_v56  ;;  %v6027_v12 = vld [vmem:[#allocation85_spill] sm:$0xff]  ;;  %v6029_v56 = vld [vmem:[#allocation87_spill] sm:$0xff] }
 0x298   : > { %2026 = vmatpush.msra.mxu0 %v5993_v9  ;;  %2066 = vmatpush.msra.mxu2 %v5995_v44  ;;  %v6030_v9 = vld [vmem:[#allocation88_spill] sm:$0xff]  ;;  %v6032_v44 = vld [vmem:[#allocation91_spill] sm:$0xff] }
 0x299   : > { %2046 = vmatpush.msra.mxu1 %v5994_v51  ;;  %2086 = vmatpush.msra.mxu3 %v5996_v10  ;;  %v6031_v51 = vld [vmem:[#allocation90_spill] sm:$0xff]  ;;  %v6033_v10 = vld [vmem:[#allocation92_spill] sm:$0xff] }
 0x29a   : > { %2027 = vmatpush.msra.mxu0 %v5997_v11  ;;  %2067 = vmatpush.msra.mxu2 %v5999_v13  ;;  %v6034_v11 = vld [vmem:[#allocation93_spill] sm:$0xff]  ;;  %v6036_v13 = vld [vmem:[#allocation95_spill] sm:$0xff] }
 0x29b   : > { %2047 = vmatpush.msra.mxu1 %v5998_v60  ;;  %2087 = vmatpush.msra.mxu3 %v6000_v14  ;;  %v6035_v60 = vld [vmem:[#allocation94_spill] sm:$0xff]  ;;  %v6037_v14 = vld [vmem:[#allocation96_spill] sm:$0xff] }
 0x29c   : > { %2028 = vmatpush.msra.mxu0 %v6001_v20  ;;  %2068 = vmatpush.msra.mxu2 %v6003_v7  ;;  %v6038_v20 = vld [vmem:[#allocation97_spill] sm:$0xff]  ;;  %v6040_v7 = vld [vmem:[#allocation99_spill] sm:$0xff] }
 0x29d   : > { %2048 = vmatpush.msra.mxu1 %v6002_v22  ;;  %2088 = vmatpush.msra.mxu3 %v6004_v8  ;;  %v6039_v22 = vld [vmem:[#allocation98_spill] sm:$0xff]  ;;  %v6041_v8 = vld [vmem:[#allocation100_spill] sm:$0xff] }
 0x29e   : > { %2093 = vmatpush.msrb.mxu0 %v6005_v17  ;;  %2133 = vmatpush.msrb.mxu2 %v6007_v18  ;;  %v6042_v17 = vld [vmem:[#allocation101_spill] sm:$0xff]  ;;  %v6044_v18 = vld [vmem:[#allocation104_spill] sm:$0xff] }
 0x29f   : > { %2113 = vmatpush.msrb.mxu1 %v6006_v34  ;;  %2153 = vmatpush.msrb.mxu3 %v6008_v45  ;;  %v6043_v34 = vld [vmem:[#allocation103_spill] sm:$0xff]  ;;  %v6045_v45 = vld [vmem:[#allocation105_spill] sm:$0xff] }
 0x2a0   : > { %2094 = vmatpush.msrb.mxu0 %v6009_v25  ;;  %2134 = vmatpush.msrb.mxu2 %v6011_v2  ;;  %v6046_v25 = vld [vmem:[#allocation106_spill] sm:$0xff]  ;;  %v6048_v2 = vld [vmem:[#allocation108_spill] sm:$0xff] }
 0x2a1   : > { %2114 = vmatpush.msrb.mxu1 %v6010_v52  ;;  %2154 = vmatpush.msrb.mxu3 %v6012_v62  ;;  %v6047_v52 = vld [vmem:[#allocation107_spill] sm:$0xff]  ;;  %v6049_v62 = vld [vmem:[#allocation109_spill] sm:$0xff] }
 0x2a2   : > { %2095 = vmatpush.msrb.mxu0 %v6013_v5  ;;  %2135 = vmatpush.msrb.mxu2 %v6015_v59  ;;  %v6050_v5 = vld [vmem:[#allocation110_spill] sm:$0xff]  ;;  %v6052_v59 = vld [vmem:[#allocation112_spill] sm:$0xff] }
 0x2a3   : > { %2115 = vmatpush.msrb.mxu1 %v6014_v55  ;;  %2155 = vmatpush.msrb.mxu3 %v6016_v4  ;;  %v6051_v55 = vld [vmem:[#allocation111_spill] sm:$0xff]  ;;  %v6053_v4 = vld [vmem:[#allocation113_spill] sm:$0xff] }
 0x2a4   : > { %2096 = vmatpush.msrb.mxu0 %v6017_v49  ;;  %2136 = vmatpush.msrb.mxu2 %v6019_v63  ;;  %v6054_v49 = vld [vmem:[#allocation114_spill] sm:$0xff]  ;;  %v6056_v63 = vld [vmem:[#allocation116_spill] sm:$0xff] }
 0x2a5   : > { %2116 = vmatpush.msrb.mxu1 %v6018_v54  ;;  %2156 = vmatpush.msrb.mxu3 %v6020_v21  ;;  %v6055_v54 = vld [vmem:[#allocation115_spill] sm:$0xff]  ;;  %v6057_v21 = vld [vmem:[#allocation117_spill] sm:$0xff] }
 0x2a6   : > { %2097 = vmatpush.msrb.mxu0 %v6021_v57  ;;  %2137 = vmatpush.msrb.mxu2 %v6023_v0  ;;  %v6058_v57 = vld [vmem:[#allocation118_spill] sm:$0xff]  ;;  %v6060_v0 = vld [vmem:[#allocation120_spill] sm:$0xff] }
 0x2a7   : > { %2117 = vmatpush.msrb.mxu1 %v6022_v1  ;;  %2157 = vmatpush.msrb.mxu3 %v6024_v61  ;;  %v6059_v1 = vld [vmem:[#allocation119_spill] sm:$0xff]  ;;  %v6061_v61 = vld [vmem:[#allocation121_spill] sm:$0xff] }
 0x2a8   : > { %2098 = vmatpush.msrb.mxu0 %v6025_v3  ;;  %2138 = vmatpush.msrb.mxu2 %v6027_v12  ;;  %v6062_v3 = vld [vmem:[#allocation122_spill] sm:$0xff]  ;;  %v6064_v12 = vld [vmem:[#allocation124_spill] sm:$0xff] }
 0x2a9   : > { %2118 = vmatpush.msrb.mxu1 %v6026_v53  ;;  %2158 = vmatpush.msrb.mxu3 %v6028_v26  ;;  %v6063_v53 = vld [vmem:[#allocation123_spill] sm:$0xff]  ;;  %v6065_v26 = vld [vmem:[#allocation125_spill] sm:$0xff] }
 0x2aa   : > { %2099 = vmatpush.msrb.mxu0 %v6029_v56  ;;  %2139 = vmatpush.msrb.mxu2 %v6031_v51  ;;  %v6066_v56 = vld [vmem:[#allocation126_spill] sm:$0xff]  ;;  %v6068_v51 = vld [vmem:[#allocation128_spill] sm:$0xff] }
 0x2ab   : > { %2119 = vmatpush.msrb.mxu1 %v6030_v9  ;;  %2159 = vmatpush.msrb.mxu3 %v6032_v44  ;;  %v6067_v9 = vld [vmem:[#allocation127_spill] sm:$0xff]  ;;  %v6069_v44 = vld [vmem:[#allocation24_spill] sm:$0xff] }
 0x2ac   : > { %2100 = vmatpush.msrb.mxu0 %v6033_v10  ;;  %2140 = vmatpush.msrb.mxu2 %v6035_v60  ;;  %v6070_v10 = vld [vmem:[#allocation77_spill] sm:$0xff] }
 0x2ad   : > { %2120 = vmatpush.msrb.mxu1 %v6034_v11  ;;  %2160 = vmatpush.msrb.mxu3 %v6036_v13  ;;  %v564_v11 = vadd.f32 %v6070_v10, %v6069_v44  ;;  %v6071_v60 = vld [vmem:[#allocation25_spill] sm:$0xff]  ;;  %v6072_v13 = vld [vmem:[#allocation80_spill] sm:$0xff] }
 0x2ae   : > { %2101 = vmatpush.msrb.mxu0 %v6037_v14  ;;  %2141 = vmatpush.msrb.mxu2 %v6039_v22  ;;  %v565_v14 = vadd.f32 %v6072_v13, %v6071_v60 }
 0x2af   : > { %2121 = vmatpush.msrb.mxu1 %v6038_v20  ;;  %2161 = vmatpush.msrb.mxu3 %v6040_v7 }
 0x2b0   : > { %2102 = vmatpush.msrb.mxu0 %v6041_v8  ;;  %2142 = vmatpush.msrb.mxu2 %v6043_v34 }
 0x2b1   : > { %2122 = vmatpush.msrb.mxu1 %v6042_v17  ;;  %2162 = vmatpush.msrb.mxu3 %v6044_v18  ;;  %v6073_v18 = vld [vmem:[#allocation26_spill] sm:$0xff] }
 0x2b2   : > { %2103 = vmatpush.msrb.mxu0 %v6045_v45  ;;  %2143 = vmatpush.msrb.mxu2 %v6047_v52  ;;  %v6074_v45 = vld [vmem:[#allocation89_spill] sm:$0xff] }
 0x2b3   : > { %2123 = vmatpush.msrb.mxu1 %v6046_v25  ;;  %2163 = vmatpush.msrb.mxu3 %v6048_v2  ;;  %v567_v25 = vadd.f32 %v6074_v45, %v6073_v18 }
 0x2b4   : > { %2104 = vmatpush.msrb.mxu0 %v6049_v62  ;;  %2144 = vmatpush.msrb.mxu2 %v6051_v55 }
 0x2b5   : > { %2124 = vmatpush.msrb.mxu1 %v6050_v5  ;;  %2164 = vmatpush.msrb.mxu3 %v6052_v59 }
 0x2b6   : > { %2105 = vmatpush.msrb.mxu0 %v6053_v4  ;;  %2145 = vmatpush.msrb.mxu2 %v6055_v54 }
 0x2b7   : > { %2125 = vmatpush.msrb.mxu1 %v6054_v49  ;;  %2165 = vmatpush.msrb.mxu3 %v6056_v63  ;;  %v6075_v63 = vld [vmem:[#allocation27_spill] sm:$0xff] }
 0x2b8   : > { %2106 = vmatpush.msrb.mxu0 %v6057_v21  ;;  %2146 = vmatpush.msrb.mxu2 %v6059_v1  ;;  %v6076_v21 = vld [vmem:[#allocation102_spill] sm:$0xff] }
 0x2b9   : > { %2126 = vmatpush.msrb.mxu1 %v6058_v57  ;;  %2166 = vmatpush.msrb.mxu3 %v6060_v0  ;;  %v566_v57 = vadd.f32 %v6076_v21, %v6075_v63 }
 0x2ba   : > { %2107 = vmatpush.msrb.mxu0 %v6061_v61  ;;  %2147 = vmatpush.msrb.mxu2 %v6063_v53 }
 0x2bb   : > { %2127 = vmatpush.msrb.mxu1 %v6062_v3  ;;  %2167 = vmatpush.msrb.mxu3 %v6064_v12 }
 0x2bc   : > { %2108 = vmatpush.msrb.mxu0 %v6065_v26  ;;  %2148 = vmatpush.msrb.mxu2 %v6067_v9 }
 0x2bd   : > { %2128 = vmatpush.msrb.mxu1 %v6066_v56  ;;  %2168 = vmatpush.msrb.mxu3 %v6068_v51 }
 0x2d4   : > { %v1647_v20 = vpop.f32.mrf.mxu0  ;;  %v1667_v22 = vpop.f32.mrf.mxu1 }
 0x2d5   : > { %v1946_v7 = vadd.f32 %v1647_v20, %v564_v11  ;;  %v1947_v8 = vadd.f32 %v1667_v22, %v565_v14 }
 0x2d7   : > { %v2536_v17 = vmul.f32 -1.442695, %v1946_v7  ;;  %v2537_v34 = vmul.f32 -1.442695, %v1947_v8 }
 0x2d9   : > { %2732 = vpow2.f32 %v2536_v17 }
 0x2da   : > { %2734 = vpow2.f32 %v2537_v34 }
 0x2db   : > { %v1707_v52 = vpop.f32.mrf.mxu3  ;;  %v1687_v49 = vpop.f32.mrf.mxu2 }
 0x2dc   : > { %v1949_v2 = vadd.f32 %v1707_v52, %v567_v25  ;;  %v1948_v61 = vadd.f32 %v1687_v49, %v566_v57 }
 0x2de   : > { %v2538_v62 = vmul.f32 -1.442695, %v1949_v2  ;;  %v1727_v8 = vpop.f32.mrf.mxu0  ;;  %v1747_v17 = vpop.f32.mrf.mxu1 }
 0x2df   : > { %v2733_v5 = vpop.eup %2732  ;;  %v1791_v63 = vadd.f32 %v1747_v17, %v4216_v36  ;;  %v6077_v17 = vld [vmem:[#allocation129_spill] sm:$0xff] }
 0x2e0   : > { %v2735_v55 = vpop.eup %2734  ;;  %v1953_v59 = vadd.f32 1.0, %v2733_v5  ;;  %2736 = vpow2.f32 %v2538_v62 }
 0x2e1   : > { %v1972_v4 = vadd.f32 1.0, %v2735_v55 }
 0x2e2   : > { %2738 = vrcp.f32 %v1953_v59  ;;  %v1965_v9 = vand.u32 2147483648, %v1953_v59  ;;  %v1963_v10 = vand.u32 2147483647, %v1953_v59  ;;  %vm1959_vm15 = vweird.f32 %v1953_v59 }
 0x2e3   : > { %2740 = vrcp.f32 %v1972_v4  ;;  %v1984_v51 = vand.u32 2147483648, %v1972_v4  ;;  %v1982_v60 = vand.u32 2147483647, %v1972_v4  ;;  %vm1978_vm0 = vweird.f32 %v1972_v4 }
 0x2e4   : > { %v1966_v20 = vor.u32 1.1754944e-38, %v1965_v9  ;;  %vm1964_vm3 = vcmp.eq.f32.partialorder %v1963_v10, 8.507059e+37 }
 0x2e5   : > { %v1985_v34 = vor.u32 1.1754944e-38, %v1984_v51  ;;  %vm1983_vm4 = vcmp.eq.f32.partialorder %v1982_v60, 8.507059e+37  ;;  %v1787_v21 = vpop.f32.mrf.mxu3 }
 0x2e6   : > { %v2737_v54 = vpop.eup %2736  ;;  %v1793_v10 = vadd.f32 %v1787_v21, %v4228_v15 }
 0x2e7   : > { %v1992_v1 = vadd.f32 1.0, %v2737_v54  ;;  %v1790_v54 = vadd.f32 %v1727_v8, %v4213_v35 }
 0x2e8   : > { %v2739_v0 = vpop.eup %2738 }
 0x2e9   : > { %v2741_v3 = vpop.eup %2740  ;;  %v1955_v53 = vmul.f32 %v2739_v0, %v1953_v59  ;;  %2742 = vrcp.f32 %v1992_v1  ;;  %vm1960_vm13 = vweird.f32 %v2739_v0  ;;  %v2004_v57 = vand.u32 2147483648, %v1992_v1 }
 0x2ea   : > { %v1974_v12 = vmul.f32 %v2741_v3, %v1972_v4  ;;  %2744 = vtanh.f32 %v1948_v61  ;;  %vm1979_vm14 = vweird.f32 %v2741_v3  ;;  %vm1961_vm1 = vmor %vm1959_vm15, %vm1960_vm13  ;;  %vm1998_vm6 = vweird.f32 %v1992_v1 }
 0x2eb   : > { %v1956_v26 = vsub.f32 1.0, %v1955_v53  ;;  %vm1980_vm2 = vmor %vm1978_vm0, %vm1979_vm14  ;;  %v2005_v9 = vor.u32 1.1754944e-38, %v2004_v57  ;;  %v6090_v57 = vld [vmem:[#allocation141_spill] sm:$0xff] }
 0x2ec   : > { %v1975_v56 = vsub.f32 1.0, %v1974_v12 }
 0x2ed   : > { %v1957_v44 = vmul.f32 %v2739_v0, %v1956_v26 }
 0x2ee   : > { %v1976_v11 = vmul.f32 %v2741_v3, %v1975_v56 }
 0x2ef   : > { %v2743_v13 = vpop.eup %2742  ;;  %v1958_v14 = vadd.f32 %v2739_v0, %v1957_v44 }
 0x2f0   : > { %v1977_v22 = vadd.f32 %v2741_v3, %v1976_v11  ;;  %v1994_v7 = vmul.f32 %v2743_v13, %v1992_v1  ;;  %v2745_v45 = vpop.eup %2744  ;;  %vm1999_vm5 = vweird.f32 %v2743_v13 }
 0x2f1   : > { %v1962_v18 = vsel %vm1961_vm1, %v2739_v0, %v1958_v14  ;;  %vm2000_vm7 = vmor %vm1998_vm6, %vm1999_vm5 }
 0x2f2   : > { %v1967_v25 = vsel %vm1964_vm3, %v1966_v20, %v1962_v18  ;;  %v1981_v52 = vsel %vm1980_vm2, %v2741_v3, %v1977_v22  ;;  %v1995_v2 = vsub.f32 1.0, %v1994_v7  ;;  %v2002_v3 = vand.u32 2147483647, %v1992_v1  ;;  %v1767_v20 = vpop.f32.mrf.mxu2 }
 0x2f3   : > { %v1986_v62 = vsel %vm1983_vm4, %v1985_v34, %v1981_v52  ;;  %v2009_v5 = vmul.f32 %v2745_v45, %v1967_v25  ;;  %v6080_v34 = vld [vmem:[#allocation132_spill] sm:$0xff] }
 0x2f4   : > { %v2008_v55 = vmul.f32 %v1986_v62, %v4725_v41  ;;  %v1996_v59 = vmul.f32 %v2743_v13, %v1995_v2  ;;  %vm2003_vm8 = vcmp.eq.f32.partialorder %v2002_v3, 8.507059e+37  ;;  %v6085_v25 = vld [vmem:[#allocation28_spill] sm:$0xff]  ;;  %v6086_v2 = vld [vmem:[#allocation137_spill] sm:$0xff]  ;;  %v6087_v62 = vld [vmem:[#allocation138_spill] sm:$0xff] }
 0x2f5   : > { %v1792_v52 = vadd.f32 %v1767_v20, %v6085_v25  ;;  %v6092_v3 = vld [vmem:[#allocation143_spill] sm:$0xff]  ;;  %v6098_v20 = vld [vmem:[#allocation149_spill] sm:$0xff] }
 0x2f6   : > { %v2010_v4 = vadd.f32 %v2009_v5, %v2008_v55  ;;  %v1997_v49 = vadd.f32 %v2743_v13, %v1996_v59 }
 0x2f8   : > { %2746 = vtanh.f32 %v2010_v4  ;;  %2328 = vst [vmem:[#allocation4] sm:$0xff] %v2010_v4  ;;  %v2001_v41 = vsel %vm2000_vm7, %v2743_v13, %v1997_v49 }
 0x2f9   : > { %v2006_v44 = vsel %vm2003_vm8, %v2005_v9, %v2001_v41 }
 0x2fa   : > { %v1811_v0 = vpop.f32.mrf.mxu0  ;;  %v1831_v61 = vpop.f32.mrf.mxu1 }
 0x2fb   : > { %v1874_v53 = vadd.f32 %v1811_v0, %v1790_v54  ;;  %v1875_v12 = vadd.f32 %v1831_v61, %v1791_v63  ;;  %v6088_v54 = vld [vmem:[#allocation139_spill] sm:$0xff]  ;;  %v6089_v63 = vld [vmem:[#allocation140_spill] sm:$0xff]  ;;  %v6091_v0 = vld [vmem:[#allocation142_spill] sm:$0xff] }
 0x2fd   : > { %v2533_v26 = vmul.f32 -1.442695, %v1874_v53  ;;  %v2534_v56 = vmul.f32 -1.442695, %v1875_v12  ;;  %v6093_v53 = vld [vmem:[#allocation144_spill] sm:$0xff] }
 0x2fe   : > { %v2747_v51 = vpop.eup %2746 }
 0x2ff   : > { %2748 = vpow2.f32 %v2533_v26  ;;  %v2012_v11 = vmul.f32 %v2747_v51, %v2006_v44  ;;  %v6094_v26 = vld [vmem:[#allocation145_spill] sm:$0xff] }
 0x300   : > { %2750 = vpow2.f32 %v2534_v56  ;;  %v6095_v56 = vld [vmem:[#allocation146_spill] sm:$0xff] }
 0x301   : > { %v1871_v60 = vpop.f32.mrf.mxu3  ;;  %2029 = vmatmul.f32.vlgmr.msra.gmra.mxu0 %v2012_v11  ;;  %2049 = vmatmul.f32.vlgmr.msra.gmra.mxu1 %v2012_v11  ;;  %v1851_v18 = vpop.f32.mrf.mxu2 }
 0x302   : > { %v1877_v14 = vadd.f32 %v1871_v60, %v1793_v10  ;;  %2069 = vmatmul.f32.vlgmr.msra.gmra.mxu2 %v2012_v11  ;;  %2089 = vmatmul.f32.vlgmr.msra.gmra.mxu3 %v2012_v11  ;;  %v1876_v59 = vadd.f32 %v1851_v18, %v1792_v52  ;;  %v6096_v10 = vld [vmem:[#allocation147_spill] sm:$0xff]  ;;  %v6103_v18 = vld [vmem:[#allocation154_spill] sm:$0xff] }
 0x303   : > { %2177 = vmatpush.msra.mxu0 %v4731_v48  ;;  %2197 = vmatpush.msra.mxu1 %v4734_v24  ;;  %v6078_v48 = vld [vmem:[#allocation130_spill] sm:$0xff]  ;;  %v6079_v24 = vld [vmem:[#allocation131_spill] sm:$0xff] }
 0x304   : > { %v2535_v1 = vmul.f32 -1.442695, %v1877_v14  ;;  %2217 = vmatpush.msra.mxu2 %v4739_v33  ;;  %2237 = vmatpush.msra.mxu3 %v4742_v28  ;;  %v6081_v33 = vld [vmem:[#allocation133_spill] sm:$0xff]  ;;  %v6082_v28 = vld [vmem:[#allocation134_spill] sm:$0xff] }
 0x305   : > { %v2749_v13 = vpop.eup %2748  ;;  %2178 = vmatpush.msra.mxu0 %v4747_v19  ;;  %2198 = vmatpush.msra.mxu1 %v4750_v27  ;;  %v6083_v19 = vld [vmem:[#allocation135_spill] sm:$0xff]  ;;  %v6084_v27 = vld [vmem:[#allocation136_spill] sm:$0xff] }
 0x306   : > { %v2751_v22 = vpop.eup %2750  ;;  %v5136_v7 = vadd.f32 1.0, %v2749_v13  ;;  %2752 = vpow2.f32 %v2535_v1  ;;  %2218 = vmatpush.msra.mxu2 %v6077_v17  ;;  %2238 = vmatpush.msra.mxu3 %v6078_v48  ;;  %v6099_v1 = vld [vmem:[#allocation150_spill] sm:$0xff]  ;;  %v6100_v17 = vld [vmem:[#allocation151_spill] sm:$0xff]  ;;  %v6101_v48 = vld [vmem:[#allocation152_spill] sm:$0xff] }
 0x307   : > { %v5140_v8 = vadd.f32 1.0, %v2751_v22  ;;  %2179 = vmatpush.msra.mxu0 %v6079_v24  ;;  %2199 = vmatpush.msra.mxu1 %v6080_v34 }
 0x308   : > { %2754 = vrcp.f32 %v5136_v7  ;;  %2219 = vmatpush.msra.mxu2 %v6081_v33  ;;  %2239 = vmatpush.msra.mxu3 %v6082_v28  ;;  %v1893_v41 = vand.u32 2147483648, %v5136_v7  ;;  %v1891_v44 = vand.u32 2147483647, %v5136_v7  ;;  %vm1887_vm11 = vweird.f32 %v5136_v7  ;;  %v6102_v28 = vld [vmem:[#allocation153_spill] sm:$0xff] }
 0x309   : > { %2756 = vrcp.f32 %v5140_v8  ;;  %2180 = vmatpush.msra.mxu0 %v6083_v19  ;;  %2200 = vmatpush.msra.mxu1 %v6084_v27  ;;  %v1912_v9 = vand.u32 2147483648, %v5140_v8  ;;  %v1910_v14 = vand.u32 2147483647, %v5140_v8  ;;  %vm1906_vm12 = vweird.f32 %v5140_v8 }
 0x30a   : > { %2220 = vmatpush.msra.mxu2 %v6086_v2  ;;  %2240 = vmatpush.msra.mxu3 %v6087_v62  ;;  %v1894_v24 = vor.u32 1.1754944e-38, %v1893_v41  ;;  %vm1892_vm15 = vcmp.eq.f32.partialorder %v1891_v44, 8.507059e+37  ;;  %v6119_v41 = vld [vmem:[#allocation170_spill] sm:$0xff] }
 0x30b   : > { %2109 = vmatmul.f32.vlgmr.msrb.gmra.mxu0 %v2012_v11  ;;  %2129 = vmatmul.f32.vlgmr.msrb.gmra.mxu1 %v2012_v11  ;;  %vm1911_vm0 = vcmp.eq.f32.partialorder %v1910_v14, 8.507059e+37 }
 0x30c   : > { %v2753_v45 = vpop.eup %2752  ;;  %2149 = vmatmul.f32.vlgmr.msrb.gmra.mxu2 %v2012_v11  ;;  %2169 = vmatmul.f32.vlgmr.msrb.gmra.mxu3 %v2012_v11  ;;  %v6097_v11 = vld [vmem:[#allocation148_spill] sm:$0xff] }
 0x30d   : > { %v5157_v5 = vadd.f32 1.0, %v2753_v45  ;;  %2181 = vmatpush.msra.mxu0 %v6088_v54  ;;  %2201 = vmatpush.msra.mxu1 %v6089_v63  ;;  %v6113_v63 = vld [vmem:[#allocation164_spill] sm:$0xff] }
 0x30e   : > { %v2755_v55 = vpop.eup %2754  ;;  %2221 = vmatpush.msra.mxu2 %v6090_v57  ;;  %2241 = vmatpush.msra.mxu3 %v6091_v0  ;;  %v6115_v57 = vld [vmem:[#allocation166_spill] sm:$0xff] }
 0x30f   : > { %v2757_v4 = vpop.eup %2756  ;;  %v1883_v49 = vmul.f32 %v2755_v55, %v5136_v7  ;;  %2758 = vrcp.f32 %v5157_v5  ;;  %2182 = vmatpush.msra.mxu0 %v6092_v3  ;;  %2202 = vmatpush.msra.mxu1 %v6093_v53  ;;  %vm1888_vm9 = vweird.f32 %v2755_v55  ;;  %v1913_v7 = vor.u32 1.1754944e-38, %v1912_v9  ;;  %v6117_v3 = vld [vmem:[#allocation168_spill] sm:$0xff] }
 0x310   : > { %v1902_v21 = vmul.f32 %v2757_v4, %v5140_v8  ;;  %2760 = vtanh.f32 %v1876_v59  ;;  %2222 = vmatpush.msra.mxu2 %v6094_v26  ;;  %2242 = vmatpush.msra.mxu3 %v6095_v56  ;;  %vm1907_vm10 = vweird.f32 %v2757_v4  ;;  %vm1889_vm13 = vmor %vm1887_vm11, %vm1888_vm9  ;;  %v6106_v59 = vld [vmem:[#allocation157_spill] sm:$0xff]  ;;  %vm1926_vm2 = vweird.f32 %v5157_v5 }
 0x311   : > { %v1884_v61 = vsub.f32 1.0, %v1883_v49  ;;  %2183 = vmatpush.msra.mxu0 %v6096_v10  ;;  %2203 = vmatpush.msra.mxu1 %v6097_v11  ;;  %vm1908_vm14 = vmor %vm1906_vm12, %vm1907_vm10  ;;  %v6112_v49 = vld [vmem:[#allocation163_spill] sm:$0xff]  ;;  %v1930_v54 = vand.u32 2147483647, %v5157_v5 }
 0x312   : > { %v1903_v12 = vsub.f32 1.0, %v1902_v21  ;;  %2223 = vmatpush.msra.mxu2 %v6098_v20  ;;  %2243 = vmatpush.msra.mxu3 %v6099_v1  ;;  %v6114_v21 = vld [vmem:[#allocation165_spill] sm:$0xff] }
 0x313   : > { %v1885_v51 = vmul.f32 %v2755_v55, %v1884_v61  ;;  %2184 = vmatpush.msra.mxu0 %v6100_v17  ;;  %2204 = vmatpush.msra.mxu1 %v6101_v48  ;;  %v6116_v61 = vld [vmem:[#allocation167_spill] sm:$0xff]  ;;  %vm1931_vm4 = vcmp.eq.f32.partialorder %v1930_v54, 8.507059e+37 }
 0x314   : > { %v1904_v60 = vmul.f32 %v2757_v4, %v1903_v12  ;;  %2224 = vmatpush.msra.mxu2 %v6102_v28  ;;  %2244 = vmatpush.msra.mxu3 %v6103_v18  ;;  %v6118_v12 = vld [vmem:[#allocation169_spill] sm:$0xff] }
 0x315   : > { %v5178_v13 = vpop.eup %2758  ;;  %v1886_v22 = vadd.f32 %v2755_v55, %v1885_v51  ;;  %2185 = vmatpush.msra.mxu0 %v4876_v43  ;;  %2205 = vmatpush.msra.mxu1 %v4879_v30  ;;  %v6104_v43 = vld [vmem:[#allocation155_spill] sm:$0xff] }
 0x316   : > { %v1905_v34 = vadd.f32 %v2757_v4, %v1904_v60  ;;  %v1922_v33 = vmul.f32 %v5178_v13, %v5157_v5  ;;  %v2761_v8 = vpop.eup %2760  ;;  %2225 = vmatpush.msra.mxu2 %v4885_v42  ;;  %2245 = vmatpush.msra.mxu3 %v4888_v29  ;;  %v6105_v29 = vld [vmem:[#allocation156_spill] sm:$0xff]  ;;  %vm1927_vm1 = vweird.f32 %v5178_v13 }
 0x317   : > { %v1890_v19 = vsel %vm1889_vm13, %v2755_v55, %v1886_v22  ;;  %2186 = vmatpush.msra.mxu0 %v4891_v50  ;;  %2206 = vmatpush.msra.mxu1 %v4894_v31  ;;  %v6107_v50 = vld [vmem:[#allocation158_spill] sm:$0xff]  ;;  %v6108_v31 = vld [vmem:[#allocation159_spill] sm:$0xff]  ;;  %vm1928_vm3 = vmor %vm1926_vm2, %vm1927_vm1 }
 0x318   : > { %v1895_v27 = vsel %vm1892_vm15, %v1894_v24, %v1890_v19  ;;  %v1909_v45 = vsel %vm1908_vm14, %v2757_v4, %v1905_v34  ;;  %v1923_v52 = vsub.f32 1.0, %v1922_v33  ;;  %2226 = vmatpush.msra.mxu2 %v4898_v37  ;;  %2246 = vmatpush.msra.mxu3 %v4901_v39  ;;  %v6109_v39 = vld [vmem:[#allocation160_spill] sm:$0xff]  ;;  %v6111_v4 = vld [vmem:[#allocation162_spill] sm:$0xff] }
 0x319   : > { %v1914_v2 = vsel %vm1911_vm0, %v1913_v7, %v1909_v45  ;;  %v1937_v62 = vmul.f32 %v2761_v8, %v1895_v27  ;;  %2187 = vmatpush.msra.mxu0 %v4905_v40  ;;  %2207 = vmatpush.msra.mxu1 %v6104_v43  ;;  %v6110_v40 = vld [vmem:[#allocation161_spill] sm:$0xff] }
 0x31a   : > { %v1936_v55 = vmul.f32 %v1914_v2, %v4911_v58  ;;  %v1924_v30 = vmul.f32 %v5178_v13, %v1923_v52  ;;  %2227 = vmatpush.msra.mxu2 %v6105_v29  ;;  %2247 = vmatpush.msra.mxu3 %v6106_v59  ;;  %v1932_v58 = vand.u32 2147483648, %v5157_v5 }
 0x31b   : > { %2188 = vmatpush.msra.mxu0 %v6107_v50  ;;  %2208 = vmatpush.msra.mxu1 %v6108_v31 }
 0x31c   : > { %v5202_v42 = vadd.f32 %v1937_v62, %v1936_v55  ;;  %v1925_v37 = vadd.f32 %v5178_v13, %v1924_v30  ;;  %2228 = vmatpush.msra.mxu2 %v6109_v39  ;;  %2248 = vmatpush.msra.mxu3 %v6110_v40  ;;  %v1933_v53 = vor.u32 1.1754944e-38, %v1932_v58 }
 0x31d   : > { %2189 = vmatpush.msra.mxu0 %v6111_v4  ;;  %2209 = vmatpush.msra.mxu1 %v6112_v49 }
 0x31e   : > { %2762 = vtanh.f32 %v5202_v42  ;;  %2229 = vmatpush.msra.mxu2 %v6113_v63  ;;  %2249 = vmatpush.msra.mxu3 %v6114_v21  ;;  %v1929_v0 = vsel %vm1928_vm3, %v5178_v13, %v1925_v37 }
 0x31f   : > { %2190 = vmatpush.msra.mxu0 %v6115_v57  ;;  %2210 = vmatpush.msra.mxu1 %v4958_v23  ;;  %v1934_v26 = vsel %vm1931_vm4, %v1933_v53, %v1929_v0 }
 0x320   : > { %2230 = vmatpush.msra.mxu2 %v6116_v61  ;;  %2250 = vmatpush.msra.mxu3 %v6117_v3 }
 0x321   : > { %2191 = vmatpush.msra.mxu0 %v6118_v12  ;;  %2211 = vmatpush.msra.mxu1 %v6119_v41 }
 0x322   : > { %2231 = vmatpush.msra.mxu2 %v4976_v6  ;;  %2251 = vmatpush.msra.mxu3 %v4979_v47 }
 0x323   : > { %2192 = vmatpush.msra.mxu0 %v4982_v16  ;;  %2212 = vmatpush.msra.mxu1 %v4985_v32 }
 0x324   : > { %v2763_v5 = vpop.eup %2762  ;;  %2232 = vmatpush.msra.mxu2 %v4988_v38  ;;  %2252 = vmatpush.msra.mxu3 %v4991_v46 }
 0x325   : > { %v1940_v23 = vmul.f32 %v2763_v5, %v1934_v26 }
 0x327   : > { %2193 = vmatmul.f32.vlgmr.msra.gmra.mxu0 %v1940_v23  ;;  %2213 = vmatmul.f32.vlgmr.msra.gmra.mxu1 %v1940_v23 }
 0x328   : > { %2233 = vmatmul.f32.vlgmr.msra.gmra.mxu2 %v1940_v23  ;;  %2253 = vmatmul.f32.vlgmr.msra.gmra.mxu3 %v1940_v23 }
 0x37e   : > { %v2030_v56 = vpop.f32.mrf.mxu0  ;;  %v2050_v9 = vpop.f32.mrf.mxu1 }
 0x37f   : > { %2324 = vst [vmem:[#allocation3 + $0x10] sm:$0xff] %v2030_v56 }
 0x380   : > { %2325 = vst [vmem:[#allocation3] sm:$0xff] %v2050_v9 }
 0x385   : > { %v2070_v6 = vpop.f32.mrf.mxu2  ;;  %v2090_v47 = vpop.f32.mrf.mxu3 }
 0x386   : > { %2326 = vst [vmem:[#allocation3 + $0x18] sm:$0xff] %v2070_v6 }
 0x387   : > { %2327 = vst [vmem:[#allocation3 + $0x8] sm:$0xff] %v2090_v47 }
 0x388   : > { %v2110_v16 = vpop.f32.mrf.mxu0  ;;  %v2130_v51 = vpop.f32.mrf.mxu1 }
 0x389   : > { %v2173_v32 = vadd.f32 %v2110_v16, %v4213_v35  ;;  %v2174_v38 = vadd.f32 %v2130_v51, %v4216_v36 }
 0x38f   : > { %v2170_v44 = vpop.f32.mrf.mxu3  ;;  %v2150_v17 = vpop.f32.mrf.mxu2 }
 0x390   : > { %v2176_v1 = vadd.f32 %v2170_v44, %v4228_v15  ;;  %v2175_v18 = vadd.f32 %v2150_v17, %v6085_v25 }
 0x3a4   : > { %v2194_v46 = vpop.f32.mrf.mxu0  ;;  %v2214_v10 = vpop.f32.mrf.mxu1 }
 0x3a5   : > { %v2257_v11 = vadd.f32 %v2194_v46, %v2173_v32  ;;  %v2258_v60 = vadd.f32 %v2214_v10, %v2174_v38 }
 0x3a7   : > { %v2539_v14 = vmul.f32 -1.442695, %v2257_v11  ;;  %v2540_v20 = vmul.f32 -1.442695, %v2258_v60 }
 0x3a9   : > { %2764 = vpow2.f32 %v2539_v14 }
 0x3aa   : > { %2766 = vpow2.f32 %v2540_v20 }
 0x3ab   : > { %v2254_v13 = vpop.f32.mrf.mxu3  ;;  %v2234_v33 = vpop.f32.mrf.mxu2 }
 0x3ac   : > { %v2260_v22 = vadd.f32 %v2254_v13, %v2176_v1  ;;  %v2259_v8 = vadd.f32 %v2234_v33, %v2175_v18 }
 0x3ae   : > { %v2541_v48 = vmul.f32 -1.442695, %v2260_v22 }
 0x3af   : > { %v2765_v24 = vpop.eup %2764 }
 0x3b0   : > { %v2767_v34 = vpop.eup %2766  ;;  %v2264_v35 = vadd.f32 1.0, %v2765_v24  ;;  %2768 = vpow2.f32 %v2541_v48 }
 0x3b1   : > { %v2283_v36 = vadd.f32 1.0, %v2767_v34 }
 0x3b2   : > { %2770 = vrcp.f32 %v2264_v35  ;;  %v2276_v62 = vand.u32 2147483648, %v2264_v35  ;;  %v2274_v43 = vand.u32 2147483647, %v2264_v35  ;;  %vm2270_vm7 = vweird.f32 %v2264_v35 }
 0x3b3   : > { %2772 = vrcp.f32 %v2283_v36  ;;  %v2295_v55 = vand.u32 2147483648, %v2283_v36  ;;  %v2293_v59 = vand.u32 2147483647, %v2283_v36  ;;  %vm2289_vm8 = vweird.f32 %v2283_v36 }
 0x3b4   : > { %v2277_v31 = vor.u32 1.1754944e-38, %v2276_v62  ;;  %vm2275_vm11 = vcmp.eq.f32.partialorder %v2274_v43, 8.507059e+37 }
 0x3b5   : > { %v2296_v40 = vor.u32 1.1754944e-38, %v2295_v55  ;;  %vm2294_vm12 = vcmp.eq.f32.partialorder %v2293_v59, 8.507059e+37 }
 0x3b6   : > { %v2769_v28 = vpop.eup %2768 }
 0x3b7   : > { %v2303_v7 = vadd.f32 1.0, %v2769_v28 }
 0x3b8   : > { %v2771_v19 = vpop.eup %2770 }
 0x3b9   : > { %v2773_v15 = vpop.eup %2772  ;;  %v2266_v27 = vmul.f32 %v2771_v19, %v2264_v35  ;;  %2774 = vrcp.f32 %v2303_v7  ;;  %vm2271_vm5 = vweird.f32 %v2771_v19  ;;  %v2315_v12 = vand.u32 2147483648, %v2303_v7 }
 0x3ba   : > { %v2285_v45 = vmul.f32 %v2773_v15, %v2283_v36  ;;  %2776 = vtanh.f32 %v2259_v8  ;;  %vm2290_vm6 = vweird.f32 %v2773_v15  ;;  %vm2272_vm9 = vmor %vm2270_vm7, %vm2271_vm5  ;;  %vm2309_vm14 = vweird.f32 %v2303_v7 }
 0x3bb   : > { %v2267_v52 = vsub.f32 1.0, %v2266_v27  ;;  %vm2291_vm10 = vmor %vm2289_vm8, %vm2290_vm6  ;;  %v2313_v41 = vand.u32 2147483647, %v2303_v7  ;;  %v2316_v26 = vor.u32 1.1754944e-38, %v2315_v12 }
 0x3bc   : > { %v2286_v2 = vsub.f32 1.0, %v2285_v45 }
 0x3bd   : > { %v2268_v30 = vmul.f32 %v2771_v19, %v2267_v52  ;;  %vm2314_vm0 = vcmp.eq.f32.partialorder %v2313_v41, 8.507059e+37 }
 0x3be   : > { %v2287_v29 = vmul.f32 %v2773_v15, %v2286_v2 }
 0x3bf   : > { %v2775_v50 = vpop.eup %2774  ;;  %v2269_v25 = vadd.f32 %v2771_v19, %v2268_v30 }
 0x3c0   : > { %v2288_v37 = vadd.f32 %v2773_v15, %v2287_v29  ;;  %v2305_v39 = vmul.f32 %v2775_v50, %v2303_v7  ;;  %v2777_v4 = vpop.eup %2776  ;;  %vm2310_vm13 = vweird.f32 %v2775_v50 }
 0x3c1   : > { %v2273_v58 = vsel %vm2272_vm9, %v2771_v19, %v2269_v25  ;;  %vm2311_vm15 = vmor %vm2309_vm14, %vm2310_vm13 }
 0x3c2   : > { %v2278_v49 = vsel %vm2275_vm11, %v2277_v31, %v2273_v58  ;;  %v2292_v54 = vsel %vm2291_vm10, %v2773_v15, %v2288_v37  ;;  %v2306_v63 = vsub.f32 1.0, %v2305_v39 }
 0x3c3   : > { %v2297_v21 = vsel %vm2294_vm12, %v2296_v40, %v2292_v54  ;;  %v2320_v57 = vmul.f32 %v2777_v4, %v2278_v49 }
 0x3c4   : > { %v2319_v0 = vmul.f32 %v2297_v21, %v5202_v42  ;;  %v2307_v61 = vmul.f32 %v2775_v50, %v2306_v63 }
 0x3c6   : > { %v2321_v3 = vadd.f32 %v2320_v57, %v2319_v0  ;;  %v2308_v53 = vadd.f32 %v2775_v50, %v2307_v61 }
 0x3c8   : > { %2778 = vtanh.f32 %v2321_v3  ;;  %2330 = vst [vmem:[#allocation6] sm:$0xff] %v2321_v3  ;;  %v2312_v5 = vsel %vm2311_vm15, %v2775_v50, %v2308_v53 }
 0x3c9   : > { %v2317_v56 = vsel %vm2314_vm0, %v2316_v26, %v2312_v5 }
 0x3cd   : > { %2334 = sbr.rel (%p2542_p1) target bundleno = 1139 (0x473), region = 84 }
 0x3ce   : > { %v2779_v23 = vpop.eup %2778 }
 0x3cf   : > { %v2323_v9 = vmul.f32 %v2779_v23, %v2317_v56 }
 0x3d1   : > { %2329 = vst [vmem:[#allocation5] sm:$0xff] %v2323_v9 }
 0x3d2   : > { %v2350_v42 = vld [vmem:[#allocation16 + $0x78] sm:$0xff]  ;;  %v2349_v6 = vld [vmem:[#allocation16 + $0x70] sm:$0xff]  ;;  %v2348_v47 = vld [vmem:[#allocation16 + $0x68] sm:$0xff] }
 0x3d3   : > { %2355 = vmatpush.msra.mxu0 %v2350_v42  ;;  %v2347_v16 = vld [vmem:[#allocation16 + $0x60] sm:$0xff]  ;;  %v2346_v51 = vld [vmem:[#allocation16 + $0x58] sm:$0xff]  ;;  %v2345_v32 = vld [vmem:[#allocation16 + $0x50] sm:$0xff] }
 0x3d4   : > { %v2344_v38 = vld [vmem:[#allocation16 + $0x48] sm:$0xff]  ;;  %v2343_v44 = vld [vmem:[#allocation16 + $0x40] sm:$0xff]  ;;  %v2342_v46 = vld [vmem:[#allocation16 + $0x38] sm:$0xff] }
 0x3d5   : > { %2356 = vmatpush.msra.mxu0 %v2349_v6  ;;  %v2341_v10 = vld [vmem:[#allocation16 + $0x30] sm:$0xff]  ;;  %v2340_v11 = vld [vmem:[#allocation16 + $0x28] sm:$0xff]  ;;  %v2339_v60 = vld [vmem:[#allocation16 + $0x20] sm:$0xff] }
 0x3d6   : > { %v2338_v14 = vld [vmem:[#allocation16 + $0x18] sm:$0xff]  ;;  %v2337_v20 = vld [vmem:[#allocation16 + $0x10] sm:$0xff]  ;;  %v2336_v1 = vld [vmem:[#allocation16 + $0x8] sm:$0xff] }
 0x3d7   : > { %2357 = vmatpush.msra.mxu0 %v2348_v47  ;;  %v2335_v13 = vld [vmem:[#allocation16] sm:$0xff] }
 0x3d8   : > { %v2972_v22 = vld [vmem:[%s5266_s7] ss:$0 sm:$0xff] }
 0x3d9   : > { %2358 = vmatpush.msra.mxu0 %v2347_v16 }
 0x3db   : > { %2359 = vmatpush.msra.mxu0 %v2346_v51 }
 0x3dd   : > { %2360 = vmatpush.msra.mxu0 %v2345_v32 }
 0x3df   : > { %2361 = vmatpush.msra.mxu0 %v2344_v38 }
 0x3e1   : > { %2362 = vmatpush.msra.mxu0 %v2343_v44 }
 0x3e3   : > { %2363 = vmatpush.msra.mxu0 %v2342_v46 }
 0x3e5   : > { %2364 = vmatpush.msra.mxu0 %v2341_v10 }
 0x3e7   : > { %2365 = vmatpush.msra.mxu0 %v2340_v11 }
 0x3e9   : > { %2366 = vmatpush.msra.mxu0 %v2339_v60 }
 0x3eb   : > { %2367 = vmatpush.msra.mxu0 %v2338_v14 }
 0x3ed   : > { %2368 = vmatpush.msra.mxu0 %v2337_v20 }
 0x3ef   : > { %2369 = vmatpush.msra.mxu0 %v2336_v1 }
 0x3f1   : > { %2370 = vmatpush.msra.mxu0 %v2335_v13 }
 0x3f2   : > { %2371 = vmatmul.f32.vlgmr.msra.gmra.mxu0 %v2323_v9 }
 0x46f   : > { %v2372_v17 = vpop.f32.mrf.mxu0 }
 0x470   : > { %v2373_v48 = vadd.f32 %v2972_v22, %v2372_v17 }
 0x472   : > { %2375 = vst [vmem:[#allocation18] sm:$0xff] %v2373_v48 }
 0x473 PF: > { %p2605_p3 = scmp.eq.s32.totalorder %s3315_s12, 1  ;;  %s3245_s24 = smov [#allocation18]  }
 0x474   : > { %s2382_s25 = sshll.u32 %s3245_s24, 4  ;;  %s2384_s16 = sshll.u32 %s5267_s8, 4  ;;  %s2383_s25 = int_to_ptr.vmem [resolvable:$true] %s2382_s25  ;;  %s2385_s16 = int_to_ptr.hbm [resolvable:$true] %s2384_s16 }
 0x475   : > { %2571 = dma.vmem_to_hbm [thread:$0]  (%p2605_p3), %s2383_s25, 128, %s2385_s16, [#allocation9]  }
 0x476   : > { %3214 = dma.done.wait (%p2605_p3), [#allocation9], 128  }
 0x477   : > { %3216 = vsyncadd (%p2605_p3), [#allocation9], 4294967168 }
 0x478 PF: > { %p22_p4 = scmp.ge.s32.totalorder %s3359_s10, 4   ;;  %s6120_s27 = smov %s3223_s28 }
 0x479   : > { %s6121_s28 = smov %s3227_s29  ;;  %s6122_s29 = smov %s3370_s17 }
 0x47a   : > { %s6123_s30 = smov %s3359_s10  ;;  %24 = sbr.rel (!%p22_p4) target bundleno = 7 (0x7), region = 120 }
 0x47f   :  { %2398 = vsyncpa [#allocation8], 1 }
 0x480   :  { %2400 = vsyncpa [#allocation8 + $0x1], 1 }
 0x481   :  { %2401 = vsyncpa [#allocation11], 1 }
 0x482   :  { %2402 = vsyncpa [#allocation14], 1 }
 0x483   :  { %2403 = vsyncpa [#allocation17], 1 }
 0x484   :  { %2404 = vsyncpa [#allocation9], 1 }
 0x485   :  { %2406 = vsyncpa [#allocation9 + $0x1], 1 }

</bundles_post_ra>
